<compile_context>
chip_gen: v7x
topology: tpu7x:2x2x1
jax: 0.10.0
libtpu: 0.0.40
codegen_flags: <defaults>
</compile_context>

<pallas_src>
import functools

import numpy as np
import jax
import jax.numpy as jnp
from jax.experimental import pallas as pl
from jax.experimental.pallas import tpu as pltpu


TM = 256          # row tile (flattened spatial positions)
TN = 128          # output-channel tile (MXU lane width)
TK = 128          # reduction (input-channel) tile for plain GEMMs


def _round_up(x, m):
    return (x + m - 1) // m * m


def _cdiv(a, b):
    return (a + b - 1) // b


# ---------------------------------------------------------------------------
# Kernel 1: fused GEMM    out = [relu](x * scale + shift) @ w + bias
#   - 7x7 stem conv   : scale=1, shift=0, no relu, bias fused into epilogue
#   - transition 1x1  : BN scale/shift + ReLU fused into LHS load, bias fused
# ---------------------------------------------------------------------------
def _fused_gemm_kernel(x_ref, s_ref, h_ref, w_ref, b_ref, o_ref, acc_ref, *, act):
    @pl.when(pl.program_id(2) == 0)
    def _():
        acc_ref[...] = jnp.zeros_like(acc_ref)

    a = x_ref[...] * s_ref[...] + h_ref[...]
    if act:
        a = jnp.maximum(a, 0.0)
    acc_ref[...] += jnp.dot(a, w_ref[...], preferred_element_type=jnp.float32)

    @pl.when(pl.program_id(2) == pl.num_programs(2) - 1)
    def _():
        o_ref[...] = acc_ref[...] + b_ref[...]


def fused_gemm(x, scale, shift, w, bias, *, act, tm=TM, tn=TN, tk=TK):
    M, Kx = x.shape
    K, Nw = w.shape
    Mp, Kp, Np = _round_up(M, tm), _round_up(K, tk), _round_up(Nw, tn)
    if Mp != M or Kx < Kp:          # persistent slab inputs already aligned -> no copy
        x = jnp.pad(x, ((0, Mp - M), (0, max(Kp - Kx, 0))))
    s = jnp.pad(scale, (0, Kp - K)).reshape(1, Kp)
    h = jnp.pad(shift, (0, Kp - K)).reshape(1, Kp)
    w_p = jnp.pad(w, ((0, Kp - K), (0, Np - Nw)))
    b_p = jnp.pad(bias, (0, Np - Nw)).reshape(1, Np)
    kernel = functools.partial(_fused_gemm_kernel, act=act)
    return pl.pallas_call(
        kernel,
        out_shape=jax.ShapeDtypeStruct((Mp, Np), jnp.float32),
        grid_spec=pltpu.PrefetchScalarGridSpec(
            num_scalar_prefetch=0,
            grid=(Mp // tm, Np // tn, Kp // tk),
            in_specs=[pl.BlockSpec((tm, tk), lambda i, j, k: (i, k)),
                      pl.BlockSpec((1, tk), lambda i, j, k: (0, k)),
                      pl.BlockSpec((1, tk), lambda i, j, k: (0, k)),
                      pl.BlockSpec((tk, tn), lambda i, j, k: (k, j)),
                      pl.BlockSpec((1, tn), lambda i, j, k: (0, j))],
            out_specs=pl.BlockSpec((tm, tn), lambda i, j, k: (i, j)),
            scratch_shapes=[pltpu.VMEM((tm, tn), jnp.float32)]),
        compiler_params=pltpu.CompilerParams(
            dimension_semantics=("parallel", "parallel", "arbitrary")),
    )(x, s, h, w_p, b_p)


# ---------------------------------------------------------------------------
# Kernel 2: fused BN(scale/shift) + ReLU + padding-ring zeroing
#   y = max(x*scale + shift, 0) * rowmask      (rowmask zeroes ring/garbage rows)
# ---------------------------------------------------------------------------
def _bn_relu_mask_kernel(x_ref, s_ref, h_ref, m_ref, o_ref):
    o_ref[...] = jnp.maximum(x_ref[...] * s_ref[...] + h_ref[...], 0.0) * m_ref[...]


def bn_relu_mask(slab, scale, shift, mask, cpad, tm=TM):
    rp = slab.shape[0]
    s = scale.reshape(1, cpad)
    h = shift.reshape(1, cpad)
    return pl.pallas_call(
        _bn_relu_mask_kernel,
        out_shape=jax.ShapeDtypeStruct((rp, cpad), jnp.float32),
        grid_spec=pltpu.PrefetchScalarGridSpec(
            num_scalar_prefetch=0,
            grid=(rp // tm, cpad // 128),
            in_specs=[pl.BlockSpec((tm, 128), lambda i, j: (i, j)),
                      pl.BlockSpec((1, 128), lambda i, j: (0, j)),
                      pl.BlockSpec((1, 128), lambda i, j: (0, j)),
                      pl.BlockSpec((tm, 1), lambda i, j: (i, 0))],
            out_specs=pl.BlockSpec((tm, 128), lambda i, j: (i, j))),
        compiler_params=pltpu.CompilerParams(
            dimension_semantics=("parallel", "parallel")),
    )(slab, s, h, mask)


# ---------------------------------------------------------------------------
# Kernel 3: implicit-im2col 3x3 (stride-1, pad-1) conv as a tap-accumulating GEMM.
#   y is the flattened padded activation (rows = n*Hp*Wp + h*Wp + w, ring = 0).
#   out_flat[r] = sum_{di,dj} y_flat[r + di*Wp + dj] @ W[di,dj]
#   The row shift is realized by loading two adjacent TM-row blocks into a VMEM
#   scratch and slicing it with a dynamic pl.ds offset — no im2col in HBM.
# ---------------------------------------------------------------------------
def _conv3x3_kernel(a_ref, b_ref, w_ref, o_ref, xbuf_ref, acc_ref, *, wp, tm):
    di = pl.program_id(2)
    dj = pl.program_id(3)

    @pl.when(jnp.logical_and(di == 0, dj == 0))
    def _():
        acc_ref[...] = jnp.zeros_like(acc_ref)
        xbuf_ref[0:tm, :] = a_ref[...]
        xbuf_ref[tm:2 * tm, :] = b_ref[...]

    off = di * wp + dj
    lhs = xbuf_ref[pl.ds(off, tm), :]
    acc_ref[...] += jnp.dot(lhs, w_ref[...], preferred_element_type=jnp.float32)

    @pl.when(jnp.logical_and(di == 2, dj == 2))
    def _():
        o_ref[...] = acc_ref[...]


def conv3x3_flat(y, w_taps, wp, tm=TM, tn=TN):
    rp, kp = y.shape          # rp is a multiple of tm; kp a multiple of 128
    rout = rp - tm
    npad = w_taps.shape[1]
    kernel = functools.partial(_conv3x3_kernel, wp=wp, tm=tm)
    return pl.pallas_call(
        kernel,
        out_shape=jax.ShapeDtypeStruct((rout, npad), jnp.float32),
        grid_spec=pltpu.PrefetchScalarGridSpec(
            num_scalar_prefetch=0,
            grid=(rout // tm, npad // tn, 3, 3),
            in_specs=[pl.BlockSpec((tm, kp), lambda i, j, di, dj: (i, 0)),
                      pl.BlockSpec((tm, kp), lambda i, j, di, dj: (i + 1, 0)),
                      pl.BlockSpec((kp, tn), lambda i, j, di, dj: (di * 3 + dj, j))],
            out_specs=pl.BlockSpec((tm, tn), lambda i, j, di, dj: (i, j)),
            scratch_shapes=[pltpu.VMEM((2 * tm, kp), jnp.float32),
                            pltpu.VMEM((tm, tn), jnp.float32)]),
        compiler_params=pltpu.CompilerParams(
            dimension_semantics=("parallel", "parallel", "arbitrary", "arbitrary")),
    )(y, y, w_taps)


# ---------------------------------------------------------------------------
# Plain-JAX glue: one-time stem im2col, pooling, BN finalization, bookkeeping.
# TODO(synk): pooling (max/avg) and the one-time 7x7 stem im2col remain
# plain-JAX glue; only the repeated dense/transition convs use fused kernels.
# ---------------------------------------------------------------------------
def _im2col(x, kh, kw, stride, pad):
    N, H, W, C = x.shape
    xp = jnp.pad(x, ((0, 0), (pad, pad), (pad, pad), (0, 0)))
    Ho = (H + 2 * pad - kh) // stride + 1
    Wo = (W + 2 * pad - kw) // stride + 1
    cols = []
    for i in range(kh):
        for j in range(kw):
            cols.append(xp[:, i:i + Ho * stride:stride,
                           j:j + Wo * stride:stride, :])
    cols = jnp.concatenate(cols, axis=-1)
    return cols.reshape(N * Ho * Wo, kh * kw * C), Ho, Wo


def _pool2d(x, k, stride, pad, mode):
    N, H, W, C = x.shape
    if mode == "max":
        xp = jnp.pad(x, ((0, 0), (pad, pad), (pad, pad), (0, 0)),
                     constant_values=-jnp.inf)
    else:
        xp = jnp.pad(x, ((0, 0), (pad, pad), (pad, pad), (0, 0)))
    Ho = (H + 2 * pad - k) // stride + 1
    Wo = (W + 2 * pad - k) // stride + 1
    vals = []
    for i in range(k):
        for j in range(k):
            vals.append(xp[:, i:i + Ho * stride:stride,
                           j:j + Wo * stride:stride, :])
    st = jnp.stack(vals, axis=0)
    return jnp.max(st, axis=0) if mode == "max" else jnp.mean(st, axis=0)


def _bn_scale_shift(ch_sum, ch_sumsq, count, gamma, beta, eps=1e-5):
    # PyTorch BatchNorm2d in (default) training mode: biased batch statistics.
    mean = ch_sum / count
    var = jnp.maximum(ch_sumsq / count - mean * mean, 0.0)
    scale = gamma / jnp.sqrt(var + eps)
    shift = beta - mean * scale
    return scale, shift


def _perm_to_slab(c0, g, nl):
    """Slab channel order = [block entry, out_0, out_1, ...]; torch order after
    nl prepend-concats = [out_{nl-1}, ..., out_0, entry].
    Returns perm with param_slab[m] = param_torch[perm[m]]."""
    idx = np.empty(c0 + nl * g, dtype=np.int32)
    idx[:c0] = np.arange(c0) + nl * g
    for k in range(nl):
        idx[c0 + k * g: c0 + (k + 1) * g] = np.arange(g) + (nl - 1 - k) * g
    return idx


def _interior_mask(n, h, w, rp):
    hp, wp = h + 2, w + 2
    r = n * hp * wp
    idx = jnp.arange(rp, dtype=jnp.int32)
    hw = idx % (hp * wp)
    hh = hw // wp
    ww = hw % wp
    valid = (idx < r) & (hh >= 1) & (hh <= h) & (ww >= 1) & (ww <= w)
    return valid.astype(jnp.float32).reshape(rp, 1)


# ---------------------------------------------------------------------------
# Parameter init (deterministic, shapes per denseNet.__init__) and forward.
# ---------------------------------------------------------------------------
def init_params(key, in_channel, num_classes, growth_rate, block_layers):
    keys = iter(jax.random.split(key, 256))

    def nrm(shape, scale=0.05):
        return scale * jax.random.normal(next(keys), shape, jnp.float32)

    params = {
        "conv1_w": nrm((64, in_channel, 7, 7)),
        "conv1_b": nrm((64,)),
        "bn1_g": jnp.ones((64,), jnp.float32),
        "bn1_b": jnp.zeros((64,), jnp.float32),
    }
    channels = 64
    blocks = []
    for i, layers in enumerate(block_layers):
        dense = []
        ch = channels
        for _ in range(layers):
            dense.append({
                "bn_g": jnp.ones((ch,), jnp.float32),
                "bn_b": jnp.zeros((ch,), jnp.float32),
                "conv_w": nrm((growth_rate, ch, 3, 3)),   # bias=False
            })
            ch += growth_rate
        channels = ch
        block = {"dense": dense}
        if i != len(block_layers) - 1:
            block["trans"] = {
                "bn_g": jnp.ones((channels,), jnp.float32),
                "bn_b": jnp.zeros((channels,), jnp.float32),
                "conv_w": nrm((channels // 2, channels, 1, 1)),
                "conv_b": nrm((channels // 2,)),
            }
            channels //= 2
        blocks.append(block)
    params["blocks"] = blocks
    params["bn2_g"] = jnp.ones((channels,), jnp.float32)
    params["bn2_b"] = jnp.zeros((channels,), jnp.float32)
    params["fc_w"] = nrm((num_classes, channels))
    params["fc_b"] = nrm((num_classes,))
    return params


def densenet_forward(params, x_nchw):
    x = jnp.transpose(x_nchw, (0, 2, 3, 1)).astype(jnp.float32)   # NCHW -> NHWC
    n = x.shape[0]
    c1 = params["conv1_w"].shape[0]

    # ---- block1: Conv7x7/2 p3 (bias fused in GEMM) -> BN -> ReLU -> MaxPool ----
    cols, ho, wo = _im2col(x, 7, 7, 2, 3)
    k = cols.shape[1]
    w_stem = jnp.transpose(params["conv1_w"], (2, 3, 1, 0)).reshape(k, c1)
    out = fused_gemm(cols, jnp.ones((k,), jnp.float32),
                     jnp.zeros((k,), jnp.float32),
                     w_stem, params["conv1_b"], act=False)
    m = n * ho * wo
    out = out[:m, :c1]
    s_sum = jnp.sum(out, axis=0)
    s_sq = jnp.sum(out * out, axis=0)
    scale, shift = _bn_scale_shift(s_sum, s_sq, m, params["bn1_g"], params["bn1_b"])
    y = jnp.maximum(out * scale[None, :] + shift[None, :], 0.0)   # small one-time op
    f = _pool2d(y.reshape(n, ho, wo, c1), 3, 2, 1, "max")

    # ---- block2: dense blocks (+ transitions) on a persistent padded slab ----
    for block in params["blocks"]:
        layers = block["dense"]
        nl = len(layers)
        g = layers[0]["conv_w"].shape[0]
        _, h, w, c0 = f.shape
        hp, wp = h + 2, w + 2
        r = n * hp * wp
        rout = _cdiv(r, TM) * TM
        rp = rout + TM
        assert 2 * wp + 2 <= TM, "row tile must cover the 3x3 tap window"
        c_final = c0 + nl * g
        cslab = _round_up(c_final, 128)

        # Slab holds features at padded spatial coords; ring / tail / garbage
        # rows are forced to zero by the row mask before any conv consumes them.
        fp = jnp.pad(f, ((0, 0), (1, 1), (1, 1), (0, 0))).reshape(r, c0)
        slab = jnp.zeros((rp, cslab), jnp.float32)
        slab = jax.lax.dynamic_update_slice(slab, fp, (0, 0))
        mask_int = _interior_mask(n, h, w, rp)            # (rp, 1) valid interior rows
        mask_out = mask_int[wp + 1: wp + 1 + rout]        # valid conv-output rows
        cnt = n * h * w
        st_sum = jnp.sum(f, axis=(0, 1, 2))               # cached per-channel stats
        st_sq = jnp.sum(f * f, axis=(0, 1, 2))

        c_used = c0
        for li, layer in enumerate(layers):
            perm = _perm_to_slab(c0, g, li)
            gamma = layer["bn_g"][perm]
            beta = layer["bn_b"][perm]
            scale, shift = _bn_scale_shift(st_sum, st_sq, cnt, gamma, beta)
            cpad = _round_up(c_used, 128)
            y = bn_relu_mask(slab,
                             jnp.pad(scale, (0, cpad - c_used)),
                             jnp.pad(shift, (0, cpad - c_used)),
                             mask_int, cpad)
            # 3x3 conv (bias=False) via implicit-im2col tap GEMM
            wl = jnp.transpose(layer["conv_w"][:, perm, :, :], (2, 3, 1, 0))
            wl = wl.reshape(9, c_used, g)
            w_taps = jnp.zeros((9, cpad, TN), jnp.float32)
            w_taps = w_taps.at[:, :c_used, :g].set(wl).reshape(9 * cpad, TN)
            new = conv3x3_flat(y, w_taps, wp)[:, :g]                  # (rout, g)
            # append new channels into the slab (features land at padded coords)
            slab = jax.lax.dynamic_update_slice(slab, new, (wp + 1, c_used))
            # incremental BN statistics: only the fresh channels are reduced
            st_sum = jnp.concatenate([st_sum, jnp.sum(new * mask_out, axis=0)])
            st_sq = jnp.concatenate([st_sq, jnp.sum(new * new * mask_out, axis=0)])
            c_used += g

        if "trans" in block:
            t = block["trans"]
            perm = _perm_to_slab(c0, g, nl)
            gamma = t["bn_g"][perm]
            beta = t["bn_b"][perm]
            scale, shift = _bn_scale_shift(st_sum, st_sq, cnt, gamma, beta)
            ct = t["conv_w"].shape[0]
            wmat = jnp.transpose(t["conv_w"][:, perm, 0, 0], (1, 0))  # (c_used, ct)
            out = fused_gemm(slab, scale, shift, wmat, t["conv_b"], act=True)
            y2 = out[:r, :ct].reshape(n, hp, wp, ct)[:, 1:h + 1, 1:w + 1, :]
            f = _pool2d(y2, 2, 2, 0, "avg")

    # ---- final BN -> ReLU -> AvgPool2d(3) -> flatten -> FC (jnp.dot) ----
    perm = _perm_to_slab(c0, g, nl)
    gamma = params["bn2_g"][perm]
    beta = params["bn2_b"][perm]
    scale, shift = _bn_scale_shift(st_sum, st_sq, cnt, gamma, beta)
    cpad = _round_up(c_used, 128)
    y = bn_relu_mask(slab,
                     jnp.pad(scale, (0, cpad - c_used)),
                     jnp.pad(shift, (0, cpad - c_used)),
                     mask_int, cpad)
    y = y[:r, :c_used].reshape(n, hp, wp, c_used)[:, 1:h + 1, 1:w + 1, :]
    pooled = _pool2d(y, 3, 3, 0, "avg")
    assert pooled.shape[1] == 1 and pooled.shape[2] == 1
    feats = pooled.reshape(n, c_used)
    fc_w = params["fc_w"][:, perm]
    return jnp.dot(feats, fc_w.T) + params["fc_b"][None, :]


if __name__ == "__main__":
    key = jax.random.PRNGKey(0)
    k_params, k_x = jax.random.split(key)

    # Small config consistent with denseNet(in_channel, num_classes,
    # growth_rate, block_layers); 24x24 input so the final AvgPool2d(3)
    # yields a 1x1 map and the view()/FC shapes line up exactly.
    in_channel, num_classes = 3, 10
    growth_rate, block_layers = 8, [2, 2]

    params = init_params(k_params, in_channel, num_classes,
                         growth_rate, block_layers)
    x = jax.random.normal(k_x, (2, in_channel, 24, 24), jnp.float32)

    fwd = jax.jit(densenet_forward)
    out = jax.block_until_ready(fwd(params, x))
    assert out.shape == (2, num_classes), out.shape
    assert bool(jnp.all(jnp.isfinite(out)))
    print("KERNEL_OK")
</pallas_src>

<mosaic_0001>
module attributes {stable_mosaic.version = 11 : i64} {
  func.func @_fused_gemm_kernel(%arg0: i32, %arg1: i32, %arg2: i32, %arg3: memref<256x128xf32, #tpu.memory_space<vmem>>, %arg4: memref<1x128xf32, #tpu.memory_space<vmem>>, %arg5: memref<1x128xf32, #tpu.memory_space<vmem>>, %arg6: memref<128x128xf32, #tpu.memory_space<vmem>>, %arg7: memref<1x128xf32, #tpu.memory_space<vmem>>, %arg8: memref<256x128xf32, #tpu.memory_space<vmem>>, %arg9: memref<256x128xf32, #tpu.memory_space<vmem>>) attributes {dimension_semantics = [#tpu.dimension_semantics<parallel>, #tpu.dimension_semantics<parallel>, #tpu.dimension_semantics<arbitrary>], iteration_bounds = array<i64: 2, 1, 2>, scalar_prefetch = 0 : i64, scratch_operands = 1 : i64, tpu.core_type = #tpu.core_type<tc>, window_params = [{transform_indices = @transform_0, window_bounds = array<i64: 256, 128>}, {transform_indices = @transform_1, window_bounds = array<i64: 1, 128>}, {transform_indices = @transform_2, window_bounds = array<i64: 1, 128>}, {transform_indices = @transform_3, window_bounds = array<i64: 128, 128>}, {transform_indices = @transform_4, window_bounds = array<i64: 1, 128>}, {transform_indices = @transform_5, window_bounds = array<i64: 256, 128>}]} {
    %c0_i32 = arith.constant 0 : i32
    %0 = arith.cmpi eq, %arg2, %c0_i32 : i32
    %1 = arith.extui %0 : i1 to i32
    %c0_i32_0 = arith.constant 0 : i32
    %2 = arith.cmpi ne, %1, %c0_i32_0 : i32
    scf.if %2 {
      %cst_13 = arith.constant 0.000000e+00 : f32
      %18 = vector.broadcast %cst_13 : f32 to vector<256x128xf32>
      %c0_14 = arith.constant 0 : index
      %c0_15 = arith.constant 0 : index
      %19 = vector.load %arg9[%c0_14, %c0_15] : memref<256x128xf32, #tpu.memory_space<vmem>>, vector<256x128xf32>
      tpu.vector_store %arg9[%c0_14, %c0_15], %18 {strides = array<i32>} : memref<256x128xf32, #tpu.memory_space<vmem>>, vector<256x128xf32>,
    } else {
    }
    %c0 = arith.constant 0 : index
    %c0_1 = arith.constant 0 : index
    %3 = vector.load %arg3[%c0, %c0_1] : memref<256x128xf32, #tpu.memory_space<vmem>>, vector<256x128xf32>
    %c0_2 = arith.constant 0 : index
    %c0_3 = arith.constant 0 : index
    %4 = vector.load %arg4[%c0_2, %c0_3] : memref<1x128xf32, #tpu.memory_space<vmem>>, vector<1x128xf32>
    %5 = vector.broadcast %4 : vector<1x128xf32> to vector<256x128xf32>
    %6 = arith.mulf %3, %5 : vector<256x128xf32>
    %c0_4 = arith.constant 0 : index
    %c0_5 = arith.constant 0 : index
    %7 = vector.load %arg5[%c0_4, %c0_5] : memref<1x128xf32, #tpu.memory_space<vmem>>, vector<1x128xf32>
    %8 = vector.broadcast %7 : vector<1x128xf32> to vector<256x128xf32>
    %9 = arith.addf %6, %8 : vector<256x128xf32>
    %c0_6 = arith.constant 0 : index
    %c0_7 = arith.constant 0 : index
    %10 = vector.load %arg9[%c0_6, %c0_7] : memref<256x128xf32, #tpu.memory_space<vmem>>, vector<256x128xf32>
    %c0_8 = arith.constant 0 : index
    %c0_9 = arith.constant 0 : index
    %11 = vector.load %arg6[%c0_8, %c0_9] : memref<128x128xf32, #tpu.memory_space<vmem>>, vector<128x128xf32>
    %cst = arith.constant dense<0.000000e+00> : vector<256x128xf32>
    %12 = tpu.matmul %9, %11, %cst {dimension_numbers = #tpu.dot_dimension_numbers<[1], [0], [0], [1], [0, 0, 1, 1], [], []>} : vector<256x128xf32>, vector<128x128xf32>, vector<256x128xf32> -> vector<256x128xf32>
    %13 = arith.addf %10, %12 : vector<256x128xf32>
    %c0_10 = arith.constant 0 : index
    %c0_11 = arith.constant 0 : index
    %14 = vector.load %arg9[%c0_10, %c0_11] : memref<256x128xf32, #tpu.memory_space<vmem>>, vector<256x128xf32>
    tpu.vector_store %arg9[%c0_10, %c0_11], %13 {strides = array<i32>} : memref<256x128xf32, #tpu.memory_space<vmem>>, vector<256x128xf32>,
    %c1_i32 = arith.constant 1 : i32
    %15 = arith.cmpi eq, %arg2, %c1_i32 : i32
    %16 = arith.extui %15 : i1 to i32
    %c0_i32_12 = arith.constant 0 : i32
    %17 = arith.cmpi ne, %16, %c0_i32_12 : i32
    scf.if %17 {
      %c0_13 = arith.constant 0 : index
      %c0_14 = arith.constant 0 : index
      %18 = vector.load %arg9[%c0_13, %c0_14] : memref<256x128xf32, #tpu.memory_space<vmem>>, vector<256x128xf32>
      %c0_15 = arith.constant 0 : index
      %c0_16 = arith.constant 0 : index
      %19 = vector.load %arg7[%c0_15, %c0_16] : memref<1x128xf32, #tpu.memory_space<vmem>>, vector<1x128xf32>
      %20 = vector.broadcast %19 : vector<1x128xf32> to vector<256x128xf32>
      %21 = arith.addf %18, %20 : vector<256x128xf32>
      %c0_17 = arith.constant 0 : index
      %c0_18 = arith.constant 0 : index
      %22 = vector.load %arg8[%c0_17, %c0_18] : memref<256x128xf32, #tpu.memory_space<vmem>>, vector<256x128xf32>
      tpu.vector_store %arg8[%c0_17, %c0_18], %21 {strides = array<i32>} : memref<256x128xf32, #tpu.memory_space<vmem>>, vector<256x128xf32>,
    } else {
    }
    return
  }
  func.func @transform_0(%arg0: i32, %arg1: i32, %arg2: i32) -> (i32, i32) {
    %c0_i32 = arith.constant 0 : i32
    return %arg0, %arg2 : i32, i32
  }
  func.func @transform_1(%arg0: i32, %arg1: i32, %arg2: i32) -> (i32, i32) {
    %c0_i32 = arith.constant 0 : i32
    %c0_i32_0 = arith.constant 0 : i32
    return %c0_i32, %arg2 : i32, i32
  }
  func.func @transform_2(%arg0: i32, %arg1: i32, %arg2: i32) -> (i32, i32) {
    %c0_i32 = arith.constant 0 : i32
    %c0_i32_0 = arith.constant 0 : i32
    return %c0_i32, %arg2 : i32, i32
  }
  func.func @transform_3(%arg0: i32, %arg1: i32, %arg2: i32) -> (i32, i32) {
    %c0_i32 = arith.constant 0 : i32
    return %arg2, %arg1 : i32, i32
  }
  func.func @transform_4(%arg0: i32, %arg1: i32, %arg2: i32) -> (i32, i32) {
    %c0_i32 = arith.constant 0 : i32
    %c0_i32_0 = arith.constant 0 : i32
    return %c0_i32, %arg1 : i32, i32
  }
  func.func @transform_5(%arg0: i32, %arg1: i32, %arg2: i32) -> (i32, i32) {
    %c0_i32 = arith.constant 0 : i32
    return %arg0, %arg1 : i32, i32
  }
}

module attributes {stable_mosaic.version = 11 : i64} {
  func.func @_bn_relu_mask_kernel(%arg0: i32, %arg1: i32, %arg2: memref<256x128xf32, #tpu.memory_space<vmem>>, %arg3: memref<1x128xf32, #tpu.memory_space<vmem>>, %arg4: memref<1x128xf32, #tpu.memory_space<vmem>>, %arg5: memref<256x1xf32, #tpu.memory_space<vmem>>, %arg6: memref<256x128xf32, #tpu.memory_space<vmem>>) attributes {dimension_semantics = [#tpu.dimension_semantics<parallel>, #tpu.dimension_semantics<parallel>], iteration_bounds = array<i64: 2, 1>, scalar_prefetch = 0 : i64, scratch_operands = 0 : i64, tpu.core_type = #tpu.core_type<tc>, window_params = [{transform_indices = @transform_0, window_bounds = array<i64: 256, 128>}, {transform_indices = @transform_1, window_bounds = array<i64: 1, 128>}, {transform_indices = @transform_2, window_bounds = array<i64: 1, 128>}, {transform_indices = @transform_3, window_bounds = array<i64: 256, 1>}, {transform_indices = @transform_4, window_bounds = array<i64: 256, 128>}]} {
    %c0 = arith.constant 0 : index
    %c0_0 = arith.constant 0 : index
    %0 = vector.load %arg2[%c0, %c0_0] : memref<256x128xf32, #tpu.memory_space<vmem>>, vector<256x128xf32>
    %c0_1 = arith.constant 0 : index
    %c0_2 = arith.constant 0 : index
    %1 = vector.load %arg3[%c0_1, %c0_2] : memref<1x128xf32, #tpu.memory_space<vmem>>, vector<1x128xf32>
    %2 = vector.broadcast %1 : vector<1x128xf32> to vector<256x128xf32>
    %3 = arith.mulf %0, %2 : vector<256x128xf32>
    %c0_3 = arith.constant 0 : index
    %c0_4 = arith.constant 0 : index
    %4 = vector.load %arg4[%c0_3, %c0_4] : memref<1x128xf32, #tpu.memory_space<vmem>>, vector<1x128xf32>
    %5 = vector.broadcast %4 : vector<1x128xf32> to vector<256x128xf32>
    %6 = arith.addf %3, %5 : vector<256x128xf32>
    %cst = arith.constant 0.000000e+00 : f32
    %7 = vector.broadcast %cst : f32 to vector<256x128xf32>
    %8 = arith.maximumf %6, %7 : vector<256x128xf32>
    %c0_5 = arith.constant 0 : index
    %c0_6 = arith.constant 0 : index
    %9 = vector.load %arg5[%c0_5, %c0_6] : memref<256x1xf32, #tpu.memory_space<vmem>>, vector<256x1xf32>
    %10 = vector.broadcast %9 : vector<256x1xf32> to vector<256x128xf32>
    %11 = arith.mulf %8, %10 : vector<256x128xf32>
    %c0_7 = arith.constant 0 : index
    %c0_8 = arith.constant 0 : index
    %12 = vector.load %arg6[%c0_7, %c0_8] : memref<256x128xf32, #tpu.memory_space<vmem>>, vector<256x128xf32>
    tpu.vector_store %arg6[%c0_7, %c0_8], %11 {strides = array<i32>} : memref<256x128xf32, #tpu.memory_space<vmem>>, vector<256x128xf32>,
    return
  }
  func.func @transform_0(%arg0: i32, %arg1: i32) -> (i32, i32) {
    %c0_i32 = arith.constant 0 : i32
    return %arg0, %arg1 : i32, i32
  }
  func.func @transform_1(%arg0: i32, %arg1: i32) -> (i32, i32) {
    %c0_i32 = arith.constant 0 : i32
    %c0_i32_0 = arith.constant 0 : i32
    return %c0_i32, %arg1 : i32, i32
  }
  func.func @transform_2(%arg0: i32, %arg1: i32) -> (i32, i32) {
    %c0_i32 = arith.constant 0 : i32
    %c0_i32_0 = arith.constant 0 : i32
    return %c0_i32, %arg1 : i32, i32
  }
  func.func @transform_3(%arg0: i32, %arg1: i32) -> (i32, i32) {
    %c0_i32 = arith.constant 0 : i32
    %c0_i32_0 = arith.constant 0 : i32
    return %arg0, %c0_i32 : i32, i32
  }
  func.func @transform_4(%arg0: i32, %arg1: i32) -> (i32, i32) {
    %c0_i32 = arith.constant 0 : i32
    return %arg0, %arg1 : i32, i32
  }
}

module attributes {stable_mosaic.version = 11 : i64} {
  func.func @_conv3x3_kernel(%arg0: i32, %arg1: i32, %arg2: i32, %arg3: i32, %arg4: memref<256x128xf32, #tpu.memory_space<vmem>>, %arg5: memref<256x128xf32, #tpu.memory_space<vmem>>, %arg6: memref<128x128xf32, #tpu.memory_space<vmem>>, %arg7: memref<256x128xf32, #tpu.memory_space<vmem>>, %arg8: memref<512x128xf32, #tpu.memory_space<vmem>>, %arg9: memref<256x128xf32, #tpu.memory_space<vmem>>) attributes {dimension_semantics = [#tpu.dimension_semantics<parallel>, #tpu.dimension_semantics<parallel>, #tpu.dimension_semantics<arbitrary>, #tpu.dimension_semantics<arbitrary>], iteration_bounds = array<i64: 1, 1, 3, 3>, scalar_prefetch = 0 : i64, scratch_operands = 2 : i64, tpu.core_type = #tpu.core_type<tc>, window_params = [{transform_indices = @transform_0, window_bounds = array<i64: 256, 128>}, {transform_indices = @transform_1, window_bounds = array<i64: 256, 128>}, {transform_indices = @transform_2, window_bounds = array<i64: 128, 128>}, {transform_indices = @transform_3, window_bounds = array<i64: 256, 128>}]} {
    %c0_i32 = arith.constant 0 : i32
    %0 = arith.cmpi eq, %arg2, %c0_i32 : i32
    %c0_i32_0 = arith.constant 0 : i32
    %1 = arith.cmpi eq, %arg3, %c0_i32_0 : i32
    %2 = arith.andi %0, %1 : i1
    %3 = arith.extui %2 : i1 to i32
    %c0_i32_1 = arith.constant 0 : i32
    %4 = arith.cmpi ne, %3, %c0_i32_1 : i32
    scf.if %4 {
      %cst_10 = arith.constant 0.000000e+00 : f32
      %19 = vector.broadcast %cst_10 : f32 to vector<256x128xf32>
      %c0_11 = arith.constant 0 : index
      %c0_12 = arith.constant 0 : index
      %20 = vector.load %arg9[%c0_11, %c0_12] : memref<256x128xf32, #tpu.memory_space<vmem>>, vector<256x128xf32>
      tpu.vector_store %arg9[%c0_11, %c0_12], %19 {strides = array<i32>} : memref<256x128xf32, #tpu.memory_space<vmem>>, vector<256x128xf32>,
      %c0_13 = arith.constant 0 : index
      %c0_14 = arith.constant 0 : index
      %21 = vector.load %arg4[%c0_13, %c0_14] : memref<256x128xf32, #tpu.memory_space<vmem>>, vector<256x128xf32>
      %c0_15 = arith.constant 0 : index
      %c0_16 = arith.constant 0 : index
      %22 = vector.load %arg8[%c0_15, %c0_16] : memref<512x128xf32, #tpu.memory_space<vmem>>, vector<256x128xf32>
      tpu.vector_store %arg8[%c0_15, %c0_16], %21 {strides = array<i32>} : memref<512x128xf32, #tpu.memory_space<vmem>>, vector<256x128xf32>,
      %c0_17 = arith.constant 0 : index
      %c0_18 = arith.constant 0 : index
      %23 = vector.load %arg5[%c0_17, %c0_18] : memref<256x128xf32, #tpu.memory_space<vmem>>, vector<256x128xf32>
      %c256 = arith.constant 256 : index
      %c0_19 = arith.constant 0 : index
      %24 = vector.load %arg8[%c256, %c0_19] : memref<512x128xf32, #tpu.memory_space<vmem>>, vector<256x128xf32>
      tpu.vector_store %arg8[%c256, %c0_19], %23 {strides = array<i32>} : memref<512x128xf32, #tpu.memory_space<vmem>>, vector<256x128xf32>,
    } else {
    }
    %c8_i32 = arith.constant 8 : i32
    %5 = arith.muli %arg2, %c8_i32 : i32
    %6 = arith.addi %5, %arg3 : i32
    %7 = arith.index_cast %6 : i32 to index
    %c0 = arith.constant 0 : index
    %8 = vector.load %arg8[%7, %c0] : memref<512x128xf32, #tpu.memory_space<vmem>>, vector<256x128xf32>
    %c0_2 = arith.constant 0 : index
    %c0_3 = arith.constant 0 : index
    %9 = vector.load %arg9[%c0_2, %c0_3] : memref<256x128xf32, #tpu.memory_space<vmem>>, vector<256x128xf32>
    %c0_4 = arith.constant 0 : index
    %c0_5 = arith.constant 0 : index
    %10 = vector.load %arg6[%c0_4, %c0_5] : memref<128x128xf32, #tpu.memory_space<vmem>>, vector<128x128xf32>
    %cst = arith.constant dense<0.000000e+00> : vector<256x128xf32>
    %11 = tpu.matmul %8, %10, %cst {dimension_numbers = #tpu.dot_dimension_numbers<[1], [0], [0], [1], [0, 0, 1, 1], [], []>} : vector<256x128xf32>, vector<128x128xf32>, vector<256x128xf32> -> vector<256x128xf32>
    %12 = arith.addf %9, %11 : vector<256x128xf32>
    %c0_6 = arith.constant 0 : index
    %c0_7 = arith.constant 0 : index
    %13 = vector.load %arg9[%c0_6, %c0_7] : memref<256x128xf32, #tpu.memory_space<vmem>>, vector<256x128xf32>
    tpu.vector_store %arg9[%c0_6, %c0_7], %12 {strides = array<i32>} : memref<256x128xf32, #tpu.memory_space<vmem>>, vector<256x128xf32>,
    %c2_i32 = arith.constant 2 : i32
    %14 = arith.cmpi eq, %arg2, %c2_i32 : i32
    %c2_i32_8 = arith.constant 2 : i32
    %15 = arith.cmpi eq, %arg3, %c2_i32_8 : i32
    %16 = arith.andi %14, %15 : i1
    %17 = arith.extui %16 : i1 to i32
    %c0_i32_9 = arith.constant 0 : i32
    %18 = arith.cmpi ne, %17, %c0_i32_9 : i32
    scf.if %18 {
      %c0_10 = arith.constant 0 : index
      %c0_11 = arith.constant 0 : index
      %19 = vector.load %arg9[%c0_10, %c0_11] : memref<256x128xf32, #tpu.memory_space<vmem>>, vector<256x128xf32>
      %c0_12 = arith.constant 0 : index
      %c0_13 = arith.constant 0 : index
      %20 = vector.load %arg7[%c0_12, %c0_13] : memref<256x128xf32, #tpu.memory_space<vmem>>, vector<256x128xf32>
      tpu.vector_store %arg7[%c0_12, %c0_13], %19 {strides = array<i32>} : memref<256x128xf32, #tpu.memory_space<vmem>>, vector<256x128xf32>,
    } else {
    }
    return
  }
  func.func @transform_0(%arg0: i32, %arg1: i32, %arg2: i32, %arg3: i32) -> (i32, i32) {
    %c0_i32 = arith.constant 0 : i32
    %c0_i32_0 = arith.constant 0 : i32
    return %arg0, %c0_i32 : i32, i32
  }
  func.func @transform_1(%arg0: i32, %arg1: i32, %arg2: i32, %arg3: i32) -> (i32, i32) {
    %c1_i32 = arith.constant 1 : i32
    %0 = arith.addi %arg0, %c1_i32 : i32
    %c0_i32 = arith.constant 0 : i32
    %c0_i32_0 = arith.constant 0 : i32
    return %0, %c0_i32 : i32, i32
  }
  func.func @transform_2(%arg0: i32, %arg1: i32, %arg2: i32, %arg3: i32) -> (i32, i32) {
    %c3_i32 = arith.constant 3 : i32
    %0 = arith.muli %arg2, %c3_i32 : i32
    %1 = arith.addi %0, %arg3 : i32
    %c0_i32 = arith.constant 0 : i32
    return %1, %arg1 : i32, i32
  }
  func.func @transform_3(%arg0: i32, %arg1: i32, %arg2: i32, %arg3: i32) -> (i32, i32) {
    %c0_i32 = arith.constant 0 : i32
    return %arg0, %arg1 : i32, i32
  }
}

module attributes {stable_mosaic.version = 11 : i64} {
  func.func @_fused_gemm_kernel(%arg0: i32, %arg1: i32, %arg2: i32, %arg3: memref<256x128xf32, #tpu.memory_space<vmem>>, %arg4: memref<1x128xf32, #tpu.memory_space<vmem>>, %arg5: memref<1x128xf32, #tpu.memory_space<vmem>>, %arg6: memref<128x128xf32, #tpu.memory_space<vmem>>, %arg7: memref<1x128xf32, #tpu.memory_space<vmem>>, %arg8: memref<256x128xf32, #tpu.memory_space<vmem>>, %arg9: memref<256x128xf32, #tpu.memory_space<vmem>>) attributes {dimension_semantics = [#tpu.dimension_semantics<parallel>, #tpu.dimension_semantics<parallel>, #tpu.dimension_semantics<arbitrary>], iteration_bounds = array<i64: 2, 1, 1>, scalar_prefetch = 0 : i64, scratch_operands = 1 : i64, tpu.core_type = #tpu.core_type<tc>, window_params = [{transform_indices = @transform_0, window_bounds = array<i64: 256, 128>}, {transform_indices = @transform_1, window_bounds = array<i64: 1, 128>}, {transform_indices = @transform_2, window_bounds = array<i64: 1, 128>}, {transform_indices = @transform_3, window_bounds = array<i64: 128, 128>}, {transform_indices = @transform_4, window_bounds = array<i64: 1, 128>}, {transform_indices = @transform_5, window_bounds = array<i64: 256, 128>}]} {
    %c0_i32 = arith.constant 0 : i32
    %0 = arith.cmpi eq, %arg2, %c0_i32 : i32
    %1 = arith.extui %0 : i1 to i32
    %c0_i32_0 = arith.constant 0 : i32
    %2 = arith.cmpi ne, %1, %c0_i32_0 : i32
    scf.if %2 {
      %cst_15 = arith.constant 0.000000e+00 : f32
      %20 = vector.broadcast %cst_15 : f32 to vector<256x128xf32>
      %c0_16 = arith.constant 0 : index
      %c0_17 = arith.constant 0 : index
      %21 = vector.load %arg9[%c0_16, %c0_17] : memref<256x128xf32, #tpu.memory_space<vmem>>, vector<256x128xf32>
      tpu.vector_store %arg9[%c0_16, %c0_17], %20 {strides = array<i32>} : memref<256x128xf32, #tpu.memory_space<vmem>>, vector<256x128xf32>,
    } else {
    }
    %c0 = arith.constant 0 : index
    %c0_1 = arith.constant 0 : index
    %3 = vector.load %arg3[%c0, %c0_1] : memref<256x128xf32, #tpu.memory_space<vmem>>, vector<256x128xf32>
    %c0_2 = arith.constant 0 : index
    %c0_3 = arith.constant 0 : index
    %4 = vector.load %arg4[%c0_2, %c0_3] : memref<1x128xf32, #tpu.memory_space<vmem>>, vector<1x128xf32>
    %5 = vector.broadcast %4 : vector<1x128xf32> to vector<256x128xf32>
    %6 = arith.mulf %3, %5 : vector<256x128xf32>
    %c0_4 = arith.constant 0 : index
    %c0_5 = arith.constant 0 : index
    %7 = vector.load %arg5[%c0_4, %c0_5] : memref<1x128xf32, #tpu.memory_space<vmem>>, vector<1x128xf32>
    %8 = vector.broadcast %7 : vector<1x128xf32> to vector<256x128xf32>
    %9 = arith.addf %6, %8 : vector<256x128xf32>
    %cst = arith.constant 0.000000e+00 : f32
    %10 = vector.broadcast %cst : f32 to vector<256x128xf32>
    %11 = arith.maximumf %9, %10 : vector<256x128xf32>
    %c0_6 = arith.constant 0 : index
    %c0_7 = arith.constant 0 : index
    %12 = vector.load %arg9[%c0_6, %c0_7] : memref<256x128xf32, #tpu.memory_space<vmem>>, vector<256x128xf32>
    %c0_8 = arith.constant 0 : index
    %c0_9 = arith.constant 0 : index
    %13 = vector.load %arg6[%c0_8, %c0_9] : memref<128x128xf32, #tpu.memory_space<vmem>>, vector<128x128xf32>
    %cst_10 = arith.constant dense<0.000000e+00> : vector<256x128xf32>
    %14 = tpu.matmul %11, %13, %cst_10 {dimension_numbers = #tpu.dot_dimension_numbers<[1], [0], [0], [1], [0, 0, 1, 1], [], []>} : vector<256x128xf32>, vector<128x128xf32>, vector<256x128xf32> -> vector<256x128xf32>
    %15 = arith.addf %12, %14 : vector<256x128xf32>
    %c0_11 = arith.constant 0 : index
    %c0_12 = arith.constant 0 : index
    %16 = vector.load %arg9[%c0_11, %c0_12] : memref<256x128xf32, #tpu.memory_space<vmem>>, vector<256x128xf32>
    tpu.vector_store %arg9[%c0_11, %c0_12], %15 {strides = array<i32>} : memref<256x128xf32, #tpu.memory_space<vmem>>, vector<256x128xf32>,
    %c0_i32_13 = arith.constant 0 : i32
    %17 = arith.cmpi eq, %arg2, %c0_i32_13 : i32
    %18 = arith.extui %17 : i1 to i32
    %c0_i32_14 = arith.constant 0 : i32
    %19 = arith.cmpi ne, %18, %c0_i32_14 : i32
    scf.if %19 {
      %c0_15 = arith.constant 0 : index
      %c0_16 = arith.constant 0 : index
      %20 = vector.load %arg9[%c0_15, %c0_16] : memref<256x128xf32, #tpu.memory_space<vmem>>, vector<256x128xf32>
      %c0_17 = arith.constant 0 : index
      %c0_18 = arith.constant 0 : index
      %21 = vector.load %arg7[%c0_17, %c0_18] : memref<1x128xf32, #tpu.memory_space<vmem>>, vector<1x128xf32>
      %22 = vector.broadcast %21 : vector<1x128xf32> to vector<256x128xf32>
      %23 = arith.addf %20, %22 : vector<256x128xf32>
      %c0_19 = arith.constant 0 : index
      %c0_20 = arith.constant 0 : index
      %24 = vector.load %arg8[%c0_19, %c0_20] : memref<256x128xf32, #tpu.memory_space<vmem>>, vector<256x128xf32>
      tpu.vector_store %arg8[%c0_19, %c0_20], %23 {strides = array<i32>} : memref<256x128xf32, #tpu.memory_space<vmem>>, vector<256x128xf32>,
    } else {
    }
    return
  }
  func.func @transform_0(%arg0: i32, %arg1: i32, %arg2: i32) -> (i32, i32) {
    %c0_i32 = arith.constant 0 : i32
    return %arg0, %arg2 : i32, i32
  }
  func.func @transform_1(%arg0: i32, %arg1: i32, %arg2: i32) -> (i32, i32) {
    %c0_i32 = arith.constant 0 : i32
    %c0_i32_0 = arith.constant 0 : i32
    return %c0_i32, %arg2 : i32, i32
  }
  func.func @transform_2(%arg0: i32, %arg1: i32, %arg2: i32) -> (i32, i32) {
    %c0_i32 = arith.constant 0 : i32
    %c0_i32_0 = arith.constant 0 : i32
    return %c0_i32, %arg2 : i32, i32
  }
  func.func @transform_3(%arg0: i32, %arg1: i32, %arg2: i32) -> (i32, i32) {
    %c0_i32 = arith.constant 0 : i32
    return %arg2, %arg1 : i32, i32
  }
  func.func @transform_4(%arg0: i32, %arg1: i32, %arg2: i32) -> (i32, i32) {
    %c0_i32 = arith.constant 0 : i32
    %c0_i32_0 = arith.constant 0 : i32
    return %c0_i32, %arg1 : i32, i32
  }
  func.func @transform_5(%arg0: i32, %arg1: i32, %arg2: i32) -> (i32, i32) {
    %c0_i32 = arith.constant 0 : i32
    return %arg0, %arg1 : i32, i32
  }
}

module attributes {stable_mosaic.version = 11 : i64} {
  func.func @_conv3x3_kernel(%arg0: i32, %arg1: i32, %arg2: i32, %arg3: i32, %arg4: memref<256x128xf32, #tpu.memory_space<vmem>>, %arg5: memref<256x128xf32, #tpu.memory_space<vmem>>, %arg6: memref<128x128xf32, #tpu.memory_space<vmem>>, %arg7: memref<256x128xf32, #tpu.memory_space<vmem>>, %arg8: memref<512x128xf32, #tpu.memory_space<vmem>>, %arg9: memref<256x128xf32, #tpu.memory_space<vmem>>) attributes {dimension_semantics = [#tpu.dimension_semantics<parallel>, #tpu.dimension_semantics<parallel>, #tpu.dimension_semantics<arbitrary>, #tpu.dimension_semantics<arbitrary>], iteration_bounds = array<i64: 1, 1, 3, 3>, scalar_prefetch = 0 : i64, scratch_operands = 2 : i64, tpu.core_type = #tpu.core_type<tc>, window_params = [{transform_indices = @transform_0, window_bounds = array<i64: 256, 128>}, {transform_indices = @transform_1, window_bounds = array<i64: 256, 128>}, {transform_indices = @transform_2, window_bounds = array<i64: 128, 128>}, {transform_indices = @transform_3, window_bounds = array<i64: 256, 128>}]} {
    %c0_i32 = arith.constant 0 : i32
    %0 = arith.cmpi eq, %arg2, %c0_i32 : i32
    %c0_i32_0 = arith.constant 0 : i32
    %1 = arith.cmpi eq, %arg3, %c0_i32_0 : i32
    %2 = arith.andi %0, %1 : i1
    %3 = arith.extui %2 : i1 to i32
    %c0_i32_1 = arith.constant 0 : i32
    %4 = arith.cmpi ne, %3, %c0_i32_1 : i32
    scf.if %4 {
      %cst_10 = arith.constant 0.000000e+00 : f32
      %19 = vector.broadcast %cst_10 : f32 to vector<256x128xf32>
      %c0_11 = arith.constant 0 : index
      %c0_12 = arith.constant 0 : index
      %20 = vector.load %arg9[%c0_11, %c0_12] : memref<256x128xf32, #tpu.memory_space<vmem>>, vector<256x128xf32>
      tpu.vector_store %arg9[%c0_11, %c0_12], %19 {strides = array<i32>} : memref<256x128xf32, #tpu.memory_space<vmem>>, vector<256x128xf32>,
      %c0_13 = arith.constant 0 : index
      %c0_14 = arith.constant 0 : index
      %21 = vector.load %arg4[%c0_13, %c0_14] : memref<256x128xf32, #tpu.memory_space<vmem>>, vector<256x128xf32>
      %c0_15 = arith.constant 0 : index
      %c0_16 = arith.constant 0 : index
      %22 = vector.load %arg8[%c0_15, %c0_16] : memref<512x128xf32, #tpu.memory_space<vmem>>, vector<256x128xf32>
      tpu.vector_store %arg8[%c0_15, %c0_16], %21 {strides = array<i32>} : memref<512x128xf32, #tpu.memory_space<vmem>>, vector<256x128xf32>,
      %c0_17 = arith.constant 0 : index
      %c0_18 = arith.constant 0 : index
      %23 = vector.load %arg5[%c0_17, %c0_18] : memref<256x128xf32, #tpu.memory_space<vmem>>, vector<256x128xf32>
      %c256 = arith.constant 256 : index
      %c0_19 = arith.constant 0 : index
      %24 = vector.load %arg8[%c256, %c0_19] : memref<512x128xf32, #tpu.memory_space<vmem>>, vector<256x128xf32>
      tpu.vector_store %arg8[%c256, %c0_19], %23 {strides = array<i32>} : memref<512x128xf32, #tpu.memory_space<vmem>>, vector<256x128xf32>,
    } else {
    }
    %c5_i32 = arith.constant 5 : i32
    %5 = arith.muli %arg2, %c5_i32 : i32
    %6 = arith.addi %5, %arg3 : i32
    %7 = arith.index_cast %6 : i32 to index
    %c0 = arith.constant 0 : index
    %8 = vector.load %arg8[%7, %c0] : memref<512x128xf32, #tpu.memory_space<vmem>>, vector<256x128xf32>
    %c0_2 = arith.constant 0 : index
    %c0_3 = arith.constant 0 : index
    %9 = vector.load %arg9[%c0_2, %c0_3] : memref<256x128xf32, #tpu.memory_space<vmem>>, vector<256x128xf32>
    %c0_4 = arith.constant 0 : index
    %c0_5 = arith.constant 0 : index
    %10 = vector.load %arg6[%c0_4, %c0_5] : memref<128x128xf32, #tpu.memory_space<vmem>>, vector<128x128xf32>
    %cst = arith.constant dense<0.000000e+00> : vector<256x128xf32>
    %11 = tpu.matmul %8, %10, %cst {dimension_numbers = #tpu.dot_dimension_numbers<[1], [0], [0], [1], [0, 0, 1, 1], [], []>} : vector<256x128xf32>, vector<128x128xf32>, vector<256x128xf32> -> vector<256x128xf32>
    %12 = arith.addf %9, %11 : vector<256x128xf32>
    %c0_6 = arith.constant 0 : index
    %c0_7 = arith.constant 0 : index
    %13 = vector.load %arg9[%c0_6, %c0_7] : memref<256x128xf32, #tpu.memory_space<vmem>>, vector<256x128xf32>
    tpu.vector_store %arg9[%c0_6, %c0_7], %12 {strides = array<i32>} : memref<256x128xf32, #tpu.memory_space<vmem>>, vector<256x128xf32>,
    %c2_i32 = arith.constant 2 : i32
    %14 = arith.cmpi eq, %arg2, %c2_i32 : i32
    %c2_i32_8 = arith.constant 2 : i32
    %15 = arith.cmpi eq, %arg3, %c2_i32_8 : i32
    %16 = arith.andi %14, %15 : i1
    %17 = arith.extui %16 : i1 to i32
    %c0_i32_9 = arith.constant 0 : i32
    %18 = arith.cmpi ne, %17, %c0_i32_9 : i32
    scf.if %18 {
      %c0_10 = arith.constant 0 : index
      %c0_11 = arith.constant 0 : index
      %19 = vector.load %arg9[%c0_10, %c0_11] : memref<256x128xf32, #tpu.memory_space<vmem>>, vector<256x128xf32>
      %c0_12 = arith.constant 0 : index
      %c0_13 = arith.constant 0 : index
      %20 = vector.load %arg7[%c0_12, %c0_13] : memref<256x128xf32, #tpu.memory_space<vmem>>, vector<256x128xf32>
      tpu.vector_store %arg7[%c0_12, %c0_13], %19 {strides = array<i32>} : memref<256x128xf32, #tpu.memory_space<vmem>>, vector<256x128xf32>,
    } else {
    }
    return
  }
  func.func @transform_0(%arg0: i32, %arg1: i32, %arg2: i32, %arg3: i32) -> (i32, i32) {
    %c0_i32 = arith.constant 0 : i32
    %c0_i32_0 = arith.constant 0 : i32
    return %arg0, %c0_i32 : i32, i32
  }
  func.func @transform_1(%arg0: i32, %arg1: i32, %arg2: i32, %arg3: i32) -> (i32, i32) {
    %c1_i32 = arith.constant 1 : i32
    %0 = arith.addi %arg0, %c1_i32 : i32
    %c0_i32 = arith.constant 0 : i32
    %c0_i32_0 = arith.constant 0 : i32
    return %0, %c0_i32 : i32, i32
  }
  func.func @transform_2(%arg0: i32, %arg1: i32, %arg2: i32, %arg3: i32) -> (i32, i32) {
    %c3_i32 = arith.constant 3 : i32
    %0 = arith.muli %arg2, %c3_i32 : i32
    %1 = arith.addi %0, %arg3 : i32
    %c0_i32 = arith.constant 0 : i32
    return %1, %arg1 : i32, i32
  }
  func.func @transform_3(%arg0: i32, %arg1: i32, %arg2: i32, %arg3: i32) -> (i32, i32) {
    %c0_i32 = arith.constant 0 : i32
    return %arg0, %arg1 : i32, i32
  }
}

</mosaic_0001>

<bundles_post_ra>
// kernel: densenet_forward.11
= control target key start
LH: loop header
LB: loop body
LE: loop exit
PB: predicated region body
PF: predicated region fallthrough
CT: control target
= control target key end

     0   :  { %s1934_s0 = inlined_call_operand.vmem [shape: f32[512,256], index: 0, kind: input, shape index: {}]   ;;  %s1935_s1 = inlined_call_operand.vmem [shape: f32[1,256], index: 1, kind: input, shape index: {}]   ;;  %s1936_s2 = inlined_call_operand.vmem [shape: f32[1,256], index: 2, kind: input, shape index: {}]   ;;  %s1937_s3 = inlined_call_operand.vmem [shape: f32[256,128], index: 3, kind: input, shape index: {}]   ;;  %s1938_s4 = inlined_call_operand.vmem [shape: f32[1,128], index: 4, kind: input, shape index: {}]   ;;  %s1939_s5 = inlined_call_operand.vmem [shape: f32[512,128], index: 5, kind: output, shape index: {}]  }
   0x1   :  { %1941 = sst [smem:[#allocation5_spill]] %s1934_s0 }
   0x2   :  { %s1559_s18 = smov 0   ;;  %s1561_s19 = smov 0  }
   0x3   :  { %s1563_s20 = smov 0   ;;  %s1565_s21 = smov 0  }
   0x4   :  { %s1567_s22 = smov 0   ;;  %s1569_s23 = smov 0  }
   0x5   :  { %s1571_s24 = smov 0  }
   0x6 LB: > { %s27_s25 = sadd.s32 1, %s1518_s22  ;;  %s34_s26 = sadd.s32 1, %s1522_s23  ;;  %s1526_s24 = sphi %s1571_s24, %s15_s24   ;;  %s1522_s23 = sphi %s1569_s23, %s1950_s23   ;;  %s1518_s22 = sphi %s1567_s22, %s1949_s22   ;;  %s1514_s21 = sphi %s1565_s21, %s1948_s21   ;;  %s1510_s20 = sphi %s1563_s20, %s1947_s20   ;;  %s1506_s19 = sphi %s1561_s19, %s1946_s19   ;;  %s1502_s18 = sphi %s1559_s18, %s1945_s18  }
   0x7   : > { %p28_p0 = scmp.ge.s32.totalorder %s27_s25, 2  ;;  %p50_p1 = scmp.ne.s32.totalorder %s1506_s19, %s1502_s18 }
   0x8   : > { %p51_p2 = scmp.eq.s32.totalorder %s1526_s24, 0  ;;  %s43_s30 = sadd.s32 1, %s1506_s19 }
   0x9   : > { %s1952_s25 = smov (%p28_p0, %s27_s25), 0  ;;  %s1954_s26 = smov (!%p28_p0, %s34_s26), %s1522_s23 }
   0xa   : > { %p52_p3 = por %p51_p2, %p50_p1  ;;  %p36_p4 = scmp.ge.s32.totalorder %s1954_s26, 2 }
   0xb   : > { %s39_s27 = ssub.s32 %s1518_s22, %s1952_s25  ;;  %p1220_p6 = scmp.ge.s32.totalorder %s1526_s24, 4 }
   0xc   : > { %s1956_s26 = smov (%p36_p4, %s1954_s26), 0 }
   0xd   : > { %1942 = sst [smem:[#allocation4_spill]] %s1956_s26  ;;  %s38_s28 = ssub.s32 %s1522_s23, %s1956_s26 }
   0xe   : > { %s40_s29 = sor.u32 %s39_s27, %s38_s28  ;;  %216 = sbr.rel (%p1220_p6) target bundleno = 47 (0x2f), region = 20 }
   0xf   : > { %p41_p5 = scmp.eq.s32.totalorder %s40_s29, 0 }
  0x11   : > { %s1610_s6 = scalar_select %p41_p5, %s1506_s19, %s43_s30  }
  0x15   : > { %219 = sbr.rel (!%p52_p3) target bundleno = 47 (0x2f), region = 24  ;;  %s221_s7 = sand.u32 (%p52_p3), 1, %s1506_s19  }
  0x16   : > { %s1238_s8 = sshll.u32 (%p52_p3), %s1522_s23, 6  ;;  %s1221_s9 = sshll.u32 (%p52_p3), %s221_s7, 8 }
  0x17   : > { %s226_s10 = sadd.s32 (%p52_p3), %s1518_s22, %s1238_s8  ;;  %s1943_s0 = sld [smem:[#allocation5_spill]] (%p52_p3) }
  0x18   : > { %s1224_s11 = sshll.u32 (%p52_p3), %s226_s10, 3  ;;  %s1624_s15 = scalar_lea.vmem (%p52_p3), [#allocation3], %s1221_s9 }
  0x1d   : > { %s1619_s14 = scalar_lea.vmem %s1943_s0, %s1224_s11 }
  0x1e   : > { %v318_v0 = vld [vmem:[%s1619_s14] sm:$0xff]  ;;  %v320_v1 = vld [vmem:[%s1619_s14 + $0x10] sm:$0xff] }
  0x1f   : > { %v322_v2 = vld [vmem:[%s1619_s14 + $0x20] sm:$0xff]  ;;  %319 = vst [vmem:[%s1624_s15] sm:$0xff] %v318_v0  ;;  %321 = vst [vmem:[%s1624_s15 + $0x8] sm:$0xff] %v320_v1  ;;  %v324_v3 = vld [vmem:[%s1619_s14 + $0x30] sm:$0xff] }
  0x20   : > { %323 = vst [vmem:[%s1624_s15 + $0x10] sm:$0xff] %v322_v2  ;;  %v326_v4 = vld [vmem:[%s1619_s14 + $0x40] sm:$0xff]  ;;  %v328_v5 = vld [vmem:[%s1619_s14 + $0x50] sm:$0xff]  ;;  %325 = vst [vmem:[%s1624_s15 + $0x18] sm:$0xff] %v324_v3 }
  0x21   : > { %327 = vst [vmem:[%s1624_s15 + $0x20] sm:$0xff] %v326_v4  ;;  %329 = vst [vmem:[%s1624_s15 + $0x28] sm:$0xff] %v328_v5  ;;  %v330_v6 = vld [vmem:[%s1619_s14 + $0x60] sm:$0xff]  ;;  %v332_v7 = vld [vmem:[%s1619_s14 + $0x70] sm:$0xff] }
  0x22   : > { %v334_v8 = vld [vmem:[%s1619_s14 + $0x80] sm:$0xff]  ;;  %331 = vst [vmem:[%s1624_s15 + $0x30] sm:$0xff] %v330_v6  ;;  %333 = vst [vmem:[%s1624_s15 + $0x38] sm:$0xff] %v332_v7  ;;  %v336_v9 = vld [vmem:[%s1619_s14 + $0x90] sm:$0xff] }
  0x23   : > { %335 = vst [vmem:[%s1624_s15 + $0x40] sm:$0xff] %v334_v8  ;;  %v338_v10 = vld [vmem:[%s1619_s14 + $0xa0] sm:$0xff]  ;;  %v340_v11 = vld [vmem:[%s1619_s14 + $0xb0] sm:$0xff]  ;;  %337 = vst [vmem:[%s1624_s15 + $0x48] sm:$0xff] %v336_v9 }
  0x24   : > { %339 = vst [vmem:[%s1624_s15 + $0x50] sm:$0xff] %v338_v10  ;;  %341 = vst [vmem:[%s1624_s15 + $0x58] sm:$0xff] %v340_v11  ;;  %v342_v12 = vld [vmem:[%s1619_s14 + $0xc0] sm:$0xff]  ;;  %v344_v13 = vld [vmem:[%s1619_s14 + $0xd0] sm:$0xff] }
  0x25   : > { %v346_v14 = vld [vmem:[%s1619_s14 + $0xe0] sm:$0xff]  ;;  %343 = vst [vmem:[%s1624_s15 + $0x60] sm:$0xff] %v342_v12  ;;  %345 = vst [vmem:[%s1624_s15 + $0x68] sm:$0xff] %v344_v13  ;;  %v348_v15 = vld [vmem:[%s1619_s14 + $0xf0] sm:$0xff] }
  0x26   : > { %347 = vst [vmem:[%s1624_s15 + $0x70] sm:$0xff] %v346_v14  ;;  %v350_v16 = vld [vmem:[%s1619_s14 + $0x100] sm:$0xff]  ;;  %v352_v17 = vld [vmem:[%s1619_s14 + $0x110] sm:$0xff]  ;;  %349 = vst [vmem:[%s1624_s15 + $0x78] sm:$0xff] %v348_v15 }
  0x27   : > { %351 = vst [vmem:[%s1624_s15 + $0x80] sm:$0xff] %v350_v16  ;;  %353 = vst [vmem:[%s1624_s15 + $0x88] sm:$0xff] %v352_v17  ;;  %v354_v18 = vld [vmem:[%s1619_s14 + $0x120] sm:$0xff]  ;;  %v356_v19 = vld [vmem:[%s1619_s14 + $0x130] sm:$0xff] }
  0x28   : > { %v358_v20 = vld [vmem:[%s1619_s14 + $0x140] sm:$0xff]  ;;  %355 = vst [vmem:[%s1624_s15 + $0x90] sm:$0xff] %v354_v18  ;;  %357 = vst [vmem:[%s1624_s15 + $0x98] sm:$0xff] %v356_v19  ;;  %v360_v21 = vld [vmem:[%s1619_s14 + $0x150] sm:$0xff] }
  0x29   : > { %359 = vst [vmem:[%s1624_s15 + $0xa0] sm:$0xff] %v358_v20  ;;  %v362_v22 = vld [vmem:[%s1619_s14 + $0x160] sm:$0xff]  ;;  %v364_v23 = vld [vmem:[%s1619_s14 + $0x170] sm:$0xff]  ;;  %361 = vst [vmem:[%s1624_s15 + $0xa8] sm:$0xff] %v360_v21 }
  0x2a   : > { %363 = vst [vmem:[%s1624_s15 + $0xb0] sm:$0xff] %v362_v22  ;;  %365 = vst [vmem:[%s1624_s15 + $0xb8] sm:$0xff] %v364_v23  ;;  %v366_v24 = vld [vmem:[%s1619_s14 + $0x180] sm:$0xff]  ;;  %v368_v25 = vld [vmem:[%s1619_s14 + $0x190] sm:$0xff] }
  0x2b   : > { %v370_v26 = vld [vmem:[%s1619_s14 + $0x1a0] sm:$0xff]  ;;  %367 = vst [vmem:[%s1624_s15 + $0xc0] sm:$0xff] %v366_v24  ;;  %369 = vst [vmem:[%s1624_s15 + $0xc8] sm:$0xff] %v368_v25  ;;  %v372_v27 = vld [vmem:[%s1619_s14 + $0x1b0] sm:$0xff] }
  0x2c   : > { %371 = vst [vmem:[%s1624_s15 + $0xd0] sm:$0xff] %v370_v26  ;;  %v374_v28 = vld [vmem:[%s1619_s14 + $0x1c0] sm:$0xff]  ;;  %v376_v29 = vld [vmem:[%s1619_s14 + $0x1d0] sm:$0xff]  ;;  %373 = vst [vmem:[%s1624_s15 + $0xd8] sm:$0xff] %v372_v27 }
  0x2d   : > { %375 = vst [vmem:[%s1624_s15 + $0xe0] sm:$0xff] %v374_v28  ;;  %377 = vst [vmem:[%s1624_s15 + $0xe8] sm:$0xff] %v376_v29  ;;  %v378_v30 = vld [vmem:[%s1619_s14 + $0x1e0] sm:$0xff]  ;;  %v380_v31 = vld [vmem:[%s1619_s14 + $0x1f0] sm:$0xff] }
  0x2e   : > { %379 = vst [vmem:[%s1624_s15 + $0xf0] sm:$0xff] %v378_v30  ;;  %381 = vst [vmem:[%s1624_s15 + $0xf8] sm:$0xff] %v380_v31 }
  0x2f PF: > { %p1225_p7 = scmp.ge.s32.totalorder %s1526_s24, 1  ;;  %p410_p8 = scmp.lt.s32.totalorder %s1526_s24, 5 }
  0x31   : > { %p411_p9 = pnand %p1225_p7, %p410_p8 }
  0x32   : > { %s417_s16 = sand.u32 (!%p411_p9), 1, %s1502_s18   ;;  %p465_p10 = scmp.lt.s32.totalorder (!%p411_p9), %s1510_s20, 1 }
  0x33   : > { %414 = sbr.rel (%p411_p9) target bundleno = 367 (0x16f), region = 74  ;;  %s1226_s17 = sshll.u32 (!%p411_p9), %s417_s16, 8 }
  0x34   : > { %s1227_s27 = sshll.u32 (!%p411_p9), %s1510_s20, 4  ;;  %s1229_s12 = sshll.u32 (!%p411_p9), %s1514_s21, 5 }
  0x35   : > { %p472_p11 = scmp.lt.s32.totalorder (!%p411_p9), %s1227_s27, 31  ;;  %p484_p12 = scmp.lt.s32.totalorder (!%p411_p9), %s1229_s12, 63 }
  0x36   : > { %s1714_s29 = scalar_lea.vmem (!%p411_p9), [#allocation3], %s1226_s17  ;;  %p1231_p13 = scmp.ne.s32.totalorder (!%p411_p9), %s1510_s20, 0 }
  0x3a   : > { %s1693_s28 = scalar_select %p465_p10, %s1510_s20, 1 }
  0x3b   : > { %s1958_s27 = smov (!%p472_p11, %s1227_s27), 31  ;;  %s1960_s12 = smov (!%p484_p12, %s1229_s12), 63 }
  0x3c   : > { %s467_s7 = scalar_lea.vmem %s1935_s1, %s1693_s28  ;;  %s470_s10 = scalar_lea.vmem %s1936_s2, %s1693_s28  ;;  %v1528_v32 = vmov (!%p1231_p13), 0.0  }
  0x3d   : > { %s1228_s11 = sshll.u32 %s1958_s27, 3  ;;  %s1230_s15 = sshll.u32 %s1960_s12, 3  ;;  %496 = vst [vmem:[#allocation2] sm:$0xff] (!%p1231_p13), %v1528_v32  ;;  %497 = vst [vmem:[#allocation2 + $0x8] sm:$0xff] (!%p1231_p13), %v1528_v32 }
  0x3e   : > { %s1707_s14 = scalar_lea.vmem %s1937_s3, %s1228_s11  ;;  %s1712_s26 = scalar_lea.vmem %s1939_s5, %s1230_s15  ;;  %498 = vst [vmem:[#allocation2 + $0x10] sm:$0xff] (!%p1231_p13), %v1528_v32  ;;  %499 = vst [vmem:[#allocation2 + $0x18] sm:$0xff] (!%p1231_p13), %v1528_v32 }
  0x3f   : > { %495 = sbr.rel (%p1231_p13) target bundleno = 77 (0x4d), region = 82  ;;  %500 = vst [vmem:[#allocation2 + $0x20] sm:$0xff] (!%p1231_p13), %v1528_v32  ;;  %501 = vst [vmem:[#allocation2 + $0x28] sm:$0xff] (!%p1231_p13), %v1528_v32 }
  0x40   : > { %502 = vst [vmem:[#allocation2 + $0x30] sm:$0xff] (!%p1231_p13), %v1528_v32  ;;  %503 = vst [vmem:[#allocation2 + $0x38] sm:$0xff] (!%p1231_p13), %v1528_v32 }
  0x41   : > { %504 = vst [vmem:[#allocation2 + $0x40] sm:$0xff] (!%p1231_p13), %v1528_v32  ;;  %505 = vst [vmem:[#allocation2 + $0x48] sm:$0xff] (!%p1231_p13), %v1528_v32 }
  0x42   : > { %506 = vst [vmem:[#allocation2 + $0x50] sm:$0xff] (!%p1231_p13), %v1528_v32  ;;  %507 = vst [vmem:[#allocation2 + $0x58] sm:$0xff] (!%p1231_p13), %v1528_v32 }
  0x43   : > { %508 = vst [vmem:[#allocation2 + $0x60] sm:$0xff] (!%p1231_p13), %v1528_v32  ;;  %509 = vst [vmem:[#allocation2 + $0x68] sm:$0xff] (!%p1231_p13), %v1528_v32 }
  0x44   : > { %510 = vst [vmem:[#allocation2 + $0x70] sm:$0xff] (!%p1231_p13), %v1528_v32  ;;  %511 = vst [vmem:[#allocation2 + $0x78] sm:$0xff] (!%p1231_p13), %v1528_v32 }
  0x45   : > { %512 = vst [vmem:[#allocation2 + $0x80] sm:$0xff] (!%p1231_p13), %v1528_v32  ;;  %513 = vst [vmem:[#allocation2 + $0x88] sm:$0xff] (!%p1231_p13), %v1528_v32 }
  0x46   : > { %514 = vst [vmem:[#allocation2 + $0x90] sm:$0xff] %v1528_v32  ;;  %515 = vst [vmem:[#allocation2 + $0x98] sm:$0xff] %v1528_v32 }
  0x47   : > { %516 = vst [vmem:[#allocation2 + $0xa0] sm:$0xff] %v1528_v32  ;;  %517 = vst [vmem:[#allocation2 + $0xa8] sm:$0xff] %v1528_v32 }
  0x48   : > { %518 = vst [vmem:[#allocation2 + $0xb0] sm:$0xff] %v1528_v32  ;;  %519 = vst [vmem:[#allocation2 + $0xb8] sm:$0xff] %v1528_v32 }
  0x49   : > { %520 = vst [vmem:[#allocation2 + $0xc0] sm:$0xff] %v1528_v32  ;;  %521 = vst [vmem:[#allocation2 + $0xc8] sm:$0xff] %v1528_v32 }
  0x4a   : > { %522 = vst [vmem:[#allocation2 + $0xd0] sm:$0xff] %v1528_v32  ;;  %523 = vst [vmem:[#allocation2 + $0xd8] sm:$0xff] %v1528_v32 }
  0x4b   : > { %524 = vst [vmem:[#allocation2 + $0xe0] sm:$0xff] %v1528_v32  ;;  %525 = vst [vmem:[#allocation2 + $0xe8] sm:$0xff] %v1528_v32 }
  0x4c   : > { %526 = vst [vmem:[#allocation2 + $0xf0] sm:$0xff] %v1528_v32  ;;  %527 = vst [vmem:[#allocation2 + $0xf8] sm:$0xff] %v1528_v32 }
  0x4d PF: > { %v670_v33 = vld [vmem:[%s1707_s14] sm:$0xff]  ;;  %v671_v34 = vld [vmem:[%s1707_s14 + $0x8] sm:$0xff]  ;;  %v672_v35 = vld [vmem:[%s1707_s14 + $0x10] sm:$0xff]  ;;  %p1234_p0 = scmp.ne.s32.totalorder %s1510_s20, 1 }
  0x4e   : > { %v1367_v36 = vpack.c.bf16 %v671_v34, %v670_v33  ;;  %v673_v37 = vld [vmem:[%s1707_s14 + $0x18] sm:$0xff]  ;;  %v674_v39 = vld [vmem:[%s1707_s14 + $0x20] sm:$0xff]  ;;  %v675_v40 = vld [vmem:[%s1707_s14 + $0x28] sm:$0xff] }
  0x4f   : > { %v1371_v38 = vpack.c.bf16 %v673_v37, %v672_v35  ;;  %v1375_v41 = vpack.c.bf16 %v675_v40, %v674_v39  ;;  %v676_v42 = vld [vmem:[%s1707_s14 + $0x30] sm:$0xff]  ;;  %v528_v43 = vld [vmem:[%s1714_s29] sm:$0xff]  ;;  %v677_v45 = vld [vmem:[%s1707_s14 + $0x38] sm:$0xff] }
  0x50   : > { %1368 = vmatprep.subr.bf16.mxu0 %v1367_v36  ;;  %1399 = vmatprep.subr.bf16.mxu1 %v1367_v36  ;;  %v1730_v44 = vld [vmem:[%s467_s7] ss:$0 sm:$0xff]  ;;  %v1379_v51 = vpack.c.bf16 %v677_v45, %v676_v42  ;;  %v679_v54 = vld [vmem:[%s1707_s14 + $0x48] sm:$0xff]  ;;  %v680_v56 = vld [vmem:[%s1707_s14 + $0x50] sm:$0xff] }
  0x51   : > { %1370 = vmatpush3.bf16.msra.mxu0 %v1367_v36  ;;  %1407 = vmatpush3.bf16.msra.mxu1 %v1367_v36  ;;  %v567_v46 = vmul.f32 %v1730_v44, %v528_v43  ;;  %v1739_v47 = vld [vmem:[%s470_s10] ss:$0 sm:$0xff]  ;;  %v681_v57 = vld [vmem:[%s1707_s14 + $0x58] sm:$0xff]  ;;  %v683_v60 = vld [vmem:[%s1707_s14 + $0x68] sm:$0xff] }
  0x52   : > { %1372 = vmatprep.subr.bf16.mxu0 %v1371_v38  ;;  %1400 = vmatprep.subr.bf16.mxu1 %v1371_v38  ;;  %v544_v48 = vld [vmem:[%s1714_s29 + $0x80] sm:$0xff]  ;;  %v1387_v58 = vpack.c.bf16 %v681_v57, %v680_v56  ;;  %v684_v62 = vld [vmem:[%s1707_s14 + $0x70] sm:$0xff]  ;;  %v685_v63 = vld [vmem:[%s1707_s14 + $0x78] sm:$0xff] }
  0x53   : > { %v583_v49 = vmul.f32 %v1730_v44, %v544_v48  ;;  %v606_v50 = vadd.f32 %v1739_v47, %v567_v46  ;;  %v678_v53 = vld [vmem:[%s1707_s14 + $0x40] sm:$0xff]  ;;  %v529_v0 = vld [vmem:[%s1714_s29 + $0x8] sm:$0xff]  ;;  %v1395_v2 = vpack.c.bf16 %v685_v63, %v684_v62  ;;  %v530_v3 = vld [vmem:[%s1714_s29 + $0x10] sm:$0xff] }
  0x54   : > { %v1383_v55 = vpack.c.bf16 %v679_v54, %v678_v53  ;;  %v682_v59 = vld [vmem:[%s1707_s14 + $0x60] sm:$0xff]  ;;  %v545_v1 = vld [vmem:[%s1714_s29 + $0x88] sm:$0xff]  ;;  %v546_v4 = vld [vmem:[%s1714_s29 + $0x90] sm:$0xff]  ;;  %v568_v5 = vmul.f32 %v1730_v44, %v529_v0  ;;  %v569_v8 = vmul.f32 %v1730_v44, %v530_v3 }
  0x55   : > { %1374 = vmatpush3.bf16.msra.mxu0 %v1371_v38  ;;  %1408 = vmatpush3.bf16.msra.mxu1 %v1371_v38  ;;  %v622_v52 = vadd.f32 %v1739_v47, %v583_v49  ;;  %v1391_v61 = vpack.c.bf16 %v683_v60, %v682_v59  ;;  %v584_v6 = vmul.f32 %v1730_v44, %v545_v1  ;;  %v531_v7 = vld [vmem:[%s1714_s29 + $0x18] sm:$0xff]  ;;  %v532_v11 = vld [vmem:[%s1714_s29 + $0x20] sm:$0xff]  ;;  %v533_v18 = vld [vmem:[%s1714_s29 + $0x28] sm:$0xff] }
  0x56   : > { %1376 = vmatprep.subr.bf16.mxu0 %v1375_v41  ;;  %1401 = vmatprep.subr.bf16.mxu1 %v1375_v41  ;;  %v585_v9 = vmul.f32 %v1730_v44, %v546_v4  ;;  %v547_v10 = vld [vmem:[%s1714_s29 + $0x98] sm:$0xff]  ;;  %v548_v12 = vld [vmem:[%s1714_s29 + $0xa0] sm:$0xff]  ;;  %v570_v13 = vmul.f32 %v1730_v44, %v531_v7  ;;  %v607_v14 = vadd.f32 %v1739_v47, %v568_v5  ;;  %v549_v22 = vld [vmem:[%s1714_s29 + $0xa8] sm:$0xff] }
  0x57   : > { %1319 = vmatprep.mubr.f32.mxu0 %v606_v50  ;;  %1343 = vmatprep.mubr.f32.mxu1 %v622_v52  ;;  %v623_v15 = vadd.f32 %v1739_v47, %v584_v6  ;;  %v586_v16 = vmul.f32 %v1730_v44, %v547_v10  ;;  %v571_v17 = vmul.f32 %v1730_v44, %v532_v11  ;;  %v534_v23 = vld [vmem:[%s1714_s29 + $0x30] sm:$0xff]  ;;  %v535_v30 = vld [vmem:[%s1714_s29 + $0x38] sm:$0xff]  ;;  %v536_v35 = vld [vmem:[%s1714_s29 + $0x40] sm:$0xff] }
  0x58   : > { %v608_v19 = vadd.f32 %v1739_v47, %v569_v8  ;;  %v624_v20 = vadd.f32 %v1739_v47, %v585_v9  ;;  %v587_v21 = vmul.f32 %v1730_v44, %v548_v12  ;;  %v550_v24 = vld [vmem:[%s1714_s29 + $0xb0] sm:$0xff]  ;;  %v609_v25 = vadd.f32 %v1739_v47, %v570_v13  ;;  %v551_v34 = vld [vmem:[%s1714_s29 + $0xb8] sm:$0xff]  ;;  %v552_v36 = vld [vmem:[%s1714_s29 + $0xc0] sm:$0xff] }
  0x59   : > { %1378 = vmatpush3.bf16.msra.mxu0 %v1375_v41  ;;  %1409 = vmatpush3.bf16.msra.mxu1 %v1375_v41  ;;  %v572_v26 = vmul.f32 %v1730_v44, %v533_v18  ;;  %v625_v27 = vadd.f32 %v1739_v47, %v586_v16  ;;  %v610_v28 = vadd.f32 %v1739_v47, %v571_v17  ;;  %v537_v42 = vld [vmem:[%s1714_s29 + $0x48] sm:$0xff]  ;;  %v538_v49 = vld [vmem:[%s1714_s29 + $0x50] sm:$0xff]  ;;  %v539_v56 = vld [vmem:[%s1714_s29 + $0x58] sm:$0xff] }
  0x5a   : > { %1380 = vmatprep.subr.bf16.mxu0 %v1379_v51  ;;  %1402 = vmatprep.subr.bf16.mxu1 %v1379_v51  ;;  %v588_v29 = vmul.f32 %v1730_v44, %v549_v22  ;;  %v626_v31 = vadd.f32 %v1739_v47, %v587_v21  ;;  %v573_v32 = vmul.f32 %v1730_v44, %v534_v23  ;;  %v553_v48 = vld [vmem:[%s1714_s29 + $0xc8] sm:$0xff]  ;;  %v554_v50 = vld [vmem:[%s1714_s29 + $0xd0] sm:$0xff]  ;;  %v555_v57 = vld [vmem:[%s1714_s29 + $0xd8] sm:$0xff] }
  0x5b   : > { %v589_v33 = vmul.f32 %v1730_v44, %v550_v24  ;;  %v611_v37 = vadd.f32 %v1739_v47, %v572_v26  ;;  %v574_v38 = vmul.f32 %v1730_v44, %v535_v30  ;;  %v590_v40 = vmul.f32 %v1730_v44, %v551_v34  ;;  %v556_v62 = vld [vmem:[%s1714_s29 + $0xe0] sm:$0xff]  ;;  %v541_v7 = vld [vmem:[%s1714_s29 + $0x68] sm:$0xff]  ;;  %v542_v9 = vld [vmem:[%s1714_s29 + $0x70] sm:$0xff] }
  0x5c   : > { %v627_v39 = vadd.f32 %v1739_v47, %v588_v29  ;;  %v575_v41 = vmul.f32 %v1730_v44, %v536_v35  ;;  %v612_v43 = vadd.f32 %v1739_v47, %v573_v32  ;;  %v591_v46 = vmul.f32 %v1730_v44, %v552_v36  ;;  %v557_v8 = vld [vmem:[%s1714_s29 + $0xe8] sm:$0xff]  ;;  %v558_v10 = vld [vmem:[%s1714_s29 + $0xf0] sm:$0xff]  ;;  %v543_v16 = vld [vmem:[%s1714_s29 + $0x78] sm:$0xff] }
  0x5d   : > { %1382 = vmatpush3.bf16.msra.mxu0 %v1379_v51  ;;  %1410 = vmatpush3.bf16.msra.mxu1 %v1379_v51  ;;  %v628_v45 = vadd.f32 %v1739_v47, %v589_v33  ;;  %v613_v51 = vadd.f32 %v1739_v47, %v574_v38  ;;  %v576_v52 = vmul.f32 %v1730_v44, %v537_v42  ;;  %v639_v29 = vld [vmem:[#allocation2 + $0x8] sm:$0xff]  ;;  %v656_v42 = vld [vmem:[#allocation2 + $0x90] sm:$0xff] }
  0x5e   : > { %1384 = vmatprep.subr.bf16.mxu0 %v1383_v55  ;;  %1403 = vmatprep.subr.bf16.mxu1 %v1383_v55  ;;  %v629_v53 = vadd.f32 %v1739_v47, %v590_v40  ;;  %v614_v54 = vadd.f32 %v1739_v47, %v575_v41  ;;  %v577_v59 = vmul.f32 %v1730_v44, %v538_v49  ;;  %v655_v30 = vld [vmem:[#allocation2 + $0x88] sm:$0xff]  ;;  %v641_v40 = vld [vmem:[#allocation2 + $0x18] sm:$0xff] }
  0x5f   : > { %v593_v60 = vmul.f32 %v1730_v44, %v554_v50  ;;  %v578_v63 = vmul.f32 %v1730_v44, %v539_v56  ;;  %v594_v0 = vmul.f32 %v1730_v44, %v555_v57  ;;  %v615_v1 = vadd.f32 %v1739_v47, %v576_v52  ;;  %v657_v41 = vld [vmem:[#allocation2 + $0x98] sm:$0xff]  ;;  %v658_v56 = vld [vmem:[#allocation2 + $0xa0] sm:$0xff] }
  0x60   : > { %v616_v4 = vadd.f32 %v1739_v47, %v577_v59  ;;  %v595_v6 = vmul.f32 %v1730_v44, %v556_v62  ;;  %v581_v18 = vmul.f32 %v1730_v44, %v542_v9  ;;  %v582_v21 = vmul.f32 %v1730_v44, %v543_v16  ;;  %v662_v16 = vld [vmem:[#allocation2 + $0xc0] sm:$0xff] }
  0x61   : > { %1386 = vmatpush3.bf16.msra.mxu0 %v1383_v55  ;;  %1411 = vmatpush3.bf16.msra.mxu1 %v1383_v55  ;;  %v592_v55 = vmul.f32 %v1730_v44, %v553_v48  ;;  %v632_v5 = vadd.f32 %v1739_v47, %v593_v60  ;;  %v617_v11 = vadd.f32 %v1739_v47, %v578_v63 }
  0x62   : > { %1388 = vmatprep.subr.bf16.mxu0 %v1387_v58  ;;  %1404 = vmatprep.subr.bf16.mxu1 %v1387_v58  ;;  %v633_v12 = vadd.f32 %v1739_v47, %v594_v0  ;;  %v634_v17 = vadd.f32 %v1739_v47, %v595_v6 }
  0x65   : > { %1390 = vmatpush3.bf16.msra.mxu0 %v1387_v58  ;;  %1412 = vmatpush3.bf16.msra.mxu1 %v1387_v58  ;;  %v630_v58 = vadd.f32 %v1739_v47, %v591_v46 }
  0x66   : > { %1392 = vmatprep.subr.bf16.mxu0 %v1391_v61  ;;  %1405 = vmatprep.subr.bf16.mxu1 %v1391_v61 }
  0x69   : > { %1394 = vmatpush3.bf16.msra.mxu0 %v1391_v61  ;;  %1413 = vmatpush3.bf16.msra.mxu1 %v1391_v61  ;;  %v540_v61 = vld [vmem:[%s1714_s29 + $0x60] sm:$0xff] }
  0x6a   : > { %1396 = vmatprep.subr.bf16.mxu0 %v1395_v2  ;;  %1406 = vmatprep.subr.bf16.mxu1 %v1395_v2  ;;  %v579_v3 = vmul.f32 %v1730_v44, %v540_v61 }
  0x6c   : > { %v618_v13 = vadd.f32 %v1739_v47, %v579_v3  ;;  %v644_v3 = vld [vmem:[#allocation2 + $0x30] sm:$0xff] }
  0x6d   : > { %1398 = vmatpush3.bf16.msra.mxu0 %v1395_v2  ;;  %1414 = vmatpush3.bf16.msra.mxu1 %v1395_v2  ;;  %v631_v2 = vadd.f32 %v1739_v47, %v592_v55  ;;  %v642_v55 = vld [vmem:[#allocation2 + $0x20] sm:$0xff] }
  0x70   : > { %1320 = vmatmul.mubr.f32.vlgmr.msra.gmra.mrb[0].mxu0 %v607_v14  ;;  %1344 = vmatmul.mubr.f32.vlgmr.msra.gmra.mrb[0].mxu1 %v623_v15  ;;  %v580_v14 = vmul.f32 %v1730_v44, %v541_v7  ;;  %v596_v15 = vmul.f32 %v1730_v44, %v557_v8 }
  0x71   : > { %1322 = vmatprep.mubr.f32.mxu0 %v608_v19  ;;  %1346 = vmatprep.mubr.f32.mxu1 %v624_v20  ;;  %v597_v19 = vmul.f32 %v1730_v44, %v558_v10  ;;  %v559_v20 = vld [vmem:[%s1714_s29 + $0xf8] sm:$0xff] }
  0x72   : > { %v619_v22 = vadd.f32 %v1739_v47, %v580_v14  ;;  %v635_v23 = vadd.f32 %v1739_v47, %v596_v15  ;;  %v598_v24 = vmul.f32 %v1730_v44, %v559_v20  ;;  %v654_v44 = vld [vmem:[#allocation2 + $0x80] sm:$0xff]  ;;  %v663_v14 = vld [vmem:[#allocation2 + $0xc8] sm:$0xff] }
  0x73   : > { %v636_v26 = vadd.f32 %v1739_v47, %v597_v19  ;;  %v646_v15 = vld [vmem:[#allocation2 + $0x40] sm:$0xff] }
  0x74   : > { %1323 = vmatmul.mubr.f32.gmra.mrb[2].mxu0 %v609_v25  ;;  %1347 = vmatmul.mubr.f32.gmra.mrb[2].mxu1 %v625_v27  ;;  %v620_v25 = vadd.f32 %v1739_v47, %v581_v18  ;;  %v621_v27 = vadd.f32 %v1739_v47, %v582_v21 }
  0x75   : > { %1325 = vmatprep.mubr.f32.mxu0 %v610_v28  ;;  %1349 = vmatprep.mubr.f32.mxu1 %v626_v31  ;;  %v637_v28 = vadd.f32 %v1739_v47, %v598_v24  ;;  %v638_v31 = vld [vmem:[#allocation2] sm:$0xff]  ;;  %v640_v47 = vld [vmem:[#allocation2 + $0x10] sm:$0xff] }
  0x78   : > { %1326 = vmatmul.mubr.f32.gmra.mrb[4].mxu0 %v611_v37  ;;  %1350 = vmatmul.mubr.f32.gmra.mrb[4].mxu1 %v627_v39 }
  0x79   : > { %1328 = vmatprep.mubr.f32.mxu0 %v612_v43  ;;  %1352 = vmatprep.mubr.f32.mxu1 %v628_v45 }
  0x7c   : > { %1329 = vmatmul.mubr.f32.gmra.mrb[6].mxu0 %v613_v51  ;;  %1353 = vmatmul.mubr.f32.gmra.mrb[6].mxu1 %v629_v53  ;;  %v643_v53 = vld [vmem:[#allocation2 + $0x28] sm:$0xff] }
  0x7d   : > { %1331 = vmatprep.mubr.f32.mxu0 %v614_v54  ;;  %1355 = vmatprep.mubr.f32.mxu1 %v630_v58  ;;  %v659_v54 = vld [vmem:[#allocation2 + $0xa8] sm:$0xff] }
  0x80   : > { %1332 = vmatmul.mubr.f32.gmra.mrb[8].mxu0 %v615_v1  ;;  %1356 = vmatmul.mubr.f32.gmra.mrb[8].mxu1 %v631_v2  ;;  %v645_v1 = vld [vmem:[#allocation2 + $0x38] sm:$0xff] }
  0x81   : > { %1334 = vmatprep.mubr.f32.mxu0 %v616_v4  ;;  %1358 = vmatprep.mubr.f32.mxu1 %v632_v5  ;;  %v661_v2 = vld [vmem:[#allocation2 + $0xb8] sm:$0xff]  ;;  %v660_v4 = vld [vmem:[#allocation2 + $0xb0] sm:$0xff] }
  0x84   : > { %1335 = vmatmul.mubr.f32.gmra.mrb[10].mxu0 %v617_v11  ;;  %1359 = vmatmul.mubr.f32.gmra.mrb[10].mxu1 %v633_v12 }
  0x85   : > { %1337 = vmatprep.mubr.f32.mxu0 %v618_v13  ;;  %1361 = vmatprep.mubr.f32.mxu1 %v634_v17  ;;  %v647_v13 = vld [vmem:[#allocation2 + $0x48] sm:$0xff] }
  0x88   : > { %1338 = vmatmul.mubr.f32.gmra.mrb[12].mxu0 %v619_v22  ;;  %1362 = vmatmul.mubr.f32.gmra.mrb[12].mxu1 %v635_v23 }
  0x89   : > { %1340 = vmatprep.mubr.f32.mxu0 %v620_v25  ;;  %1364 = vmatprep.mubr.f32.mxu1 %v636_v26  ;;  %v649_v25 = vld [vmem:[#allocation2 + $0x58] sm:$0xff] }
  0x8a   : > { %v665_v26 = vld [vmem:[#allocation2 + $0xd8] sm:$0xff] }
  0x8c   : > { %1341 = vmatmul.mubr.f32.gmra.mrb[14].mxu0 %v621_v27  ;;  %1365 = vmatmul.mubr.f32.gmra.mrb[14].mxu1 %v637_v28  ;;  %v648_v27 = vld [vmem:[#allocation2 + $0x50] sm:$0xff] }
  0x8d   : > { %v664_v28 = vld [vmem:[#allocation2 + $0xd0] sm:$0xff] }
 0x143   : > { %v1321_v32 = vpop.f32.mrb[0].mxu0  ;;  %v1345_v33 = vpop.f32.mrb[0].mxu1 }
 0x144   : > { %v912_v34 = vadd.f32 %v1321_v32, %v639_v29  ;;  %v928_v35 = vadd.f32 %v1345_v33, %v655_v30  ;;  %v752_v36 = vpop.f32.mrb[1].mxu0  ;;  %v832_v37 = vpop.f32.mrb[1].mxu1 }
 0x145   : > { %v911_v38 = vadd.f32 %v752_v36, %v638_v31  ;;  %v927_v39 = vadd.f32 %v832_v37, %v654_v44  ;;  %v651_v36 = vld [vmem:[#allocation2 + $0x68] sm:$0xff] }
 0x146   : > { %944 = vst [vmem:[#allocation2 + $0x8] sm:$0xff] %v912_v34  ;;  %960 = vst [vmem:[#allocation2 + $0x88] sm:$0xff] %v928_v35  ;;  %v667_v37 = vld [vmem:[#allocation2 + $0xe8] sm:$0xff] }
 0x147   : > { %943 = vst [vmem:[#allocation2] sm:$0xff] %v911_v38  ;;  %959 = vst [vmem:[#allocation2 + $0x80] sm:$0xff] %v927_v39  ;;  %v1324_v43 = vpop.f32.mrb[2].mxu0  ;;  %v1348_v45 = vpop.f32.mrb[2].mxu1  ;;  %v650_v38 = vld [vmem:[#allocation2 + $0x60] sm:$0xff] }
 0x148   : > { %v914_v46 = vadd.f32 %v1324_v43, %v641_v40  ;;  %v930_v48 = vadd.f32 %v1348_v45, %v657_v41  ;;  %v762_v49 = vpop.f32.mrb[3].mxu0  ;;  %v842_v50 = vpop.f32.mrb[3].mxu1  ;;  %v666_v39 = vld [vmem:[#allocation2 + $0xe0] sm:$0xff] }
 0x149   : > { %v913_v51 = vadd.f32 %v762_v49, %v640_v47  ;;  %v929_v52 = vadd.f32 %v842_v50, %v656_v42  ;;  %v653_v49 = vld [vmem:[#allocation2 + $0x78] sm:$0xff] }
 0x14a   : > { %946 = vst [vmem:[#allocation2 + $0x18] sm:$0xff] %v914_v46  ;;  %962 = vst [vmem:[#allocation2 + $0x98] sm:$0xff] %v930_v48  ;;  %v669_v50 = vld [vmem:[#allocation2 + $0xf8] sm:$0xff] }
 0x14b   : > { %945 = vst [vmem:[#allocation2 + $0x10] sm:$0xff] %v913_v51  ;;  %961 = vst [vmem:[#allocation2 + $0x90] sm:$0xff] %v929_v52  ;;  %v1327_v57 = vpop.f32.mrb[4].mxu0  ;;  %v1351_v58 = vpop.f32.mrb[4].mxu1  ;;  %v652_v51 = vld [vmem:[#allocation2 + $0x70] sm:$0xff] }
 0x14c   : > { %v916_v59 = vadd.f32 %v1327_v57, %v643_v53  ;;  %v932_v60 = vadd.f32 %v1351_v58, %v659_v54  ;;  %v772_v61 = vpop.f32.mrb[5].mxu0  ;;  %v852_v62 = vpop.f32.mrb[5].mxu1  ;;  %v668_v52 = vld [vmem:[#allocation2 + $0xf0] sm:$0xff] }
 0x14d   : > { %v915_v63 = vadd.f32 %v772_v61, %v642_v55  ;;  %v931_v0 = vadd.f32 %v852_v62, %v658_v56  ;;  %v1847_v62 = vld [vmem:[%s1938_s4] ss:$0 sm:$0xff] (!%p1234_p0) }
 0x14e   : > { %948 = vst [vmem:[#allocation2 + $0x28] sm:$0xff] %v916_v59  ;;  %964 = vst [vmem:[#allocation2 + $0xa8] sm:$0xff] %v932_v60  ;;  %v979_v61 = vld [vmem:[#allocation2] sm:$0xff] (!%p1234_p0) }
 0x14f   : > { %947 = vst [vmem:[#allocation2 + $0x20] sm:$0xff] %v915_v63  ;;  %963 = vst [vmem:[#allocation2 + $0xa0] sm:$0xff] %v931_v0  ;;  %v1330_v5 = vpop.f32.mrb[6].mxu0  ;;  %v1354_v6 = vpop.f32.mrb[6].mxu1  ;;  %v980_v63 = vld [vmem:[#allocation2 + $0x8] sm:$0xff] (!%p1234_p0)  ;;  %v1018_v0 = vadd.f32 (!%p1234_p0), %v1847_v62, %v979_v61 }
 0x150   : > { %v918_v7 = vadd.f32 %v1330_v5, %v645_v1  ;;  %v934_v8 = vadd.f32 %v1354_v6, %v661_v2  ;;  %v782_v9 = vpop.f32.mrb[7].mxu0  ;;  %v862_v10 = vpop.f32.mrb[7].mxu1  ;;  %v1019_v1 = vadd.f32 (!%p1234_p0), %v1847_v62, %v980_v63 }
 0x151   : > { %v917_v11 = vadd.f32 %v782_v9, %v644_v3  ;;  %v933_v12 = vadd.f32 %v862_v10, %v660_v4  ;;  %v982_v3 = vld [vmem:[#allocation2 + $0x18] sm:$0xff] (!%p1234_p0)  ;;  %1050 = vst [vmem:[%s1712_s26] sm:$0xff] (!%p1234_p0), %v1018_v0 }
 0x152   : > { %950 = vst [vmem:[#allocation2 + $0x38] sm:$0xff] %v918_v7  ;;  %966 = vst [vmem:[#allocation2 + $0xb8] sm:$0xff] %v934_v8  ;;  %v981_v2 = vld [vmem:[#allocation2 + $0x10] sm:$0xff] (!%p1234_p0)  ;;  %v1021_v6 = vadd.f32 (!%p1234_p0), %v1847_v62, %v982_v3 }
 0x153   : > { %949 = vst [vmem:[#allocation2 + $0x30] sm:$0xff] %v917_v11  ;;  %965 = vst [vmem:[#allocation2 + $0xb0] sm:$0xff] %v933_v12  ;;  %v1333_v17 = vpop.f32.mrb[8].mxu0  ;;  %v1357_v18 = vpop.f32.mrb[8].mxu1  ;;  %v1020_v5 = vadd.f32 (!%p1234_p0), %v1847_v62, %v981_v2 }
 0x154   : > { %v920_v19 = vadd.f32 %v1333_v17, %v647_v13  ;;  %v936_v20 = vadd.f32 %v1357_v18, %v663_v14  ;;  %v792_v21 = vpop.f32.mrb[9].mxu0  ;;  %v872_v22 = vpop.f32.mrb[9].mxu1  ;;  %1051 = vst [vmem:[%s1712_s26 + $0x8] sm:$0xff] (!%p1234_p0), %v1019_v1  ;;  %1053 = vst [vmem:[%s1712_s26 + $0x18] sm:$0xff] (!%p1234_p0), %v1021_v6 }
 0x155   : > { %v919_v23 = vadd.f32 %v792_v21, %v646_v15  ;;  %v935_v24 = vadd.f32 %v872_v22, %v662_v16  ;;  %v984_v8 = vld [vmem:[#allocation2 + $0x28] sm:$0xff] (!%p1234_p0)  ;;  %1052 = vst [vmem:[%s1712_s26 + $0x10] sm:$0xff] (!%p1234_p0), %v1020_v5 }
 0x156   : > { %952 = vst [vmem:[#allocation2 + $0x48] sm:$0xff] %v920_v19  ;;  %968 = vst [vmem:[#allocation2 + $0xc8] sm:$0xff] %v936_v20  ;;  %v983_v4 = vld [vmem:[#allocation2 + $0x20] sm:$0xff] (!%p1234_p0)  ;;  %v1023_v11 = vadd.f32 (!%p1234_p0), %v1847_v62, %v984_v8 }
 0x157   : > { %951 = vst [vmem:[#allocation2 + $0x40] sm:$0xff] %v919_v23  ;;  %967 = vst [vmem:[#allocation2 + $0xc0] sm:$0xff] %v935_v24  ;;  %v1336_v29 = vpop.f32.mrb[10].mxu0  ;;  %v1360_v30 = vpop.f32.mrb[10].mxu1  ;;  %v1022_v7 = vadd.f32 (!%p1234_p0), %v1847_v62, %v983_v4 }
 0x158   : > { %v922_v31 = vadd.f32 %v1336_v29, %v649_v25  ;;  %v938_v44 = vadd.f32 %v1360_v30, %v665_v26  ;;  %v802_v32 = vpop.f32.mrb[11].mxu0  ;;  %v882_v33 = vpop.f32.mrb[11].mxu1  ;;  %1055 = vst [vmem:[%s1712_s26 + $0x28] sm:$0xff] (!%p1234_p0), %v1023_v11 }
 0x159   : > { %v921_v34 = vadd.f32 %v802_v32, %v648_v27  ;;  %v937_v35 = vadd.f32 %v882_v33, %v664_v28  ;;  %v986_v10 = vld [vmem:[#allocation2 + $0x38] sm:$0xff] (!%p1234_p0)  ;;  %1054 = vst [vmem:[%s1712_s26 + $0x20] sm:$0xff] (!%p1234_p0), %v1022_v7  ;;  %v995_v28 = vld [vmem:[#allocation2 + $0x80] sm:$0xff] (!%p1234_p0)  ;;  %v997_v32 = vld [vmem:[#allocation2 + $0x90] sm:$0xff] (!%p1234_p0) }
 0x15a   : > { %954 = vst [vmem:[#allocation2 + $0x58] sm:$0xff] %v922_v31  ;;  %970 = vst [vmem:[#allocation2 + $0xd8] sm:$0xff] %v938_v44  ;;  %v985_v9 = vld [vmem:[#allocation2 + $0x30] sm:$0xff] (!%p1234_p0)  ;;  %v1025_v13 = vadd.f32 (!%p1234_p0), %v1847_v62, %v986_v10  ;;  %v1034_v31 = vadd.f32 (!%p1234_p0), %v1847_v62, %v995_v28  ;;  %v996_v44 = vld [vmem:[#allocation2 + $0x88] sm:$0xff] (!%p1234_p0) }
 0x15b   : > { %953 = vst [vmem:[#allocation2 + $0x50] sm:$0xff] %v921_v34  ;;  %969 = vst [vmem:[#allocation2 + $0xd0] sm:$0xff] %v937_v35  ;;  %v1339_v40 = vpop.f32.mrb[12].mxu0  ;;  %v1363_v41 = vpop.f32.mrb[12].mxu1  ;;  %v1024_v12 = vadd.f32 (!%p1234_p0), %v1847_v62, %v985_v9  ;;  %v998_v33 = vld [vmem:[#allocation2 + $0x98] sm:$0xff] (!%p1234_p0)  ;;  %v1035_v34 = vadd.f32 (!%p1234_p0), %v1847_v62, %v996_v44  ;;  %v1036_v35 = vadd.f32 (!%p1234_p0), %v1847_v62, %v997_v32 }
 0x15c   : > { %v924_v47 = vadd.f32 %v1339_v40, %v651_v36  ;;  %v940_v42 = vadd.f32 %v1363_v41, %v667_v37  ;;  %v812_v43 = vpop.f32.mrb[13].mxu0  ;;  %v892_v45 = vpop.f32.mrb[13].mxu1  ;;  %1057 = vst [vmem:[%s1712_s26 + $0x38] sm:$0xff] (!%p1234_p0), %v1025_v13  ;;  %v1037_v36 = vadd.f32 (!%p1234_p0), %v1847_v62, %v998_v33  ;;  %v999_v37 = vld [vmem:[#allocation2 + $0xa0] sm:$0xff] (!%p1234_p0)  ;;  %1066 = vst [vmem:[%s1712_s26 + $0x80] sm:$0xff] (!%p1234_p0), %v1034_v31 }
 0x15d   : > { %v923_v46 = vadd.f32 %v812_v43, %v650_v38  ;;  %v939_v48 = vadd.f32 %v892_v45, %v666_v39  ;;  %978 = sbr.rel (%p1234_p0) target bundleno = 367 (0x16f), region = 86  ;;  %v988_v15 = vld [vmem:[#allocation2 + $0x48] sm:$0xff] (!%p1234_p0)  ;;  %1056 = vst [vmem:[%s1712_s26 + $0x30] sm:$0xff] (!%p1234_p0), %v1024_v12  ;;  %v1001_v39 = vld [vmem:[#allocation2 + $0xb0] sm:$0xff] (!%p1234_p0)  ;;  %v1038_v40 = vadd.f32 (!%p1234_p0), %v1847_v62, %v999_v37  ;;  %1067 = vst [vmem:[%s1712_s26 + $0x88] sm:$0xff] (!%p1234_p0), %v1035_v34 }
 0x15e   : > { %956 = vst [vmem:[#allocation2 + $0x68] sm:$0xff] %v924_v47  ;;  %972 = vst [vmem:[#allocation2 + $0xe8] sm:$0xff] %v940_v42  ;;  %v987_v14 = vld [vmem:[#allocation2 + $0x40] sm:$0xff] (!%p1234_p0)  ;;  %v1027_v18 = vadd.f32 (!%p1234_p0), %v1847_v62, %v988_v15  ;;  %v1000_v38 = vld [vmem:[#allocation2 + $0xa8] sm:$0xff] (!%p1234_p0)  ;;  %v1040_v47 = vadd.f32 (!%p1234_p0), %v1847_v62, %v1001_v39 }
 0x15f   : > { %955 = vst [vmem:[#allocation2 + $0x60] sm:$0xff] %v923_v46  ;;  %971 = vst [vmem:[#allocation2 + $0xe0] sm:$0xff] %v939_v48  ;;  %v1342_v53 = vpop.f32.mrb[14].mxu0  ;;  %v1366_v54 = vpop.f32.mrb[14].mxu1  ;;  %v1026_v17 = vadd.f32 (!%p1234_p0), %v1847_v62, %v987_v14  ;;  %v1039_v41 = vadd.f32 (!%p1234_p0), %v1847_v62, %v1000_v38  ;;  %v1002_v42 = vld [vmem:[#allocation2 + $0xb8] sm:$0xff] (!%p1234_p0)  ;;  %v1003_v43 = vld [vmem:[#allocation2 + $0xc0] sm:$0xff] (!%p1234_p0) }
 0x160   : > { %v926_v55 = vadd.f32 %v1342_v53, %v653_v49  ;;  %v942_v56 = vadd.f32 %v1366_v54, %v669_v50  ;;  %v822_v57 = vpop.f32.mrb[15].mxu0  ;;  %v902_v58 = vpop.f32.mrb[15].mxu1  ;;  %1059 = vst [vmem:[%s1712_s26 + $0x48] sm:$0xff] (!%p1234_p0), %v1027_v18  ;;  %v1004_v45 = vld [vmem:[#allocation2 + $0xc8] sm:$0xff] (!%p1234_p0)  ;;  %1068 = vst [vmem:[%s1712_s26 + $0x90] sm:$0xff] (!%p1234_p0), %v1036_v35  ;;  %v1041_v46 = vadd.f32 (!%p1234_p0), %v1847_v62, %v1002_v42 }
 0x161   : > { %v925_v59 = vadd.f32 %v822_v57, %v652_v51  ;;  %v941_v60 = vadd.f32 %v902_v58, %v668_v52  ;;  %v990_v20 = vld [vmem:[#allocation2 + $0x58] sm:$0xff] (!%p1234_p0)  ;;  %1058 = vst [vmem:[%s1712_s26 + $0x40] sm:$0xff] (!%p1234_p0), %v1026_v17  ;;  %1069 = vst [vmem:[%s1712_s26 + $0x98] sm:$0xff] (!%p1234_p0), %v1037_v36  ;;  %v1042_v48 = vadd.f32 (!%p1234_p0), %v1847_v62, %v1003_v43 }
 0x162   : > { %958 = vst [vmem:[#allocation2 + $0x78] sm:$0xff] %v926_v55  ;;  %974 = vst [vmem:[#allocation2 + $0xf8] sm:$0xff] %v942_v56  ;;  %v989_v16 = vld [vmem:[#allocation2 + $0x50] sm:$0xff] (!%p1234_p0)  ;;  %v1029_v23 = vadd.f32 (!%p1234_p0), %v1847_v62, %v990_v20  ;;  %v1043_v49 = vadd.f32 (!%p1234_p0), %v1847_v62, %v1004_v45  ;;  %v1006_v51 = vld [vmem:[#allocation2 + $0xd8] sm:$0xff] (!%p1234_p0) }
 0x163   : > { %957 = vst [vmem:[#allocation2 + $0x70] sm:$0xff] %v925_v59  ;;  %973 = vst [vmem:[#allocation2 + $0xf0] sm:$0xff] %v941_v60  ;;  %v1028_v19 = vadd.f32 (!%p1234_p0), %v1847_v62, %v989_v16  ;;  %v1005_v50 = vld [vmem:[#allocation2 + $0xd0] sm:$0xff] (!%p1234_p0)  ;;  %v1045_v54 = vadd.f32 (!%p1234_p0), %v1847_v62, %v1006_v51 }
 0x164   : > { %1061 = vst [vmem:[%s1712_s26 + $0x58] sm:$0xff] %v1029_v23  ;;  %1070 = vst [vmem:[%s1712_s26 + $0xa0] sm:$0xff] %v1038_v40  ;;  %v1044_v53 = vadd.f32 %v1847_v62, %v1005_v50 }
 0x165   : > { %v992_v22 = vld [vmem:[#allocation2 + $0x68] sm:$0xff]  ;;  %1060 = vst [vmem:[%s1712_s26 + $0x50] sm:$0xff] %v1028_v19  ;;  %1071 = vst [vmem:[%s1712_s26 + $0xa8] sm:$0xff] %v1039_v41 }
 0x166   : > { %v991_v21 = vld [vmem:[#allocation2 + $0x60] sm:$0xff]  ;;  %v1031_v25 = vadd.f32 %v1847_v62, %v992_v22  ;;  %1072 = vst [vmem:[%s1712_s26 + $0xb0] sm:$0xff] %v1040_v47  ;;  %v1008_v56 = vld [vmem:[#allocation2 + $0xe8] sm:$0xff]  ;;  %1073 = vst [vmem:[%s1712_s26 + $0xb8] sm:$0xff] %v1041_v46 }
 0x167   : > { %v1030_v24 = vadd.f32 %v1847_v62, %v991_v21  ;;  %v1007_v52 = vld [vmem:[#allocation2 + $0xe0] sm:$0xff]  ;;  %1074 = vst [vmem:[%s1712_s26 + $0xc0] sm:$0xff] %v1042_v48  ;;  %1075 = vst [vmem:[%s1712_s26 + $0xc8] sm:$0xff] %v1043_v49  ;;  %v1047_v59 = vadd.f32 %v1847_v62, %v1008_v56 }
 0x168   : > { %1063 = vst [vmem:[%s1712_s26 + $0x68] sm:$0xff] %v1031_v25  ;;  %v1046_v55 = vadd.f32 %v1847_v62, %v1007_v52  ;;  %1076 = vst [vmem:[%s1712_s26 + $0xd0] sm:$0xff] %v1044_v53 }
 0x169   : > { %v994_v27 = vld [vmem:[#allocation2 + $0x78] sm:$0xff]  ;;  %1062 = vst [vmem:[%s1712_s26 + $0x60] sm:$0xff] %v1030_v24  ;;  %1077 = vst [vmem:[%s1712_s26 + $0xd8] sm:$0xff] %v1045_v54 }
 0x16a   : > { %v993_v26 = vld [vmem:[#allocation2 + $0x70] sm:$0xff]  ;;  %v1033_v30 = vadd.f32 %v1847_v62, %v994_v27  ;;  %v1010_v58 = vld [vmem:[#allocation2 + $0xf8] sm:$0xff]  ;;  %1078 = vst [vmem:[%s1712_s26 + $0xe0] sm:$0xff] %v1046_v55  ;;  %1079 = vst [vmem:[%s1712_s26 + $0xe8] sm:$0xff] %v1047_v59 }
 0x16b   : > { %v1032_v29 = vadd.f32 %v1847_v62, %v993_v26  ;;  %v1009_v57 = vld [vmem:[#allocation2 + $0xf0] sm:$0xff]  ;;  %v1049_v61 = vadd.f32 %v1847_v62, %v1010_v58 }
 0x16c   : > { %1065 = vst [vmem:[%s1712_s26 + $0x78] sm:$0xff] %v1033_v30  ;;  %v1048_v60 = vadd.f32 %v1847_v62, %v1009_v57 }
 0x16d   : > { %1064 = vst [vmem:[%s1712_s26 + $0x70] sm:$0xff] %v1032_v29  ;;  %1081 = vst [vmem:[%s1712_s26 + $0xf8] sm:$0xff] %v1049_v61 }
 0x16e   : > { %1080 = vst [vmem:[%s1712_s26 + $0xf0] sm:$0xff] %v1048_v60 }
 0x16f PF: > { %s15_s24 = sadd.s32 1, %s1526_s24   ;;  %s1944_s7 = sld [smem:[#allocation4_spill]] }
 0x170   : > { %p12_p1 = scmp.ge.s32.totalorder %s15_s24, 6   ;;  %s1945_s18 = smov %s1506_s19 }
 0x171   : > { %s1946_s19 = smov %s1610_s6  ;;  %s1947_s20 = smov %s1518_s22 }
 0x172   : > { %s1948_s21 = smov %s1522_s23  ;;  %s1949_s22 = smov %s1952_s25 }
 0x173   :  { %14 = sbr.rel (!%p12_p1) target bundleno = 6 (0x6), region = 133 }
 0x175   : > { %s1950_s23 = smov %s1944_s7 }

// kernel: densenet_forward.12
= control target key start
LH: loop header
LB: loop body
LE: loop exit
PB: predicated region body
PF: predicated region fallthrough
CT: control target
= control target key end

     0   :  { %s888_s15 = smov 0   ;;  %s890_s16 = smov 0   ;;  %s1105_s0 = inlined_call_operand.vmem [shape: f32[512,128], index: 0, kind: input, shape index: {}]   ;;  %s1106_s1 = inlined_call_operand.vmem [shape: f32[1,128], index: 1, kind: input, shape index: {}]   ;;  %s1107_s2 = inlined_call_operand.vmem [shape: f32[1,128], index: 2, kind: input, shape index: {}]   ;;  %s1108_s3 = inlined_call_operand.vmem [shape: f32[512,1], index: 3, kind: input, shape index: {}]   ;;  %s1109_s4 = inlined_call_operand.vmem [shape: f32[512,128], index: 4, kind: output, shape index: {}]  }
   0x1   :  { %s892_s17 = smov 0  }
   0x2 LB: > { %s26_s18 = sadd.s32 1, %s856_s16  ;;  %p800_p0 = scmp.ge.s32.totalorder %s860_s17, 1  ;;  %s860_s17 = sphi %s892_s17, %s14_s17   ;;  %s856_s16 = sphi %s890_s16, %s1111_s16   ;;  %s852_s15 = sphi %s888_s15, %s1110_s15  }
   0x3   : > { %p28_p1 = scmp.ge.s32.totalorder %s26_s18, 2  ;;  %p209_p2 = scmp.lt.s32.totalorder %s860_s17, 3 }
   0x5   : > { %s1113_s18 = smov (%p28_p1, %s26_s18), 0  ;;  %p210_p3 = pnand %p800_p0, %p209_p2 }
   0x6   : > { %s801_s19 = sshll.u32 (!%p210_p3), %s852_s15, 5  ;;  %v862_v0 = vmov (!%p210_p3), 0   ;;  %v955_v33 = vld [vmem:[%s1106_s1] ss:$0 sm:$0xff] (!%p210_p3) }
   0x7   : > { %213 = sbr.rel (%p210_p3) target bundleno = 209 (0xd1), region = 36  ;;  %837 = vset.pattern.permute.xlu1 (!%p210_p3), %v862_v0  ;;  %836 = vset.pattern.permute.xlu0 (!%p210_p3), %v862_v0  ;;  %p253_p4 = scmp.lt.s32.totalorder (!%p210_p3), %s801_s19, 63  ;;  %v964_v38 = vld [vmem:[%s1107_s2] ss:$0 sm:$0xff] (!%p210_p3) }
   0xe   : > { %s1115_s19 = smov (!%p253_p4, %s801_s19), 63 }
   0xf   : > { %s906_s20 = sshll.u32 %s1115_s19, 3 }
  0x10   : > { %s912_s23 = scalar_lea.vmem %s1108_s3, %s906_s20  ;;  %s950_s26 = scalar_lea.vmem %s1105_s0, %s906_s20 }
  0x11   : > { %v426_v1 = vld [vmem:[%s912_s23 + $0x10] sm:$0xff]  ;;  %v424_v2 = vld [vmem:[%s912_s23] sm:$0xff]  ;;  %v427_v3 = vld [vmem:[%s912_s23 + $0x18] sm:$0xff]  ;;  %s984_s7 = scalar_lea.vmem %s1109_s4, %s906_s20 }
  0x12   : > { %468 = vperm.xlu1 %837, %v426_v1   ;;  %458 = vperm.xlu0 %836, %v424_v2   ;;  %v425_v4 = vld [vmem:[%s912_s23 + $0x8] sm:$0xff]  ;;  %v428_v6 = vld [vmem:[%s912_s23 + $0x20] sm:$0xff]  ;;  %v431_v7 = vld [vmem:[%s912_s23 + $0x38] sm:$0xff] }
  0x13   : > { %v429_v5 = vld [vmem:[%s912_s23 + $0x28] sm:$0xff]  ;;  %v430_v8 = vld [vmem:[%s912_s23 + $0x30] sm:$0xff]  ;;  %v432_v10 = vld [vmem:[%s912_s23 + $0x40] sm:$0xff] }
  0x14   : > { %v433_v9 = vld [vmem:[%s912_s23 + $0x48] sm:$0xff]  ;;  %v435_v11 = vld [vmem:[%s912_s23 + $0x58] sm:$0xff]  ;;  %v434_v12 = vld [vmem:[%s912_s23 + $0x50] sm:$0xff] }
  0x15   : > { %v437_v13 = vld [vmem:[%s912_s23 + $0x68] sm:$0xff]  ;;  %v436_v14 = vld [vmem:[%s912_s23 + $0x60] sm:$0xff]  ;;  %v439_v15 = vld [vmem:[%s912_s23 + $0x78] sm:$0xff] }
  0x16   : > { %473 = vperm.xlu1 %837, %v427_v3   ;;  %463 = vperm.xlu0 %836, %v425_v4   ;;  %v438_v16 = vld [vmem:[%s912_s23 + $0x70] sm:$0xff]  ;;  %v441_v17 = vld [vmem:[%s912_s23 + $0x88] sm:$0xff]  ;;  %v440_v18 = vld [vmem:[%s912_s23 + $0x80] sm:$0xff] }
  0x17   : > { %v443_v19 = vld [vmem:[%s912_s23 + $0x98] sm:$0xff]  ;;  %v442_v20 = vld [vmem:[%s912_s23 + $0x90] sm:$0xff]  ;;  %v445_v21 = vld [vmem:[%s912_s23 + $0xa8] sm:$0xff] }
  0x18   : > { %v444_v22 = vld [vmem:[%s912_s23 + $0xa0] sm:$0xff]  ;;  %v447_v23 = vld [vmem:[%s912_s23 + $0xb8] sm:$0xff]  ;;  %v446_v24 = vld [vmem:[%s912_s23 + $0xb0] sm:$0xff] }
  0x19   : > { %v449_v25 = vld [vmem:[%s912_s23 + $0xc8] sm:$0xff]  ;;  %v448_v26 = vld [vmem:[%s912_s23 + $0xc0] sm:$0xff]  ;;  %v451_v27 = vld [vmem:[%s912_s23 + $0xd8] sm:$0xff] }
  0x1a   : > { %483 = vperm.xlu1 %837, %v429_v5   ;;  %478 = vperm.xlu0 %836, %v428_v6   ;;  %v450_v28 = vld [vmem:[%s912_s23 + $0xd0] sm:$0xff]  ;;  %v453_v29 = vld [vmem:[%s912_s23 + $0xe8] sm:$0xff]  ;;  %v452_v30 = vld [vmem:[%s912_s23 + $0xe0] sm:$0xff] }
  0x1b   : > { %v455_v31 = vld [vmem:[%s912_s23 + $0xf8] sm:$0xff]  ;;  %v454_v32 = vld [vmem:[%s912_s23 + $0xf0] sm:$0xff]  ;;  %v282_v35 = vld [vmem:[%s950_s26] sm:$0xff] }
  0x1c   : > { %v284_v34 = vld [vmem:[%s950_s26 + $0x10] sm:$0xff]  ;;  %v321_v37 = vmul.f32 %v955_v33, %v282_v35  ;;  %v285_v39 = vld [vmem:[%s950_s26 + $0x18] sm:$0xff]  ;;  %v283_v40 = vld [vmem:[%s950_s26 + $0x8] sm:$0xff] }
  0x1d   : > { %v323_v36 = vmul.f32 %v955_v33, %v284_v34  ;;  %v324_v43 = vmul.f32 %v955_v33, %v285_v39  ;;  %v322_v44 = vmul.f32 %v955_v33, %v283_v40  ;;  %v287_v45 = vld [vmem:[%s950_s26 + $0x28] sm:$0xff]  ;;  %v286_v46 = vld [vmem:[%s950_s26 + $0x20] sm:$0xff]  ;;  %v289_v53 = vld [vmem:[%s950_s26 + $0x38] sm:$0xff] }
  0x1e   : > { %493 = vperm.xlu1 %837, %v431_v7   ;;  %488 = vperm.xlu0 %836, %v430_v8   ;;  %v360_v42 = vadd.f32 %v964_v38, %v321_v37  ;;  %v326_v47 = vmul.f32 %v955_v33, %v287_v45  ;;  %v325_v48 = vmul.f32 %v955_v33, %v286_v46  ;;  %v288_v54 = vld [vmem:[%s950_s26 + $0x30] sm:$0xff]  ;;  %v291_v1 = vld [vmem:[%s950_s26 + $0x48] sm:$0xff]  ;;  %v290_v2 = vld [vmem:[%s950_s26 + $0x40] sm:$0xff] }
  0x1f   : > { %v362_v41 = vadd.f32 %v964_v38, %v323_v36  ;;  %v363_v51 = vadd.f32 %v964_v38, %v324_v43  ;;  %v361_v52 = vadd.f32 %v964_v38, %v322_v44  ;;  %v328_v59 = vmul.f32 %v955_v33, %v289_v53  ;;  %v297_v39 = vld [vmem:[%s950_s26 + $0x78] sm:$0xff]  ;;  %v296_v40 = vld [vmem:[%s950_s26 + $0x70] sm:$0xff] }
  0x20   : > { %v392_v50 = vmax.f32 %v360_v42, 0.0  ;;  %v365_v57 = vadd.f32 %v964_v38, %v326_v47  ;;  %v364_v58 = vadd.f32 %v964_v38, %v325_v48  ;;  %v327_v60 = vmul.f32 %v955_v33, %v288_v54 }
  0x21   : > { %v394_v49 = vmax.f32 %v362_v41, 0.0  ;;  %v395_v63 = vmax.f32 %v363_v51, 0.0  ;;  %v393_v0 = vmax.f32 %v361_v52, 0.0  ;;  %v367_v7 = vadd.f32 %v964_v38, %v328_v59  ;;  %v299_v51 = vld [vmem:[%s950_s26 + $0x88] sm:$0xff]  ;;  %v298_v52 = vld [vmem:[%s950_s26 + $0x80] sm:$0xff] }
  0x22   : > { %503 = vperm.xlu1 %837, %v433_v9   ;;  %498 = vperm.xlu0 %836, %v432_v10   ;;  %v397_v5 = vmax.f32 %v365_v57, 0.0  ;;  %v396_v6 = vmax.f32 %v364_v58, 0.0  ;;  %v366_v8 = vadd.f32 %v964_v38, %v327_v60  ;;  %v336_v45 = vmul.f32 %v955_v33, %v297_v39 }
  0x23   : > { %v335_v46 = vmul.f32 %v955_v33, %v296_v40  ;;  %v338_v57 = vmul.f32 %v955_v33, %v299_v51  ;;  %v337_v58 = vmul.f32 %v955_v33, %v298_v52 }
  0x26   : > { %513 = vperm.xlu1 %837, %v435_v11   ;;  %508 = vperm.xlu0 %836, %v434_v12   ;;  %v330_v11 = vmul.f32 %v955_v33, %v291_v1  ;;  %v329_v12 = vmul.f32 %v955_v33, %v290_v2 }
  0x2a   : > { %523 = vperm.xlu1 %837, %v437_v13   ;;  %518 = vperm.xlu0 %836, %v436_v14   ;;  %v293_v13 = vld [vmem:[%s950_s26 + $0x58] sm:$0xff]  ;;  %v292_v14 = vld [vmem:[%s950_s26 + $0x50] sm:$0xff] }
  0x2e   : > { %533 = vperm.xlu1 %837, %v439_v15   ;;  %528 = vperm.xlu0 %836, %v438_v16  }
  0x32   : > { %543 = vperm.xlu1 %837, %v441_v17   ;;  %538 = vperm.xlu0 %836, %v440_v18   ;;  %v399_v17 = vmax.f32 %v367_v7, 0.0  ;;  %v398_v18 = vmax.f32 %v366_v8, 0.0 }
  0x36   : > { %553 = vperm.xlu1 %837, %v443_v19   ;;  %548 = vperm.xlu0 %836, %v442_v20   ;;  %v332_v19 = vmul.f32 %v955_v33, %v293_v13  ;;  %v331_v20 = vmul.f32 %v955_v33, %v292_v14 }
  0x3a   : > { %563 = vperm.xlu1 %837, %v445_v21   ;;  %558 = vperm.xlu0 %836, %v444_v22  }
  0x3e   : > { %573 = vperm.xlu1 %837, %v447_v23   ;;  %568 = vperm.xlu0 %836, %v446_v24   ;;  %v369_v23 = vadd.f32 %v964_v38, %v330_v11  ;;  %v368_v24 = vadd.f32 %v964_v38, %v329_v12  ;;  %v303_v11 = vld [vmem:[%s950_s26 + $0xa8] sm:$0xff]  ;;  %v302_v12 = vld [vmem:[%s950_s26 + $0xa0] sm:$0xff] }
  0x40   : > { %v401_v36 = vmax.f32 %v369_v23, 0.0  ;;  %v400_v37 = vmax.f32 %v368_v24, 0.0  ;;  %v305_v23 = vld [vmem:[%s950_s26 + $0xb8] sm:$0xff]  ;;  %v304_v24 = vld [vmem:[%s950_s26 + $0xb0] sm:$0xff] }
  0x42   : > { %583 = vperm.xlu1 %837, %v449_v25   ;;  %578 = vperm.xlu0 %836, %v448_v26   ;;  %v295_v25 = vld [vmem:[%s950_s26 + $0x68] sm:$0xff]  ;;  %v294_v26 = vld [vmem:[%s950_s26 + $0x60] sm:$0xff] }
  0x46   : > { %593 = vperm.xlu1 %837, %v451_v27   ;;  %588 = vperm.xlu0 %836, %v450_v28  }
  0x4a   : > { %603 = vperm.xlu1 %837, %v453_v29   ;;  %598 = vperm.xlu0 %836, %v452_v30   ;;  %v371_v29 = vadd.f32 %v964_v38, %v332_v19  ;;  %v370_v30 = vadd.f32 %v964_v38, %v331_v20 }
  0x4e   : > { %613 = vperm.xlu1 %837, %v455_v31   ;;  %608 = vperm.xlu0 %836, %v454_v32   ;;  %v334_v31 = vmul.f32 %v955_v33, %v295_v25  ;;  %v333_v32 = vmul.f32 %v955_v33, %v294_v26 }
  0x50   : > { %v373_v43 = vadd.f32 %v964_v38, %v334_v31  ;;  %v372_v44 = vadd.f32 %v964_v38, %v333_v32 }
  0x91   : > { %v469_v55 = vpop.permute.xlu1 %468  ;;  %v459_v56 = vpop.permute.xlu0 %458 }
  0x92   : > { %v618_v61 = vmul.f32 %v469_v55, %v394_v49  ;;  %v616_v62 = vmul.f32 %v459_v56, %v392_v50  ;;  %v403_v49 = vmax.f32 %v371_v29, 0.0  ;;  %v402_v50 = vmax.f32 %v370_v30, 0.0 }
  0x93   : > { %v375_v55 = vadd.f32 %v964_v38, %v336_v45  ;;  %v374_v56 = vadd.f32 %v964_v38, %v335_v46  ;;  %v344_v29 = vmul.f32 %v955_v33, %v305_v23  ;;  %v343_v30 = vmul.f32 %v955_v33, %v304_v24 }
  0x94   : > { %650 = vst [vmem:[%s984_s7 + $0x10] sm:$0xff] %v618_v61  ;;  %648 = vst [vmem:[%s984_s7] sm:$0xff] %v616_v62  ;;  %v405_v61 = vmax.f32 %v373_v43, 0.0  ;;  %v404_v62 = vmax.f32 %v372_v44, 0.0 }
  0x95   : > { %v474_v3 = vpop.permute.xlu1 %473  ;;  %v464_v4 = vpop.permute.xlu0 %463  ;;  %v383_v43 = vadd.f32 %v964_v38, %v344_v29  ;;  %v382_v44 = vadd.f32 %v964_v38, %v343_v30 }
  0x96   : > { %v619_v9 = vmul.f32 %v474_v3, %v395_v63  ;;  %v617_v10 = vmul.f32 %v464_v4, %v393_v0  ;;  %v301_v63 = vld [vmem:[%s950_s26 + $0x98] sm:$0xff]  ;;  %v300_v0 = vld [vmem:[%s950_s26 + $0x90] sm:$0xff]  ;;  %v407_v3 = vmax.f32 %v375_v55, 0.0  ;;  %v406_v4 = vmax.f32 %v374_v56, 0.0 }
  0x98   : > { %651 = vst [vmem:[%s984_s7 + $0x18] sm:$0xff] %v619_v9  ;;  %649 = vst [vmem:[%s984_s7 + $0x8] sm:$0xff] %v617_v10  ;;  %v340_v9 = vmul.f32 %v955_v33, %v301_v63  ;;  %v339_v10 = vmul.f32 %v955_v33, %v300_v0 }
  0x99   : > { %v484_v15 = vpop.permute.xlu1 %483  ;;  %v479_v16 = vpop.permute.xlu0 %478 }
  0x9a   : > { %v621_v21 = vmul.f32 %v484_v15, %v397_v5  ;;  %v620_v22 = vmul.f32 %v479_v16, %v396_v6  ;;  %v377_v5 = vadd.f32 %v964_v38, %v338_v57  ;;  %v376_v6 = vadd.f32 %v964_v38, %v337_v58 }
  0x9c   : > { %653 = vst [vmem:[%s984_s7 + $0x28] sm:$0xff] %v621_v21  ;;  %652 = vst [vmem:[%s984_s7 + $0x20] sm:$0xff] %v620_v22  ;;  %v409_v15 = vmax.f32 %v377_v5, 0.0  ;;  %v408_v16 = vmax.f32 %v376_v6, 0.0  ;;  %v379_v21 = vadd.f32 %v964_v38, %v340_v9  ;;  %v378_v22 = vadd.f32 %v964_v38, %v339_v10  ;;  %v313_v9 = vld [vmem:[%s950_s26 + $0xf8] sm:$0xff]  ;;  %v312_v10 = vld [vmem:[%s950_s26 + $0xf0] sm:$0xff] }
  0x9d   : > { %v494_v27 = vpop.permute.xlu1 %493  ;;  %v489_v28 = vpop.permute.xlu0 %488 }
  0x9e   : > { %v623_v34 = vmul.f32 %v494_v27, %v399_v17  ;;  %v622_v35 = vmul.f32 %v489_v28, %v398_v18  ;;  %v342_v17 = vmul.f32 %v955_v33, %v303_v11  ;;  %v341_v18 = vmul.f32 %v955_v33, %v302_v12 }
  0xa0   : > { %655 = vst [vmem:[%s984_s7 + $0x38] sm:$0xff] %v623_v34  ;;  %654 = vst [vmem:[%s984_s7 + $0x30] sm:$0xff] %v622_v35  ;;  %v381_v27 = vadd.f32 %v964_v38, %v342_v17  ;;  %v380_v28 = vadd.f32 %v964_v38, %v341_v18  ;;  %v411_v34 = vmax.f32 %v379_v21, 0.0  ;;  %v410_v35 = vmax.f32 %v378_v22, 0.0 }
  0xa1   : > { %v504_v41 = vpop.permute.xlu1 %503  ;;  %v499_v42 = vpop.permute.xlu0 %498 }
  0xa2   : > { %v625_v47 = vmul.f32 %v504_v41, %v401_v36  ;;  %v624_v48 = vmul.f32 %v499_v42, %v400_v37  ;;  %v307_v36 = vld [vmem:[%s950_s26 + $0xc8] sm:$0xff]  ;;  %v306_v37 = vld [vmem:[%s950_s26 + $0xc0] sm:$0xff]  ;;  %v413_v41 = vmax.f32 %v381_v27, 0.0  ;;  %v412_v42 = vmax.f32 %v380_v28, 0.0 }
  0xa4   : > { %657 = vst [vmem:[%s984_s7 + $0x48] sm:$0xff] %v625_v47  ;;  %656 = vst [vmem:[%s984_s7 + $0x40] sm:$0xff] %v624_v48  ;;  %v346_v47 = vmul.f32 %v955_v33, %v307_v36  ;;  %v345_v48 = vmul.f32 %v955_v33, %v306_v37 }
  0xa5   : > { %v514_v53 = vpop.permute.xlu1 %513  ;;  %v509_v54 = vpop.permute.xlu0 %508 }
  0xa6   : > { %v627_v59 = vmul.f32 %v514_v53, %v403_v49  ;;  %v626_v60 = vmul.f32 %v509_v54, %v402_v50  ;;  %v309_v49 = vld [vmem:[%s950_s26 + $0xd8] sm:$0xff]  ;;  %v308_v50 = vld [vmem:[%s950_s26 + $0xd0] sm:$0xff]  ;;  %v415_v53 = vmax.f32 %v383_v43, 0.0  ;;  %v414_v54 = vmax.f32 %v382_v44, 0.0 }
  0xa7   : > { %v348_v55 = vmul.f32 %v955_v33, %v309_v49  ;;  %v347_v56 = vmul.f32 %v955_v33, %v308_v50 }
  0xa8   : > { %659 = vst [vmem:[%s984_s7 + $0x58] sm:$0xff] %v627_v59  ;;  %658 = vst [vmem:[%s984_s7 + $0x50] sm:$0xff] %v626_v60  ;;  %v385_v59 = vadd.f32 %v964_v38, %v346_v47  ;;  %v384_v60 = vadd.f32 %v964_v38, %v345_v48 }
  0xa9   : > { %v524_v1 = vpop.permute.xlu1 %523  ;;  %v519_v2 = vpop.permute.xlu0 %518 }
  0xaa   : > { %v629_v7 = vmul.f32 %v524_v1, %v405_v61  ;;  %v628_v8 = vmul.f32 %v519_v2, %v404_v62  ;;  %v311_v61 = vld [vmem:[%s950_s26 + $0xe8] sm:$0xff]  ;;  %v310_v62 = vld [vmem:[%s950_s26 + $0xe0] sm:$0xff]  ;;  %v387_v1 = vadd.f32 %v964_v38, %v348_v55  ;;  %v386_v2 = vadd.f32 %v964_v38, %v347_v56 }
  0xac   : > { %661 = vst [vmem:[%s984_s7 + $0x68] sm:$0xff] %v629_v7  ;;  %660 = vst [vmem:[%s984_s7 + $0x60] sm:$0xff] %v628_v8  ;;  %v417_v7 = vmax.f32 %v385_v59, 0.0  ;;  %v416_v8 = vmax.f32 %v384_v60, 0.0 }
  0xad   : > { %v534_v13 = vpop.permute.xlu1 %533  ;;  %v529_v14 = vpop.permute.xlu0 %528 }
  0xae   : > { %v631_v19 = vmul.f32 %v534_v13, %v407_v3  ;;  %v630_v20 = vmul.f32 %v529_v14, %v406_v4  ;;  %v350_v3 = vmul.f32 %v955_v33, %v311_v61  ;;  %v349_v4 = vmul.f32 %v955_v33, %v310_v62 }
  0xaf   : > { %v419_v13 = vmax.f32 %v387_v1, 0.0  ;;  %v418_v14 = vmax.f32 %v386_v2, 0.0 }
  0xb0   : > { %663 = vst [vmem:[%s984_s7 + $0x78] sm:$0xff] %v631_v19  ;;  %662 = vst [vmem:[%s984_s7 + $0x70] sm:$0xff] %v630_v20  ;;  %v352_v19 = vmul.f32 %v955_v33, %v313_v9  ;;  %v351_v20 = vmul.f32 %v955_v33, %v312_v10 }
  0xb1   : > { %v544_v25 = vpop.permute.xlu1 %543  ;;  %v539_v26 = vpop.permute.xlu0 %538 }
  0xb2   : > { %v633_v31 = vmul.f32 %v544_v25, %v409_v15  ;;  %v632_v32 = vmul.f32 %v539_v26, %v408_v16  ;;  %v389_v15 = vadd.f32 %v964_v38, %v350_v3  ;;  %v388_v16 = vadd.f32 %v964_v38, %v349_v4 }
  0xb3   : > { %v391_v27 = vadd.f32 %v964_v38, %v352_v19  ;;  %v390_v28 = vadd.f32 %v964_v38, %v351_v20 }
  0xb4   : > { %665 = vst [vmem:[%s984_s7 + $0x88] sm:$0xff] %v633_v31  ;;  %664 = vst [vmem:[%s984_s7 + $0x80] sm:$0xff] %v632_v32  ;;  %v421_v23 = vmax.f32 %v389_v15, 0.0  ;;  %v420_v24 = vmax.f32 %v388_v16, 0.0 }
  0xb5   : > { %v554_v39 = vpop.permute.xlu1 %553  ;;  %v549_v40 = vpop.permute.xlu0 %548  ;;  %v423_v32 = vmax.f32 %v391_v27, 0.0 }
  0xb6   : > { %v635_v45 = vmul.f32 %v554_v39, %v411_v34  ;;  %v634_v46 = vmul.f32 %v549_v40, %v410_v35  ;;  %v422_v34 = vmax.f32 %v390_v28, 0.0 }
  0xb8   : > { %667 = vst [vmem:[%s984_s7 + $0x98] sm:$0xff] %v635_v45  ;;  %666 = vst [vmem:[%s984_s7 + $0x90] sm:$0xff] %v634_v46 }
  0xb9   : > { %v564_v51 = vpop.permute.xlu1 %563  ;;  %v559_v52 = vpop.permute.xlu0 %558 }
  0xba   : > { %v637_v57 = vmul.f32 %v564_v51, %v413_v41  ;;  %v636_v58 = vmul.f32 %v559_v52, %v412_v42 }
  0xbc   : > { %669 = vst [vmem:[%s984_s7 + $0xa8] sm:$0xff] %v637_v57  ;;  %668 = vst [vmem:[%s984_s7 + $0xa0] sm:$0xff] %v636_v58 }
  0xbd   : > { %v574_v63 = vpop.permute.xlu1 %573  ;;  %v569_v0 = vpop.permute.xlu0 %568 }
  0xbe   : > { %v639_v5 = vmul.f32 %v574_v63, %v415_v53  ;;  %v638_v6 = vmul.f32 %v569_v0, %v414_v54 }
  0xc0   : > { %671 = vst [vmem:[%s984_s7 + $0xb8] sm:$0xff] %v639_v5  ;;  %670 = vst [vmem:[%s984_s7 + $0xb0] sm:$0xff] %v638_v6 }
  0xc1   : > { %v584_v11 = vpop.permute.xlu1 %583  ;;  %v579_v12 = vpop.permute.xlu0 %578 }
  0xc2   : > { %v641_v17 = vmul.f32 %v584_v11, %v417_v7  ;;  %v640_v18 = vmul.f32 %v579_v12, %v416_v8 }
  0xc4   : > { %673 = vst [vmem:[%s984_s7 + $0xc8] sm:$0xff] %v641_v17  ;;  %672 = vst [vmem:[%s984_s7 + $0xc0] sm:$0xff] %v640_v18 }
  0xc5   : > { %v594_v21 = vpop.permute.xlu1 %593  ;;  %v589_v22 = vpop.permute.xlu0 %588 }
  0xc6   : > { %v643_v25 = vmul.f32 %v594_v21, %v419_v13  ;;  %v642_v26 = vmul.f32 %v589_v22, %v418_v14 }
  0xc8   : > { %675 = vst [vmem:[%s984_s7 + $0xd8] sm:$0xff] %v643_v25  ;;  %674 = vst [vmem:[%s984_s7 + $0xd0] sm:$0xff] %v642_v26 }
  0xc9   : > { %v604_v29 = vpop.permute.xlu1 %603  ;;  %v599_v33 = vpop.permute.xlu0 %598 }
  0xca   : > { %v645_v30 = vmul.f32 %v604_v29, %v421_v23  ;;  %v644_v31 = vmul.f32 %v599_v33, %v420_v24 }
  0xcc   : > { %677 = vst [vmem:[%s984_s7 + $0xe8] sm:$0xff] %v645_v30  ;;  %676 = vst [vmem:[%s984_s7 + $0xe0] sm:$0xff] %v644_v31 }
  0xcd   : > { %v614_v35 = vpop.permute.xlu1 %613  ;;  %v609_v36 = vpop.permute.xlu0 %608 }
  0xce   : > { %v647_v37 = vmul.f32 %v614_v35, %v423_v32  ;;  %v646_v39 = vmul.f32 %v609_v36, %v422_v34 }
  0xd0   : > { %679 = vst [vmem:[%s984_s7 + $0xf8] sm:$0xff] %v647_v37  ;;  %678 = vst [vmem:[%s984_s7 + $0xf0] sm:$0xff] %v646_v39 }
  0xd1 PF: > { %s14_s17 = sadd.s32 1, %s860_s17   ;;  %s1110_s15 = smov %s856_s16 }
  0xd2   : > { %p11_p5 = scmp.ge.s32.totalorder %s14_s17, 4   ;;  %s1111_s16 = smov %s1113_s18 }
  0xd4   :  { %13 = sbr.rel (!%p11_p5) target bundleno = 2 (0x2), region = 75 }

// kernel: densenet_forward.13
= control target key start
LH: loop header
LB: loop body
LE: loop exit
PB: predicated region body
PF: predicated region fallthrough
CT: control target
= control target key end

     0   :  { %s1332_s12 = smov 0   ;;  %s1334_s13 = smov 0   ;;  %s1738_s0 = inlined_call_operand.vmem [shape: f32[512,128], index: 0, kind: input, shape index: {}, may-alias: {0,1}]   ;;  %s1739_s1 = inlined_call_operand.vmem [shape: f32[512,128], index: 1, kind: input, shape index: {}, may-alias: {0,1}]   ;;  %s1740_s2 = inlined_call_operand.vmem [shape: f32[1152,128], index: 2, kind: input, shape index: {}]   ;;  %s1741_s3 = inlined_call_operand.vmem [shape: f32[256,128], index: 3, kind: output, shape index: {}]  }
   0x1   :  { %s1336_s14 = smov 0   ;;  %s1338_s15 = smov 0  }
   0x2   :  { %s1340_s16 = smov 0  }
   0x3 LB: > { %s28_s17 = sadd.s32 1, %s1301_s14  ;;  %s31_s18 = sadd.s32 1, %s1305_s15  ;;  %s1309_s16 = sphi %s1340_s16, %s13_s16   ;;  %s1305_s15 = sphi %s1338_s15, %s1746_s15   ;;  %s1301_s14 = sphi %s1336_s14, %s1745_s14   ;;  %s1297_s13 = sphi %s1334_s13, %s1744_s13   ;;  %s1293_s12 = sphi %s1332_s12, %s1743_s12  }
   0x4   : > { %p29_p0 = scmp.ge.s32.totalorder %s28_s17, 3  ;;  %p1014_p1 = scmp.ge.s32.totalorder %s1309_s16, 1 }
   0x5   : > { %p205_p2 = scmp.lt.s32.totalorder %s1309_s16, 10 }
   0x6   : > { %s1748_s17 = smov (%p29_p0, %s28_s17), 0  ;;  %s1750_s18 = smov (!%p29_p0, %s31_s18), %s1305_s15 }
   0x7   : > { %p206_p3 = pnand %p1014_p1, %p205_p2  ;;  %p33_p4 = scmp.ge.s32.totalorder %s1750_s18, 3 }
   0x8   : > { %s262_s19 = smul.u32 (!%p206_p3), 3, %s1297_s13  ;;  %p284_p5 = scmp.eq.s32.totalorder (!%p206_p3), %s1297_s13, 0 }
   0x9   : > { %s1752_s18 = smov (%p33_p4, %s1750_s18), 0  ;;  %209 = sbr.rel (%p206_p3) target bundleno = 354 (0x162), region = 32 }
   0xa   : > { %p285_p6 = scmp.eq.s32.totalorder (!%p206_p3), %s1293_s12, 0  ;;  %s263_s20 = sadd.s32 (!%p206_p3), %s1293_s12, %s262_s19 }
   0xb   : > { %s1015_s21 = sshll.u32 (!%p206_p3), %s263_s20, 4 }
   0xc   : > { %p286_p7 = pnand (!%p206_p3), %p285_p6, %p284_p5  ;;  %p265_p8 = scmp.lt.s32.totalorder (!%p206_p3), %s1015_s21, 143 }
  0x10   : > { %s1754_s21 = smov (!%p265_p8, %s1015_s21), 143  ;;  %289 = sbr.rel (%p286_p7) target bundleno = 66 (0x42), region = 36 }
  0x11   : > { %s1016_s22 = sshll.u32 %s1754_s21, 3  ;;  %v322_v0 = vld [vmem:[%s1738_s0] sm:$0xff] (!%p286_p7)  ;;  %v323_v1 = vld [vmem:[%s1738_s0 + $0x8] sm:$0xff] (!%p286_p7)  ;;  %v324_v2 = vld [vmem:[%s1738_s0 + $0x10] sm:$0xff] (!%p286_p7)  ;;  %v1311_v3 = vmov (!%p286_p7), 0.0  }
  0x12   : > { %s1373_s25 = scalar_lea.vmem %s1740_s2, %s1016_s22  ;;  %290 = vst [vmem:[#allocation3] sm:$0xff] (!%p286_p7), %v1311_v3  ;;  %291 = vst [vmem:[#allocation3 + $0x8] sm:$0xff] (!%p286_p7), %v1311_v3  ;;  %v325_v4 = vld [vmem:[%s1738_s0 + $0x18] sm:$0xff] (!%p286_p7)  ;;  %v326_v5 = vld [vmem:[%s1738_s0 + $0x20] sm:$0xff] (!%p286_p7) }
  0x13   : > { %292 = vst [vmem:[#allocation3 + $0x10] sm:$0xff] (!%p286_p7), %v1311_v3  ;;  %293 = vst [vmem:[#allocation3 + $0x18] sm:$0xff] (!%p286_p7), %v1311_v3  ;;  %v327_v6 = vld [vmem:[%s1738_s0 + $0x28] sm:$0xff] (!%p286_p7)  ;;  %v328_v7 = vld [vmem:[%s1738_s0 + $0x30] sm:$0xff] (!%p286_p7) }
  0x14   : > { %294 = vst [vmem:[#allocation3 + $0x20] sm:$0xff] (!%p286_p7), %v1311_v3  ;;  %295 = vst [vmem:[#allocation3 + $0x28] sm:$0xff] (!%p286_p7), %v1311_v3  ;;  %v329_v8 = vld [vmem:[%s1738_s0 + $0x38] sm:$0xff] (!%p286_p7)  ;;  %v330_v9 = vld [vmem:[%s1738_s0 + $0x40] sm:$0xff] (!%p286_p7) }
  0x15   : > { %296 = vst [vmem:[#allocation3 + $0x30] sm:$0xff] (!%p286_p7), %v1311_v3  ;;  %297 = vst [vmem:[#allocation3 + $0x38] sm:$0xff] (!%p286_p7), %v1311_v3  ;;  %v331_v10 = vld [vmem:[%s1738_s0 + $0x48] sm:$0xff] (!%p286_p7)  ;;  %v332_v11 = vld [vmem:[%s1738_s0 + $0x50] sm:$0xff] (!%p286_p7) }
  0x16   : > { %298 = vst [vmem:[#allocation3 + $0x40] sm:$0xff] (!%p286_p7), %v1311_v3  ;;  %299 = vst [vmem:[#allocation3 + $0x48] sm:$0xff] (!%p286_p7), %v1311_v3  ;;  %v333_v12 = vld [vmem:[%s1738_s0 + $0x58] sm:$0xff] (!%p286_p7)  ;;  %v334_v13 = vld [vmem:[%s1738_s0 + $0x60] sm:$0xff] (!%p286_p7) }
  0x17   : > { %300 = vst [vmem:[#allocation3 + $0x50] sm:$0xff] %v1311_v3  ;;  %301 = vst [vmem:[#allocation3 + $0x58] sm:$0xff] %v1311_v3  ;;  %v335_v14 = vld [vmem:[%s1738_s0 + $0x68] sm:$0xff]  ;;  %v336_v15 = vld [vmem:[%s1738_s0 + $0x70] sm:$0xff] }
  0x18   : > { %302 = vst [vmem:[#allocation3 + $0x60] sm:$0xff] %v1311_v3  ;;  %303 = vst [vmem:[#allocation3 + $0x68] sm:$0xff] %v1311_v3  ;;  %v337_v16 = vld [vmem:[%s1738_s0 + $0x78] sm:$0xff]  ;;  %v338_v17 = vld [vmem:[%s1738_s0 + $0x80] sm:$0xff] }
  0x19   : > { %304 = vst [vmem:[#allocation3 + $0x70] sm:$0xff] %v1311_v3  ;;  %305 = vst [vmem:[#allocation3 + $0x78] sm:$0xff] %v1311_v3  ;;  %v339_v18 = vld [vmem:[%s1738_s0 + $0x88] sm:$0xff]  ;;  %v340_v19 = vld [vmem:[%s1738_s0 + $0x90] sm:$0xff] }
  0x1a   : > { %306 = vst [vmem:[#allocation3 + $0x80] sm:$0xff] %v1311_v3  ;;  %307 = vst [vmem:[#allocation3 + $0x88] sm:$0xff] %v1311_v3  ;;  %v341_v20 = vld [vmem:[%s1738_s0 + $0x98] sm:$0xff]  ;;  %v342_v21 = vld [vmem:[%s1738_s0 + $0xa0] sm:$0xff] }
  0x1b   : > { %308 = vst [vmem:[#allocation3 + $0x90] sm:$0xff] %v1311_v3  ;;  %309 = vst [vmem:[#allocation3 + $0x98] sm:$0xff] %v1311_v3  ;;  %v343_v22 = vld [vmem:[%s1738_s0 + $0xa8] sm:$0xff]  ;;  %v344_v23 = vld [vmem:[%s1738_s0 + $0xb0] sm:$0xff] }
  0x1c   : > { %310 = vst [vmem:[#allocation3 + $0xa0] sm:$0xff] %v1311_v3  ;;  %311 = vst [vmem:[#allocation3 + $0xa8] sm:$0xff] %v1311_v3  ;;  %v345_v24 = vld [vmem:[%s1738_s0 + $0xb8] sm:$0xff]  ;;  %v346_v25 = vld [vmem:[%s1738_s0 + $0xc0] sm:$0xff] }
  0x1d   : > { %312 = vst [vmem:[#allocation3 + $0xb0] sm:$0xff] %v1311_v3  ;;  %313 = vst [vmem:[#allocation3 + $0xb8] sm:$0xff] %v1311_v3  ;;  %v347_v26 = vld [vmem:[%s1738_s0 + $0xc8] sm:$0xff]  ;;  %v348_v27 = vld [vmem:[%s1738_s0 + $0xd0] sm:$0xff] }
  0x1e   : > { %314 = vst [vmem:[#allocation3 + $0xc0] sm:$0xff] %v1311_v3  ;;  %315 = vst [vmem:[#allocation3 + $0xc8] sm:$0xff] %v1311_v3  ;;  %v349_v28 = vld [vmem:[%s1738_s0 + $0xd8] sm:$0xff]  ;;  %v350_v29 = vld [vmem:[%s1738_s0 + $0xe0] sm:$0xff] }
  0x1f   : > { %316 = vst [vmem:[#allocation3 + $0xd0] sm:$0xff] %v1311_v3  ;;  %317 = vst [vmem:[#allocation3 + $0xd8] sm:$0xff] %v1311_v3  ;;  %v351_v30 = vld [vmem:[%s1738_s0 + $0xe8] sm:$0xff]  ;;  %v352_v31 = vld [vmem:[%s1738_s0 + $0xf0] sm:$0xff] }
  0x20   : > { %318 = vst [vmem:[#allocation3 + $0xe0] sm:$0xff] %v1311_v3  ;;  %319 = vst [vmem:[#allocation3 + $0xe8] sm:$0xff] %v1311_v3  ;;  %v353_v32 = vld [vmem:[%s1738_s0 + $0xf8] sm:$0xff]  ;;  %v1017_v33 = vld [vmem:[%s1739_s1 + $0x100] sm:$0xff] }
  0x21   : > { %320 = vst [vmem:[#allocation3 + $0xf0] sm:$0xff] %v1311_v3  ;;  %321 = vst [vmem:[#allocation3 + $0xf8] sm:$0xff] %v1311_v3  ;;  %v1018_v34 = vld [vmem:[%s1739_s1 + $0x108] sm:$0xff]  ;;  %v1019_v35 = vld [vmem:[%s1739_s1 + $0x110] sm:$0xff] }
  0x22   : > { %354 = vst [vmem:[#allocation2] sm:$0xff] %v322_v0  ;;  %355 = vst [vmem:[#allocation2 + $0x8] sm:$0xff] %v323_v1  ;;  %v1020_v36 = vld [vmem:[%s1739_s1 + $0x118] sm:$0xff]  ;;  %v1021_v37 = vld [vmem:[%s1739_s1 + $0x120] sm:$0xff] }
  0x23   : > { %356 = vst [vmem:[#allocation2 + $0x10] sm:$0xff] %v324_v2  ;;  %357 = vst [vmem:[#allocation2 + $0x18] sm:$0xff] %v325_v4  ;;  %v1022_v38 = vld [vmem:[%s1739_s1 + $0x128] sm:$0xff]  ;;  %v1023_v39 = vld [vmem:[%s1739_s1 + $0x130] sm:$0xff] }
  0x24   : > { %358 = vst [vmem:[#allocation2 + $0x20] sm:$0xff] %v326_v5  ;;  %359 = vst [vmem:[#allocation2 + $0x28] sm:$0xff] %v327_v6  ;;  %v1024_v40 = vld [vmem:[%s1739_s1 + $0x138] sm:$0xff]  ;;  %v1025_v41 = vld [vmem:[%s1739_s1 + $0x140] sm:$0xff] }
  0x25   : > { %360 = vst [vmem:[#allocation2 + $0x30] sm:$0xff] %v328_v7  ;;  %361 = vst [vmem:[#allocation2 + $0x38] sm:$0xff] %v329_v8  ;;  %v1026_v42 = vld [vmem:[%s1739_s1 + $0x148] sm:$0xff]  ;;  %v1027_v43 = vld [vmem:[%s1739_s1 + $0x150] sm:$0xff] }
  0x26   : > { %362 = vst [vmem:[#allocation2 + $0x40] sm:$0xff] %v330_v9  ;;  %363 = vst [vmem:[#allocation2 + $0x48] sm:$0xff] %v331_v10  ;;  %v1028_v44 = vld [vmem:[%s1739_s1 + $0x158] sm:$0xff]  ;;  %v1029_v45 = vld [vmem:[%s1739_s1 + $0x160] sm:$0xff] }
  0x27   : > { %364 = vst [vmem:[#allocation2 + $0x50] sm:$0xff] %v332_v11  ;;  %365 = vst [vmem:[#allocation2 + $0x58] sm:$0xff] %v333_v12  ;;  %v1030_v46 = vld [vmem:[%s1739_s1 + $0x168] sm:$0xff]  ;;  %v1031_v47 = vld [vmem:[%s1739_s1 + $0x170] sm:$0xff] }
  0x28   : > { %366 = vst [vmem:[#allocation2 + $0x60] sm:$0xff] %v334_v13  ;;  %367 = vst [vmem:[#allocation2 + $0x68] sm:$0xff] %v335_v14  ;;  %v1032_v48 = vld [vmem:[%s1739_s1 + $0x178] sm:$0xff]  ;;  %v1033_v49 = vld [vmem:[%s1739_s1 + $0x180] sm:$0xff] }
  0x29   : > { %368 = vst [vmem:[#allocation2 + $0x70] sm:$0xff] %v336_v15  ;;  %369 = vst [vmem:[#allocation2 + $0x78] sm:$0xff] %v337_v16  ;;  %v1034_v50 = vld [vmem:[%s1739_s1 + $0x188] sm:$0xff]  ;;  %v1035_v51 = vld [vmem:[%s1739_s1 + $0x190] sm:$0xff] }
  0x2a   : > { %370 = vst [vmem:[#allocation2 + $0x80] sm:$0xff] %v338_v17  ;;  %371 = vst [vmem:[#allocation2 + $0x88] sm:$0xff] %v339_v18  ;;  %v1036_v52 = vld [vmem:[%s1739_s1 + $0x198] sm:$0xff]  ;;  %v1037_v53 = vld [vmem:[%s1739_s1 + $0x1a0] sm:$0xff] }
  0x2b   : > { %372 = vst [vmem:[#allocation2 + $0x90] sm:$0xff] %v340_v19  ;;  %373 = vst [vmem:[#allocation2 + $0x98] sm:$0xff] %v341_v20  ;;  %v1038_v54 = vld [vmem:[%s1739_s1 + $0x1a8] sm:$0xff]  ;;  %v1039_v55 = vld [vmem:[%s1739_s1 + $0x1b0] sm:$0xff] }
  0x2c   : > { %374 = vst [vmem:[#allocation2 + $0xa0] sm:$0xff] %v342_v21  ;;  %375 = vst [vmem:[#allocation2 + $0xa8] sm:$0xff] %v343_v22  ;;  %v1040_v56 = vld [vmem:[%s1739_s1 + $0x1b8] sm:$0xff]  ;;  %v1041_v57 = vld [vmem:[%s1739_s1 + $0x1c0] sm:$0xff] }
  0x2d   : > { %376 = vst [vmem:[#allocation2 + $0xb0] sm:$0xff] %v344_v23  ;;  %377 = vst [vmem:[#allocation2 + $0xb8] sm:$0xff] %v345_v24  ;;  %v1042_v58 = vld [vmem:[%s1739_s1 + $0x1c8] sm:$0xff]  ;;  %v1043_v59 = vld [vmem:[%s1739_s1 + $0x1d0] sm:$0xff] }
  0x2e   : > { %378 = vst [vmem:[#allocation2 + $0xc0] sm:$0xff] %v346_v25  ;;  %379 = vst [vmem:[#allocation2 + $0xc8] sm:$0xff] %v347_v26  ;;  %v1044_v60 = vld [vmem:[%s1739_s1 + $0x1d8] sm:$0xff]  ;;  %v1045_v61 = vld [vmem:[%s1739_s1 + $0x1e0] sm:$0xff] }
  0x2f   : > { %380 = vst [vmem:[#allocation2 + $0xd0] sm:$0xff] %v348_v27  ;;  %381 = vst [vmem:[#allocation2 + $0xd8] sm:$0xff] %v349_v28  ;;  %v1046_v62 = vld [vmem:[%s1739_s1 + $0x1e8] sm:$0xff]  ;;  %v1047_v63 = vld [vmem:[%s1739_s1 + $0x1f0] sm:$0xff] }
  0x30   : > { %382 = vst [vmem:[#allocation2 + $0xe0] sm:$0xff] %v350_v29  ;;  %383 = vst [vmem:[#allocation2 + $0xe8] sm:$0xff] %v351_v30  ;;  %v1048_v0 = vld [vmem:[%s1739_s1 + $0x1f8] sm:$0xff] }
  0x31   : > { %384 = vst [vmem:[#allocation2 + $0xf0] sm:$0xff] %v352_v31  ;;  %385 = vst [vmem:[#allocation2 + $0xf8] sm:$0xff] %v353_v32 }
  0x32   : > { %418 = vst [vmem:[#allocation2 + $0x100] sm:$0xff] %v1017_v33  ;;  %419 = vst [vmem:[#allocation2 + $0x108] sm:$0xff] %v1018_v34 }
  0x33   : > { %420 = vst [vmem:[#allocation2 + $0x110] sm:$0xff] %v1019_v35  ;;  %421 = vst [vmem:[#allocation2 + $0x118] sm:$0xff] %v1020_v36 }
  0x34   : > { %422 = vst [vmem:[#allocation2 + $0x120] sm:$0xff] %v1021_v37  ;;  %423 = vst [vmem:[#allocation2 + $0x128] sm:$0xff] %v1022_v38 }
  0x35   : > { %424 = vst [vmem:[#allocation2 + $0x130] sm:$0xff] %v1023_v39  ;;  %425 = vst [vmem:[#allocation2 + $0x138] sm:$0xff] %v1024_v40 }
  0x36   : > { %426 = vst [vmem:[#allocation2 + $0x140] sm:$0xff] %v1025_v41  ;;  %427 = vst [vmem:[#allocation2 + $0x148] sm:$0xff] %v1026_v42 }
  0x37   : > { %428 = vst [vmem:[#allocation2 + $0x150] sm:$0xff] %v1027_v43  ;;  %429 = vst [vmem:[#allocation2 + $0x158] sm:$0xff] %v1028_v44 }
  0x38   : > { %430 = vst [vmem:[#allocation2 + $0x160] sm:$0xff] %v1029_v45  ;;  %431 = vst [vmem:[#allocation2 + $0x168] sm:$0xff] %v1030_v46 }
  0x39   : > { %432 = vst [vmem:[#allocation2 + $0x170] sm:$0xff] %v1031_v47  ;;  %433 = vst [vmem:[#allocation2 + $0x178] sm:$0xff] %v1032_v48 }
  0x3a   : > { %434 = vst [vmem:[#allocation2 + $0x180] sm:$0xff] %v1033_v49  ;;  %435 = vst [vmem:[#allocation2 + $0x188] sm:$0xff] %v1034_v50 }
  0x3b   : > { %436 = vst [vmem:[#allocation2 + $0x190] sm:$0xff] %v1035_v51  ;;  %437 = vst [vmem:[#allocation2 + $0x198] sm:$0xff] %v1036_v52 }
  0x3c   : > { %438 = vst [vmem:[#allocation2 + $0x1a0] sm:$0xff] %v1037_v53  ;;  %439 = vst [vmem:[#allocation2 + $0x1a8] sm:$0xff] %v1038_v54 }
  0x3d   : > { %440 = vst [vmem:[#allocation2 + $0x1b0] sm:$0xff] %v1039_v55  ;;  %441 = vst [vmem:[#allocation2 + $0x1b8] sm:$0xff] %v1040_v56 }
  0x3e   : > { %442 = vst [vmem:[#allocation2 + $0x1c0] sm:$0xff] %v1041_v57  ;;  %443 = vst [vmem:[#allocation2 + $0x1c8] sm:$0xff] %v1042_v58 }
  0x3f   : > { %444 = vst [vmem:[#allocation2 + $0x1d0] sm:$0xff] %v1043_v59  ;;  %445 = vst [vmem:[#allocation2 + $0x1d8] sm:$0xff] %v1044_v60 }
  0x40   : > { %446 = vst [vmem:[#allocation2 + $0x1e0] sm:$0xff] %v1045_v61  ;;  %447 = vst [vmem:[#allocation2 + $0x1e8] sm:$0xff] %v1046_v62 }
  0x41   : > { %448 = vst [vmem:[#allocation2 + $0x1f0] sm:$0xff] %v1047_v63  ;;  %449 = vst [vmem:[#allocation2 + $0x1f8] sm:$0xff] %v1048_v0 }
  0x42 PF: > { %v517_v1 = vld [vmem:[%s1373_s25] sm:$0xff]  ;;  %v518_v2 = vld [vmem:[%s1373_s25 + $0x8] sm:$0xff]  ;;  %v519_v3 = vld [vmem:[%s1373_s25 + $0x10] sm:$0xff]  ;;  %s1049_s20 = sshll.u32 %s1297_s13, 3  ;;  %p822_p9 = scmp.eq.s32.totalorder %s1297_s13, 2 }
  0x43   : > { %v1182_v4 = vpack.c.bf16 %v518_v2, %v517_v1  ;;  %v520_v5 = vld [vmem:[%s1373_s25 + $0x18] sm:$0xff]  ;;  %s451_s21 = sadd.s32 %s1293_s12, %s1049_s20  ;;  %v521_v7 = vld [vmem:[%s1373_s25 + $0x20] sm:$0xff]  ;;  %v522_v8 = vld [vmem:[%s1373_s25 + $0x28] sm:$0xff]  ;;  %p823_p10 = scmp.eq.s32.totalorder %s1293_s12, 2 }
  0x44   : > { %v1186_v6 = vpack.c.bf16 %v520_v5, %v519_v3  ;;  %v1190_v9 = vpack.c.bf16 %v522_v8, %v521_v7  ;;  %s1575_s22 = scalar_lea.vmem [#allocation2], %s451_s21  ;;  %v523_v12 = vld [vmem:[%s1373_s25 + $0x30] sm:$0xff]  ;;  %v524_v13 = vld [vmem:[%s1373_s25 + $0x38] sm:$0xff]  ;;  %v525_v15 = vld [vmem:[%s1373_s25 + $0x40] sm:$0xff] }
  0x45   : > { %1183 = vmatprep.subr.bf16.mxu0 %v1182_v4  ;;  %1214 = vmatprep.subr.bf16.mxu1 %v1182_v4  ;;  %v1194_v14 = vpack.c.bf16 %v524_v13, %v523_v12  ;;  %v526_v16 = vld [vmem:[%s1373_s25 + $0x48] sm:$0xff]  ;;  %v527_v18 = vld [vmem:[%s1373_s25 + $0x50] sm:$0xff]  ;;  %v528_v19 = vld [vmem:[%s1373_s25 + $0x58] sm:$0xff]  ;;  %p1621_p11 = pnand %p823_p10, %p822_p9 }
  0x46   : > { %1185 = vmatpush3.bf16.msra.mxu0 %v1182_v4  ;;  %1222 = vmatpush3.bf16.msra.mxu1 %v1182_v4  ;;  %v1198_v17 = vpack.c.bf16 %v526_v16, %v525_v15  ;;  %v1202_v20 = vpack.c.bf16 %v528_v19, %v527_v18  ;;  %v529_v21 = vld [vmem:[%s1373_s25 + $0x60] sm:$0xff]  ;;  %v530_v22 = vld [vmem:[%s1373_s25 + $0x68] sm:$0xff]  ;;  %v531_v24 = vld [vmem:[%s1373_s25 + $0x70] sm:$0xff] }
  0x47   : > { %1187 = vmatprep.subr.bf16.mxu0 %v1186_v6  ;;  %1215 = vmatprep.subr.bf16.mxu1 %v1186_v6  ;;  %v1206_v23 = vpack.c.bf16 %v530_v22, %v529_v21  ;;  %v532_v25 = vld [vmem:[%s1373_s25 + $0x78] sm:$0xff]  ;;  %v486_v57 = vld [vmem:[#allocation3 + $0x8] sm:$0xff]  ;;  %v485_v59 = vld [vmem:[#allocation3] sm:$0xff] }
  0x48   : > { %v453_v10 = vld [vmem:[%s1575_s22] sm:$0xff]  ;;  %v1210_v26 = vpack.c.bf16 %v532_v25, %v531_v24  ;;  %v454_v27 = vld [vmem:[%s1575_s22 + $0x8] sm:$0xff]  ;;  %v455_v29 = vld [vmem:[%s1575_s22 + $0x10] sm:$0xff] }
  0x49   : > { %v469_v11 = vld [vmem:[%s1575_s22 + $0x80] sm:$0xff]  ;;  %1134 = vmatprep.mubr.f32.mxu0 %v453_v10  ;;  %v470_v28 = vld [vmem:[%s1575_s22 + $0x88] sm:$0xff]  ;;  %v471_v30 = vld [vmem:[%s1575_s22 + $0x90] sm:$0xff] }
  0x4a   : > { %1158 = vmatprep.mubr.f32.mxu1 %v469_v11  ;;  %1189 = vmatpush3.bf16.msra.mxu0 %v1186_v6  ;;  %v456_v31 = vld [vmem:[%s1575_s22 + $0x18] sm:$0xff]  ;;  %v457_v33 = vld [vmem:[%s1575_s22 + $0x20] sm:$0xff]  ;;  %v458_v35 = vld [vmem:[%s1575_s22 + $0x28] sm:$0xff] }
  0x4b   : > { %1223 = vmatpush3.bf16.msra.mxu1 %v1186_v6  ;;  %1191 = vmatprep.subr.bf16.mxu0 %v1190_v9  ;;  %v472_v32 = vld [vmem:[%s1575_s22 + $0x98] sm:$0xff]  ;;  %v473_v34 = vld [vmem:[%s1575_s22 + $0xa0] sm:$0xff]  ;;  %v474_v36 = vld [vmem:[%s1575_s22 + $0xa8] sm:$0xff] }
  0x4c   : > { %1216 = vmatprep.subr.bf16.mxu1 %v1190_v9  ;;  %v459_v37 = vld [vmem:[%s1575_s22 + $0x30] sm:$0xff]  ;;  %v460_v39 = vld [vmem:[%s1575_s22 + $0x38] sm:$0xff]  ;;  %v461_v41 = vld [vmem:[%s1575_s22 + $0x40] sm:$0xff] }
  0x4d   : > { %v475_v38 = vld [vmem:[%s1575_s22 + $0xb0] sm:$0xff]  ;;  %v476_v40 = vld [vmem:[%s1575_s22 + $0xb8] sm:$0xff]  ;;  %v477_v42 = vld [vmem:[%s1575_s22 + $0xc0] sm:$0xff] }
  0x4e   : > { %1193 = vmatpush3.bf16.msra.mxu0 %v1190_v9  ;;  %v462_v43 = vld [vmem:[%s1575_s22 + $0x48] sm:$0xff]  ;;  %v463_v45 = vld [vmem:[%s1575_s22 + $0x50] sm:$0xff]  ;;  %v464_v47 = vld [vmem:[%s1575_s22 + $0x58] sm:$0xff] }
  0x4f   : > { %1224 = vmatpush3.bf16.msra.mxu1 %v1190_v9  ;;  %1195 = vmatprep.subr.bf16.mxu0 %v1194_v14  ;;  %v478_v44 = vld [vmem:[%s1575_s22 + $0xc8] sm:$0xff]  ;;  %v479_v46 = vld [vmem:[%s1575_s22 + $0xd0] sm:$0xff]  ;;  %v480_v48 = vld [vmem:[%s1575_s22 + $0xd8] sm:$0xff] }
  0x50   : > { %1217 = vmatprep.subr.bf16.mxu1 %v1194_v14  ;;  %v465_v49 = vld [vmem:[%s1575_s22 + $0x60] sm:$0xff]  ;;  %v466_v51 = vld [vmem:[%s1575_s22 + $0x68] sm:$0xff]  ;;  %v467_v53 = vld [vmem:[%s1575_s22 + $0x70] sm:$0xff] }
  0x51   : > { %v481_v50 = vld [vmem:[%s1575_s22 + $0xe0] sm:$0xff]  ;;  %v482_v52 = vld [vmem:[%s1575_s22 + $0xe8] sm:$0xff]  ;;  %v483_v54 = vld [vmem:[%s1575_s22 + $0xf0] sm:$0xff] }
  0x52   : > { %1197 = vmatpush3.bf16.msra.mxu0 %v1194_v14  ;;  %v468_v55 = vld [vmem:[%s1575_s22 + $0x78] sm:$0xff]  ;;  %v502_v58 = vld [vmem:[#allocation3 + $0x88] sm:$0xff]  ;;  %v501_v60 = vld [vmem:[#allocation3 + $0x80] sm:$0xff] }
  0x53   : > { %1225 = vmatpush3.bf16.msra.mxu1 %v1194_v14  ;;  %1199 = vmatprep.subr.bf16.mxu0 %v1198_v17  ;;  %v484_v56 = vld [vmem:[%s1575_s22 + $0xf8] sm:$0xff]  ;;  %v487_v7 = vld [vmem:[#allocation3 + $0x10] sm:$0xff]  ;;  %v506_v18 = vld [vmem:[#allocation3 + $0xa8] sm:$0xff] }
  0x54   : > { %1218 = vmatprep.subr.bf16.mxu1 %v1198_v17  ;;  %v488_v5 = vld [vmem:[#allocation3 + $0x18] sm:$0xff]  ;;  %v503_v8 = vld [vmem:[#allocation3 + $0x90] sm:$0xff]  ;;  %v489_v19 = vld [vmem:[#allocation3 + $0x20] sm:$0xff] }
  0x55   : > { %v504_v6 = vld [vmem:[#allocation3 + $0x98] sm:$0xff] }
  0x56   : > { %1201 = vmatpush3.bf16.msra.mxu0 %v1198_v17 }
  0x57   : > { %1226 = vmatpush3.bf16.msra.mxu1 %v1198_v17  ;;  %1203 = vmatprep.subr.bf16.mxu0 %v1202_v20  ;;  %v490_v17 = vld [vmem:[#allocation3 + $0x28] sm:$0xff] }
  0x58   : > { %1219 = vmatprep.subr.bf16.mxu1 %v1202_v20 }
  0x5a   : > { %1205 = vmatpush3.bf16.msra.mxu0 %v1202_v20 }
  0x5b   : > { %1227 = vmatpush3.bf16.msra.mxu1 %v1202_v20  ;;  %1207 = vmatprep.subr.bf16.mxu0 %v1206_v23  ;;  %v505_v20 = vld [vmem:[#allocation3 + $0xa0] sm:$0xff] }
  0x5c   : > { %1220 = vmatprep.subr.bf16.mxu1 %v1206_v23 }
  0x5e   : > { %1209 = vmatpush3.bf16.msra.mxu0 %v1206_v23 }
  0x5f   : > { %1228 = vmatpush3.bf16.msra.mxu1 %v1206_v23  ;;  %1211 = vmatprep.subr.bf16.mxu0 %v1210_v26 }
  0x60   : > { %1221 = vmatprep.subr.bf16.mxu1 %v1210_v26 }
  0x62   : > { %1213 = vmatpush3.bf16.msra.mxu0 %v1210_v26 }
  0x63   : > { %1229 = vmatpush3.bf16.msra.mxu1 %v1210_v26 }
  0x65   : > { %1135 = vmatmul.mubr.f32.vlgmr.msra.gmra.mrb[0].mxu0 %v454_v27 }
  0x66   : > { %1159 = vmatmul.mubr.f32.vlgmr.msra.gmra.mrb[0].mxu1 %v470_v28  ;;  %1137 = vmatprep.mubr.f32.mxu0 %v455_v29  ;;  %v492_v29 = vld [vmem:[#allocation3 + $0x38] sm:$0xff] }
  0x67   : > { %1161 = vmatprep.mubr.f32.mxu1 %v471_v30  ;;  %v508_v30 = vld [vmem:[#allocation3 + $0xb8] sm:$0xff] }
  0x69   : > { %1138 = vmatmul.mubr.f32.gmra.mrb[2].mxu0 %v456_v31  ;;  %v491_v31 = vld [vmem:[#allocation3 + $0x30] sm:$0xff] }
  0x6a   : > { %1162 = vmatmul.mubr.f32.gmra.mrb[2].mxu1 %v472_v32  ;;  %1140 = vmatprep.mubr.f32.mxu0 %v457_v33  ;;  %v507_v32 = vld [vmem:[#allocation3 + $0xb0] sm:$0xff] }
  0x6b   : > { %1164 = vmatprep.mubr.f32.mxu1 %v473_v34 }
  0x6d   : > { %1141 = vmatmul.mubr.f32.gmra.mrb[4].mxu0 %v458_v35 }
  0x6e   : > { %1165 = vmatmul.mubr.f32.gmra.mrb[4].mxu1 %v474_v36  ;;  %1143 = vmatprep.mubr.f32.mxu0 %v459_v37 }
  0x6f   : > { %1167 = vmatprep.mubr.f32.mxu1 %v475_v38 }
  0x71   : > { %1144 = vmatmul.mubr.f32.gmra.mrb[6].mxu0 %v460_v39 }
  0x72   : > { %1168 = vmatmul.mubr.f32.gmra.mrb[6].mxu1 %v476_v40  ;;  %1146 = vmatprep.mubr.f32.mxu0 %v461_v41  ;;  %v494_v41 = vld [vmem:[#allocation3 + $0x48] sm:$0xff] }
  0x73   : > { %1170 = vmatprep.mubr.f32.mxu1 %v477_v42  ;;  %v510_v42 = vld [vmem:[#allocation3 + $0xc8] sm:$0xff] }
  0x75   : > { %1147 = vmatmul.mubr.f32.gmra.mrb[8].mxu0 %v462_v43  ;;  %v493_v43 = vld [vmem:[#allocation3 + $0x40] sm:$0xff] }
  0x76   : > { %1171 = vmatmul.mubr.f32.gmra.mrb[8].mxu1 %v478_v44  ;;  %1149 = vmatprep.mubr.f32.mxu0 %v463_v45  ;;  %v509_v44 = vld [vmem:[#allocation3 + $0xc0] sm:$0xff] }
  0x77   : > { %1173 = vmatprep.mubr.f32.mxu1 %v479_v46 }
  0x79   : > { %1150 = vmatmul.mubr.f32.gmra.mrb[10].mxu0 %v464_v47 }
  0x7a   : > { %1174 = vmatmul.mubr.f32.gmra.mrb[10].mxu1 %v480_v48  ;;  %1152 = vmatprep.mubr.f32.mxu0 %v465_v49 }
  0x7b   : > { %1176 = vmatprep.mubr.f32.mxu1 %v481_v50 }
  0x7d   : > { %1153 = vmatmul.mubr.f32.gmra.mrb[12].mxu0 %v466_v51 }
  0x7e   : > { %1177 = vmatmul.mubr.f32.gmra.mrb[12].mxu1 %v482_v52  ;;  %1155 = vmatprep.mubr.f32.mxu0 %v467_v53  ;;  %v496_v53 = vld [vmem:[#allocation3 + $0x58] sm:$0xff] }
  0x7f   : > { %1179 = vmatprep.mubr.f32.mxu1 %v483_v54  ;;  %v512_v54 = vld [vmem:[#allocation3 + $0xd8] sm:$0xff] }
  0x81   : > { %1156 = vmatmul.mubr.f32.gmra.mrb[14].mxu0 %v468_v55  ;;  %v495_v55 = vld [vmem:[#allocation3 + $0x50] sm:$0xff] }
  0x82   : > { %1180 = vmatmul.mubr.f32.gmra.mrb[14].mxu1 %v484_v56  ;;  %v511_v56 = vld [vmem:[#allocation3 + $0xd0] sm:$0xff] }
 0x138   : > { %v1136_v61 = vpop.f32.mrb[0].mxu0 }
 0x139   : > { %v1160_v62 = vpop.f32.mrb[0].mxu1  ;;  %v759_v63 = vadd.f32 %v1136_v61, %v486_v57  ;;  %v599_v1 = vpop.f32.mrb[1].mxu0 }
 0x13a   : > { %v775_v0 = vadd.f32 %v1160_v62, %v502_v58  ;;  %v679_v2 = vpop.f32.mrb[1].mxu1  ;;  %v758_v3 = vadd.f32 %v599_v1, %v485_v59  ;;  %v498_v1 = vld [vmem:[#allocation3 + $0x68] sm:$0xff] }
 0x13b   : > { %v774_v4 = vadd.f32 %v679_v2, %v501_v60  ;;  %791 = vst [vmem:[#allocation3 + $0x8] sm:$0xff] %v759_v63  ;;  %v514_v2 = vld [vmem:[#allocation3 + $0xe8] sm:$0xff] }
 0x13c   : > { %807 = vst [vmem:[#allocation3 + $0x88] sm:$0xff] %v775_v0  ;;  %790 = vst [vmem:[#allocation3] sm:$0xff] %v758_v3  ;;  %v1139_v9 = vpop.f32.mrb[2].mxu0  ;;  %v497_v3 = vld [vmem:[#allocation3 + $0x60] sm:$0xff] }
 0x13d   : > { %806 = vst [vmem:[#allocation3 + $0x80] sm:$0xff] %v774_v4  ;;  %v1163_v10 = vpop.f32.mrb[2].mxu1  ;;  %v761_v11 = vadd.f32 %v1139_v9, %v488_v5  ;;  %v609_v13 = vpop.f32.mrb[3].mxu0  ;;  %v513_v4 = vld [vmem:[#allocation3 + $0xe0] sm:$0xff] }
 0x13e   : > { %v777_v12 = vadd.f32 %v1163_v10, %v504_v6  ;;  %v689_v14 = vpop.f32.mrb[3].mxu1  ;;  %v760_v15 = vadd.f32 %v609_v13, %v487_v7  ;;  %v500_v13 = vld [vmem:[#allocation3 + $0x78] sm:$0xff] }
 0x13f   : > { %v776_v16 = vadd.f32 %v689_v14, %v503_v8  ;;  %793 = vst [vmem:[#allocation3 + $0x18] sm:$0xff] %v761_v11  ;;  %v516_v14 = vld [vmem:[#allocation3 + $0xf8] sm:$0xff] }
 0x140   : > { %809 = vst [vmem:[#allocation3 + $0x98] sm:$0xff] %v777_v12  ;;  %792 = vst [vmem:[#allocation3 + $0x10] sm:$0xff] %v760_v15  ;;  %v1142_v21 = vpop.f32.mrb[4].mxu0  ;;  %v499_v15 = vld [vmem:[#allocation3 + $0x70] sm:$0xff] }
 0x141   : > { %808 = vst [vmem:[#allocation3 + $0x90] sm:$0xff] %v776_v16  ;;  %v1166_v22 = vpop.f32.mrb[4].mxu1  ;;  %v763_v23 = vadd.f32 %v1142_v21, %v490_v17  ;;  %v619_v25 = vpop.f32.mrb[5].mxu0  ;;  %v515_v16 = vld [vmem:[#allocation3 + $0xf0] sm:$0xff] }
 0x142   : > { %v779_v24 = vadd.f32 %v1166_v22, %v506_v18  ;;  %v699_v26 = vpop.f32.mrb[5].mxu1  ;;  %v762_v27 = vadd.f32 %v619_v25, %v489_v19 }
 0x143   : > { %v778_v28 = vadd.f32 %v699_v26, %v505_v20  ;;  %795 = vst [vmem:[#allocation3 + $0x28] sm:$0xff] %v763_v23  ;;  %v828_v25 = vld [vmem:[#allocation3] sm:$0xff] (!%p1621_p11)  ;;  %v829_v26 = vld [vmem:[#allocation3 + $0x8] sm:$0xff] (!%p1621_p11) }
 0x144   : > { %811 = vst [vmem:[#allocation3 + $0xa8] sm:$0xff] %v779_v24  ;;  %794 = vst [vmem:[#allocation3 + $0x20] sm:$0xff] %v762_v27  ;;  %v1145_v33 = vpop.f32.mrb[6].mxu0 }
 0x145   : > { %810 = vst [vmem:[#allocation3 + $0xa0] sm:$0xff] %v778_v28  ;;  %v1169_v34 = vpop.f32.mrb[6].mxu1  ;;  %v765_v35 = vadd.f32 %v1145_v33, %v492_v29  ;;  %v629_v37 = vpop.f32.mrb[7].mxu0  ;;  %860 = vst [vmem:[%s1741_s3] sm:$0xff] (!%p1621_p11), %v828_v25 }
 0x146   : > { %v781_v36 = vadd.f32 %v1169_v34, %v508_v30  ;;  %v709_v38 = vpop.f32.mrb[7].mxu1  ;;  %v764_v39 = vadd.f32 %v629_v37, %v491_v31  ;;  %861 = vst [vmem:[%s1741_s3 + $0x8] sm:$0xff] (!%p1621_p11), %v829_v26  ;;  %v831_v28 = vld [vmem:[#allocation3 + $0x18] sm:$0xff] (!%p1621_p11) }
 0x147   : > { %v780_v40 = vadd.f32 %v709_v38, %v507_v32  ;;  %797 = vst [vmem:[#allocation3 + $0x38] sm:$0xff] %v765_v35  ;;  %v830_v27 = vld [vmem:[#allocation3 + $0x10] sm:$0xff] (!%p1621_p11)  ;;  %863 = vst [vmem:[%s1741_s3 + $0x18] sm:$0xff] (!%p1621_p11), %v831_v28 }
 0x148   : > { %813 = vst [vmem:[#allocation3 + $0xb8] sm:$0xff] %v781_v36  ;;  %796 = vst [vmem:[#allocation3 + $0x30] sm:$0xff] %v764_v39  ;;  %v1148_v45 = vpop.f32.mrb[8].mxu0 }
 0x149   : > { %812 = vst [vmem:[#allocation3 + $0xb0] sm:$0xff] %v780_v40  ;;  %v1172_v46 = vpop.f32.mrb[8].mxu1  ;;  %v767_v47 = vadd.f32 %v1148_v45, %v494_v41  ;;  %v639_v49 = vpop.f32.mrb[9].mxu0  ;;  %862 = vst [vmem:[%s1741_s3 + $0x10] sm:$0xff] (!%p1621_p11), %v830_v27  ;;  %v844_v41 = vld [vmem:[#allocation3 + $0x80] sm:$0xff] (!%p1621_p11) }
 0x14a   : > { %v783_v48 = vadd.f32 %v1172_v46, %v510_v42  ;;  %v719_v50 = vpop.f32.mrb[9].mxu1  ;;  %v766_v51 = vadd.f32 %v639_v49, %v493_v43  ;;  %v833_v30 = vld [vmem:[#allocation3 + $0x28] sm:$0xff] (!%p1621_p11)  ;;  %876 = vst [vmem:[%s1741_s3 + $0x80] sm:$0xff] (!%p1621_p11), %v844_v41  ;;  %v846_v43 = vld [vmem:[#allocation3 + $0x90] sm:$0xff] (!%p1621_p11) }
 0x14b   : > { %v782_v52 = vadd.f32 %v719_v50, %v509_v44  ;;  %799 = vst [vmem:[#allocation3 + $0x48] sm:$0xff] %v767_v47  ;;  %v832_v29 = vld [vmem:[#allocation3 + $0x20] sm:$0xff] (!%p1621_p11)  ;;  %865 = vst [vmem:[%s1741_s3 + $0x28] sm:$0xff] (!%p1621_p11), %v833_v30  ;;  %v845_v42 = vld [vmem:[#allocation3 + $0x88] sm:$0xff] (!%p1621_p11) }
 0x14c   : > { %815 = vst [vmem:[#allocation3 + $0xc8] sm:$0xff] %v783_v48  ;;  %798 = vst [vmem:[#allocation3 + $0x40] sm:$0xff] %v766_v51  ;;  %v1151_v57 = vpop.f32.mrb[10].mxu0  ;;  %v847_v44 = vld [vmem:[#allocation3 + $0x98] sm:$0xff] (!%p1621_p11)  ;;  %v848_v45 = vld [vmem:[#allocation3 + $0xa0] sm:$0xff] (!%p1621_p11) }
 0x14d   : > { %814 = vst [vmem:[#allocation3 + $0xc0] sm:$0xff] %v782_v52  ;;  %v1175_v58 = vpop.f32.mrb[10].mxu1  ;;  %v769_v59 = vadd.f32 %v1151_v57, %v496_v53  ;;  %v649_v61 = vpop.f32.mrb[11].mxu0  ;;  %864 = vst [vmem:[%s1741_s3 + $0x20] sm:$0xff] (!%p1621_p11), %v832_v29  ;;  %v849_v46 = vld [vmem:[#allocation3 + $0xa8] sm:$0xff] (!%p1621_p11) }
 0x14e   : > { %v785_v60 = vadd.f32 %v1175_v58, %v512_v54  ;;  %v729_v62 = vpop.f32.mrb[11].mxu1  ;;  %v768_v63 = vadd.f32 %v649_v61, %v495_v55  ;;  %v835_v32 = vld [vmem:[#allocation3 + $0x38] sm:$0xff] (!%p1621_p11)  ;;  %877 = vst [vmem:[%s1741_s3 + $0x88] sm:$0xff] (!%p1621_p11), %v845_v42  ;;  %878 = vst [vmem:[%s1741_s3 + $0x90] sm:$0xff] (!%p1621_p11), %v846_v43 }
 0x14f   : > { %v784_v0 = vadd.f32 %v729_v62, %v511_v56  ;;  %801 = vst [vmem:[#allocation3 + $0x58] sm:$0xff] %v769_v59  ;;  %v834_v31 = vld [vmem:[#allocation3 + $0x30] sm:$0xff] (!%p1621_p11)  ;;  %867 = vst [vmem:[%s1741_s3 + $0x38] sm:$0xff] (!%p1621_p11), %v835_v32  ;;  %v851_v48 = vld [vmem:[#allocation3 + $0xb8] sm:$0xff] (!%p1621_p11) }
 0x150   : > { %817 = vst [vmem:[#allocation3 + $0xd8] sm:$0xff] %v785_v60  ;;  %800 = vst [vmem:[#allocation3 + $0x50] sm:$0xff] %v768_v63  ;;  %v1154_v5 = vpop.f32.mrb[12].mxu0  ;;  %v850_v47 = vld [vmem:[#allocation3 + $0xb0] sm:$0xff] (!%p1621_p11) }
 0x151   : > { %816 = vst [vmem:[#allocation3 + $0xd0] sm:$0xff] %v784_v0  ;;  %v1178_v6 = vpop.f32.mrb[12].mxu1  ;;  %v771_v7 = vadd.f32 %v1154_v5, %v498_v1  ;;  %v659_v9 = vpop.f32.mrb[13].mxu0  ;;  %866 = vst [vmem:[%s1741_s3 + $0x30] sm:$0xff] (!%p1621_p11), %v834_v31 }
 0x152   : > { %v787_v8 = vadd.f32 %v1178_v6, %v514_v2  ;;  %v739_v10 = vpop.f32.mrb[13].mxu1  ;;  %v770_v11 = vadd.f32 %v659_v9, %v497_v3  ;;  %v837_v34 = vld [vmem:[#allocation3 + $0x48] sm:$0xff] (!%p1621_p11)  ;;  %879 = vst [vmem:[%s1741_s3 + $0x98] sm:$0xff] (!%p1621_p11), %v847_v44  ;;  %880 = vst [vmem:[%s1741_s3 + $0xa0] sm:$0xff] (!%p1621_p11), %v848_v45 }
 0x153   : > { %v786_v12 = vadd.f32 %v739_v10, %v513_v4  ;;  %803 = vst [vmem:[#allocation3 + $0x68] sm:$0xff] %v771_v7  ;;  %827 = sbr.rel (%p1621_p11) target bundleno = 354 (0x162), region = 40  ;;  %v836_v33 = vld [vmem:[#allocation3 + $0x40] sm:$0xff] (!%p1621_p11)  ;;  %869 = vst [vmem:[%s1741_s3 + $0x48] sm:$0xff] (!%p1621_p11), %v837_v34  ;;  %v853_v50 = vld [vmem:[#allocation3 + $0xc8] sm:$0xff] (!%p1621_p11) }
 0x154   : > { %819 = vst [vmem:[#allocation3 + $0xe8] sm:$0xff] %v787_v8  ;;  %802 = vst [vmem:[#allocation3 + $0x60] sm:$0xff] %v770_v11  ;;  %v1157_v17 = vpop.f32.mrb[14].mxu0  ;;  %v852_v49 = vld [vmem:[#allocation3 + $0xc0] sm:$0xff] (!%p1621_p11) }
 0x155   : > { %818 = vst [vmem:[#allocation3 + $0xe0] sm:$0xff] %v786_v12  ;;  %v1181_v18 = vpop.f32.mrb[14].mxu1  ;;  %v773_v19 = vadd.f32 %v1157_v17, %v500_v13  ;;  %v669_v21 = vpop.f32.mrb[15].mxu0  ;;  %868 = vst [vmem:[%s1741_s3 + $0x40] sm:$0xff] (!%p1621_p11), %v836_v33 }
 0x156   : > { %v789_v20 = vadd.f32 %v1181_v18, %v516_v14  ;;  %v749_v22 = vpop.f32.mrb[15].mxu1  ;;  %v772_v23 = vadd.f32 %v669_v21, %v499_v15  ;;  %v839_v36 = vld [vmem:[#allocation3 + $0x58] sm:$0xff] (!%p1621_p11)  ;;  %881 = vst [vmem:[%s1741_s3 + $0xa8] sm:$0xff] (!%p1621_p11), %v849_v46  ;;  %882 = vst [vmem:[%s1741_s3 + $0xb0] sm:$0xff] (!%p1621_p11), %v850_v47 }
 0x157   : > { %v788_v24 = vadd.f32 %v749_v22, %v515_v16  ;;  %805 = vst [vmem:[#allocation3 + $0x78] sm:$0xff] %v773_v19  ;;  %v838_v35 = vld [vmem:[#allocation3 + $0x50] sm:$0xff] (!%p1621_p11)  ;;  %871 = vst [vmem:[%s1741_s3 + $0x58] sm:$0xff] (!%p1621_p11), %v839_v36  ;;  %v855_v52 = vld [vmem:[#allocation3 + $0xd8] sm:$0xff] (!%p1621_p11) }
 0x158   : > { %821 = vst [vmem:[#allocation3 + $0xf8] sm:$0xff] %v789_v20  ;;  %804 = vst [vmem:[#allocation3 + $0x70] sm:$0xff] %v772_v23  ;;  %v854_v51 = vld [vmem:[#allocation3 + $0xd0] sm:$0xff] (!%p1621_p11) }
 0x159   : > { %820 = vst [vmem:[#allocation3 + $0xf0] sm:$0xff] %v788_v24  ;;  %870 = vst [vmem:[%s1741_s3 + $0x50] sm:$0xff] (!%p1621_p11), %v838_v35 }
 0x15a   : > { %v841_v38 = vld [vmem:[#allocation3 + $0x68] sm:$0xff]  ;;  %883 = vst [vmem:[%s1741_s3 + $0xb8] sm:$0xff] %v851_v48  ;;  %884 = vst [vmem:[%s1741_s3 + $0xc0] sm:$0xff] %v852_v49 }
 0x15b   : > { %v840_v37 = vld [vmem:[#allocation3 + $0x60] sm:$0xff]  ;;  %873 = vst [vmem:[%s1741_s3 + $0x68] sm:$0xff] %v841_v38  ;;  %885 = vst [vmem:[%s1741_s3 + $0xc8] sm:$0xff] %v853_v50  ;;  %v857_v54 = vld [vmem:[#allocation3 + $0xe8] sm:$0xff] }
 0x15c   : > { %872 = vst [vmem:[%s1741_s3 + $0x60] sm:$0xff] %v840_v37  ;;  %886 = vst [vmem:[%s1741_s3 + $0xd0] sm:$0xff] %v854_v51  ;;  %v856_v53 = vld [vmem:[#allocation3 + $0xe0] sm:$0xff] }
 0x15d   : > { %887 = vst [vmem:[%s1741_s3 + $0xd8] sm:$0xff] %v855_v52  ;;  %888 = vst [vmem:[%s1741_s3 + $0xe0] sm:$0xff] %v856_v53 }
 0x15e   : > { %v843_v40 = vld [vmem:[#allocation3 + $0x78] sm:$0xff]  ;;  %889 = vst [vmem:[%s1741_s3 + $0xe8] sm:$0xff] %v857_v54 }
 0x15f   : > { %v842_v39 = vld [vmem:[#allocation3 + $0x70] sm:$0xff]  ;;  %875 = vst [vmem:[%s1741_s3 + $0x78] sm:$0xff] %v843_v40  ;;  %v859_v56 = vld [vmem:[#allocation3 + $0xf8] sm:$0xff] }
 0x160   : > { %874 = vst [vmem:[%s1741_s3 + $0x70] sm:$0xff] %v842_v39  ;;  %v858_v55 = vld [vmem:[#allocation3 + $0xf0] sm:$0xff]  ;;  %891 = vst [vmem:[%s1741_s3 + $0xf8] sm:$0xff] %v859_v56 }
 0x161   : > { %890 = vst [vmem:[%s1741_s3 + $0xf0] sm:$0xff] %v858_v55 }
 0x162 PF: > { %s13_s16 = sadd.s32 1, %s1309_s16   ;;  %s1743_s12 = smov %s1301_s14 }
 0x163   : > { %p10_p12 = scmp.ge.s32.totalorder %s13_s16, 11   ;;  %s1744_s13 = smov %s1305_s15 }
 0x164   : > { %s1745_s14 = smov %s1748_s17  ;;  %s1746_s15 = smov %s1752_s18 }
 0x165   :  { %12 = sbr.rel (!%p10_p12) target bundleno = 3 (0x3), region = 77 }

// kernel: densenet_forward.16
= control target key start
LH: loop header
LB: loop body
LE: loop exit
PB: predicated region body
PF: predicated region fallthrough
CT: control target
= control target key end

     0   :  { %s1369_s18 = smov 0   ;;  %s1371_s19 = smov 0   ;;  %s1636_s0 = inlined_call_operand.vmem [shape: f32[512,128], index: 0, kind: input, shape index: {}]   ;;  %s1637_s1 = inlined_call_operand.vmem [shape: f32[1,128], index: 1, kind: input, shape index: {}]   ;;  %s1638_s2 = inlined_call_operand.vmem [shape: f32[1,128], index: 2, kind: input, shape index: {}]   ;;  %s1639_s3 = inlined_call_operand.vmem [shape: f32[128,128], index: 3, kind: input, shape index: {}]   ;;  %s1640_s4 = inlined_call_operand.vmem [shape: f32[1,128], index: 4, kind: input, shape index: {}]   ;;  %s1641_s5 = inlined_call_operand.vmem [shape: f32[512,128], index: 5, kind: output, shape index: {}]  }
   0x1   :  { %s1373_s20 = smov 0  }
   0x2 LB: > { %s34_s21 = sadd.s32 1, %s1333_s19  ;;  %p1105_p0 = scmp.ge.s32.totalorder %s1337_s20, 1  ;;  %s1337_s20 = sphi %s1373_s20, %s15_s20   ;;  %s1333_s19 = sphi %s1371_s19, %s1643_s19   ;;  %s1329_s18 = sphi %s1369_s18, %s1642_s18  }
   0x3   : > { %p36_p1 = scmp.ge.s32.totalorder %s34_s21, 2  ;;  %p254_p2 = scmp.lt.s32.totalorder %s1337_s20, 3 }
   0x5   : > { %s1645_s21 = smov (%p36_p1, %s34_s21), 0  ;;  %p255_p3 = pnand %p1105_p0, %p254_p2 }
   0x6   : > { %v551_v0 = vld [vmem:[%s1639_s3] sm:$0xff] (!%p255_p3)  ;;  %v552_v1 = vld [vmem:[%s1639_s3 + $0x8] sm:$0xff] (!%p255_p3)  ;;  %v553_v2 = vld [vmem:[%s1639_s3 + $0x10] sm:$0xff] (!%p255_p3)  ;;  %s1106_s28 = sshll.u32 (!%p255_p3), %s1329_s18, 5 }
   0x7   : > { %258 = sbr.rel (%p255_p3) target bundleno = 285 (0x11d), region = 40  ;;  %v1243_v3 = vpack.c.bf16 (!%p255_p3), %v552_v1, %v551_v0  ;;  %v554_v4 = vld [vmem:[%s1639_s3 + $0x18] sm:$0xff] (!%p255_p3)  ;;  %p306_p4 = scmp.lt.s32.totalorder (!%p255_p3), %s1106_s28, 63  ;;  %v555_v6 = vld [vmem:[%s1639_s3 + $0x20] sm:$0xff] (!%p255_p3)  ;;  %v556_v7 = vld [vmem:[%s1639_s3 + $0x28] sm:$0xff] (!%p255_p3) }
   0x8   : > { %v1247_v5 = vpack.c.bf16 (!%p255_p3), %v554_v4, %v553_v2  ;;  %v1251_v8 = vpack.c.bf16 (!%p255_p3), %v556_v7, %v555_v6  ;;  %v1411_v9 = vld [vmem:[%s1637_s1] ss:$0 sm:$0xff] (!%p255_p3)  ;;  %v557_v10 = vld [vmem:[%s1639_s3 + $0x30] sm:$0xff] (!%p255_p3)  ;;  %v558_v11 = vld [vmem:[%s1639_s3 + $0x38] sm:$0xff] (!%p255_p3) }
   0x9   : > { %1244 = vmatprep.subr.bf16.mxu0 (!%p255_p3), %v1243_v3  ;;  %1275 = vmatprep.subr.bf16.mxu1 (!%p255_p3), %v1243_v3  ;;  %v1430_v13 = vld [vmem:[%s1638_s2] ss:$0 sm:$0xff] (!%p255_p3)  ;;  %v1255_v17 = vpack.c.bf16 (!%p255_p3), %v558_v11, %v557_v10  ;;  %v560_v19 = vld [vmem:[%s1639_s3 + $0x48] sm:$0xff] (!%p255_p3)  ;;  %v561_v25 = vld [vmem:[%s1639_s3 + $0x50] sm:$0xff] (!%p255_p3) }
   0xa   : > { %1246 = vmatpush3.bf16.msra.mxu0 (!%p255_p3), %v1243_v3  ;;  %1283 = vmatpush3.bf16.msra.mxu1 (!%p255_p3), %v1243_v3  ;;  %v559_v18 = vld [vmem:[%s1639_s3 + $0x40] sm:$0xff] (!%p255_p3)  ;;  %v562_v26 = vld [vmem:[%s1639_s3 + $0x58] sm:$0xff] (!%p255_p3)  ;;  %v564_v29 = vld [vmem:[%s1639_s3 + $0x68] sm:$0xff] (!%p255_p3) }
   0xb   : > { %1248 = vmatprep.subr.bf16.mxu0 (!%p255_p3), %v1247_v5  ;;  %1276 = vmatprep.subr.bf16.mxu1 (!%p255_p3), %v1247_v5  ;;  %v1259_v24 = vpack.c.bf16 (!%p255_p3), %v560_v19, %v559_v18  ;;  %v1263_v27 = vpack.c.bf16 (!%p255_p3), %v562_v26, %v561_v25  ;;  %v563_v28 = vld [vmem:[%s1639_s3 + $0x60] sm:$0xff] (!%p255_p3)  ;;  %v565_v35 = vld [vmem:[%s1639_s3 + $0x70] sm:$0xff] (!%p255_p3)  ;;  %v566_v36 = vld [vmem:[%s1639_s3 + $0x78] sm:$0xff] (!%p255_p3) }
   0xc   : > { %v1267_v33 = vpack.c.bf16 (!%p255_p3), %v564_v29, %v563_v28  ;;  %v1271_v43 = vpack.c.bf16 (!%p255_p3), %v566_v36, %v565_v35 }
   0xe   : > { %s1647_s28 = smov (!%p306_p4, %s1106_s28), 63  ;;  %1250 = vmatpush3.bf16.msra.mxu0 %v1247_v5  ;;  %1284 = vmatpush3.bf16.msra.mxu1 %v1247_v5 }
   0xf   : > { %s1107_s10 = sshll.u32 %s1647_s28, 3  ;;  %1252 = vmatprep.subr.bf16.mxu0 %v1251_v8  ;;  %1277 = vmatprep.subr.bf16.mxu1 %v1251_v8 }
  0x10   : > { %s1424_s22 = scalar_lea.vmem %s1636_s0, %s1107_s10  ;;  %s1561_s25 = scalar_lea.vmem %s1641_s5, %s1107_s10 }
  0x11   : > { %v377_v12 = vld [vmem:[%s1424_s22] sm:$0xff]  ;;  %v378_v30 = vld [vmem:[%s1424_s22 + $0x8] sm:$0xff]  ;;  %v379_v32 = vld [vmem:[%s1424_s22 + $0x10] sm:$0xff] }
  0x12   : > { %v393_v14 = vld [vmem:[%s1424_s22 + $0x80] sm:$0xff]  ;;  %v416_v15 = vmul.f32 %v1411_v9, %v377_v12  ;;  %1254 = vmatpush3.bf16.msra.mxu0 %v1251_v8  ;;  %1285 = vmatpush3.bf16.msra.mxu1 %v1251_v8  ;;  %v394_v31 = vld [vmem:[%s1424_s22 + $0x88] sm:$0xff]  ;;  %v395_v34 = vld [vmem:[%s1424_s22 + $0x90] sm:$0xff]  ;;  %v417_v37 = vmul.f32 %v1411_v9, %v378_v30  ;;  %v418_v39 = vmul.f32 %v1411_v9, %v379_v32 }
  0x13   : > { %v432_v16 = vmul.f32 %v1411_v9, %v393_v14  ;;  %1256 = vmatprep.subr.bf16.mxu0 %v1255_v17  ;;  %1278 = vmatprep.subr.bf16.mxu1 %v1255_v17  ;;  %v433_v38 = vmul.f32 %v1411_v9, %v394_v31  ;;  %v380_v40 = vld [vmem:[%s1424_s22 + $0x18] sm:$0xff]  ;;  %v434_v41 = vmul.f32 %v1411_v9, %v395_v34  ;;  %v381_v44 = vld [vmem:[%s1424_s22 + $0x20] sm:$0xff]  ;;  %v382_v51 = vld [vmem:[%s1424_s22 + $0x28] sm:$0xff] }
  0x14   : > { %v455_v20 = vadd.f32 %v1430_v13, %v416_v15  ;;  %v396_v42 = vld [vmem:[%s1424_s22 + $0x98] sm:$0xff]  ;;  %v397_v45 = vld [vmem:[%s1424_s22 + $0xa0] sm:$0xff]  ;;  %v456_v46 = vadd.f32 %v1430_v13, %v417_v37  ;;  %v419_v47 = vmul.f32 %v1411_v9, %v380_v40  ;;  %v457_v49 = vadd.f32 %v1430_v13, %v418_v39  ;;  %v398_v52 = vld [vmem:[%s1424_s22 + $0xa8] sm:$0xff] }
  0x15   : > { %v471_v21 = vadd.f32 %v1430_v13, %v432_v16  ;;  %v472_v48 = vadd.f32 %v1430_v13, %v433_v38  ;;  %v435_v50 = vmul.f32 %v1411_v9, %v396_v42  ;;  %v473_v53 = vadd.f32 %v1430_v13, %v434_v41  ;;  %v383_v56 = vld [vmem:[%s1424_s22 + $0x30] sm:$0xff]  ;;  %v384_v2 = vld [vmem:[%s1424_s22 + $0x38] sm:$0xff]  ;;  %v385_v8 = vld [vmem:[%s1424_s22 + $0x40] sm:$0xff] }
  0x16   : > { %v487_v22 = vmax.f32 %v455_v20, 0.0  ;;  %1258 = vmatpush3.bf16.msra.mxu0 %v1255_v17  ;;  %1286 = vmatpush3.bf16.msra.mxu1 %v1255_v17  ;;  %v420_v54 = vmul.f32 %v1411_v9, %v381_v44  ;;  %v436_v55 = vmul.f32 %v1411_v9, %v397_v45  ;;  %v399_v57 = vld [vmem:[%s1424_s22 + $0xb0] sm:$0xff]  ;;  %v488_v58 = vmax.f32 %v456_v46, 0.0  ;;  %v400_v7 = vld [vmem:[%s1424_s22 + $0xb8] sm:$0xff]  ;;  %v401_v10 = vld [vmem:[%s1424_s22 + $0xc0] sm:$0xff] }
  0x17   : > { %v503_v23 = vmax.f32 %v471_v21, 0.0  ;;  %1260 = vmatprep.subr.bf16.mxu0 %v1259_v24  ;;  %1279 = vmatprep.subr.bf16.mxu1 %v1259_v24  ;;  %v458_v59 = vadd.f32 %v1430_v13, %v419_v47  ;;  %v421_v60 = vmul.f32 %v1411_v9, %v382_v51  ;;  %v437_v61 = vmul.f32 %v1411_v9, %v398_v52  ;;  %v386_v20 = vld [vmem:[%s1424_s22 + $0x48] sm:$0xff]  ;;  %v387_v26 = vld [vmem:[%s1424_s22 + $0x50] sm:$0xff]  ;;  %v388_v36 = vld [vmem:[%s1424_s22 + $0x58] sm:$0xff] }
  0x18   : > { %1195 = vmatprep.mubr.f32.mxu0 %v487_v22  ;;  %v504_v62 = vmax.f32 %v472_v48, 0.0  ;;  %v474_v63 = vadd.f32 %v1430_v13, %v435_v50  ;;  %v422_v0 = vmul.f32 %v1411_v9, %v383_v56  ;;  %v438_v1 = vmul.f32 %v1411_v9, %v399_v57  ;;  %v402_v21 = vld [vmem:[%s1424_s22 + $0xc8] sm:$0xff]  ;;  %v404_v41 = vld [vmem:[%s1424_s22 + $0xd8] sm:$0xff]  ;;  %v389_v42 = vld [vmem:[%s1424_s22 + $0x60] sm:$0xff] }
  0x19   : > { %1219 = vmatprep.mubr.f32.mxu1 %v503_v23  ;;  %v489_v3 = vmax.f32 %v457_v49, 0.0  ;;  %v505_v4 = vmax.f32 %v473_v53, 0.0  ;;  %v459_v5 = vadd.f32 %v1430_v13, %v420_v54  ;;  %v475_v6 = vadd.f32 %v1430_v13, %v436_v55  ;;  %v390_v52 = vld [vmem:[%s1424_s22 + $0x68] sm:$0xff] }
  0x1a   : > { %1262 = vmatpush3.bf16.msra.mxu0 %v1259_v24  ;;  %1287 = vmatpush3.bf16.msra.mxu1 %v1259_v24  ;;  %v490_v11 = vmax.f32 %v458_v59, 0.0  ;;  %v460_v12 = vadd.f32 %v1430_v13, %v421_v60  ;;  %v476_v14 = vadd.f32 %v1430_v13, %v437_v61  ;;  %v423_v15 = vmul.f32 %v1411_v9, %v384_v2  ;;  %v406_v57 = vld [vmem:[%s1424_s22 + $0xe8] sm:$0xff]  ;;  %v407_v59 = vld [vmem:[%s1424_s22 + $0xf0] sm:$0xff] }
  0x1b   : > { %1264 = vmatprep.subr.bf16.mxu0 %v1263_v27  ;;  %1280 = vmatprep.subr.bf16.mxu1 %v1263_v27  ;;  %v506_v16 = vmax.f32 %v474_v63, 0.0  ;;  %v461_v17 = vadd.f32 %v1430_v13, %v422_v0  ;;  %v477_v18 = vadd.f32 %v1430_v13, %v438_v1  ;;  %v439_v19 = vmul.f32 %v1411_v9, %v400_v7 }
  0x1c   : > { %v491_v22 = vmax.f32 %v459_v5, 0.0  ;;  %v507_v23 = vmax.f32 %v475_v6, 0.0  ;;  %v424_v24 = vmul.f32 %v1411_v9, %v385_v8  ;;  %v440_v25 = vmul.f32 %v1411_v9, %v401_v10  ;;  %v392_v8 = vld [vmem:[%s1424_s22 + $0x78] sm:$0xff] }
  0x1d   : > { %v492_v28 = vmax.f32 %v460_v12, 0.0  ;;  %v462_v29 = vadd.f32 %v1430_v13, %v423_v15  ;;  %v425_v30 = vmul.f32 %v1411_v9, %v386_v20  ;;  %v441_v31 = vmul.f32 %v1411_v9, %v402_v21  ;;  %v408_v10 = vld [vmem:[%s1424_s22 + $0xf8] sm:$0xff] }
  0x1e   : > { %1266 = vmatpush3.bf16.msra.mxu0 %v1263_v27  ;;  %1288 = vmatpush3.bf16.msra.mxu1 %v1263_v27  ;;  %v403_v27 = vld [vmem:[%s1424_s22 + $0xd0] sm:$0xff]  ;;  %v508_v32 = vmax.f32 %v476_v14, 0.0  ;;  %v478_v34 = vadd.f32 %v1430_v13, %v439_v19  ;;  %v426_v35 = vmul.f32 %v1411_v9, %v387_v26  ;;  %v509_v37 = vmax.f32 %v477_v18, 0.0 }
  0x1f   : > { %1268 = vmatprep.subr.bf16.mxu0 %v1267_v33  ;;  %1281 = vmatprep.subr.bf16.mxu1 %v1267_v33  ;;  %v463_v38 = vadd.f32 %v1430_v13, %v424_v24  ;;  %v479_v39 = vadd.f32 %v1430_v13, %v440_v25  ;;  %v442_v40 = vmul.f32 %v1411_v9, %v403_v27  ;;  %v494_v44 = vmax.f32 %v462_v29, 0.0  ;;  %v1554_v29 = vld [vmem:[%s1640_s4] ss:$0 sm:$0xff] }
  0x20   : > { %v464_v45 = vadd.f32 %v1430_v13, %v425_v30  ;;  %v480_v46 = vadd.f32 %v1430_v13, %v441_v31  ;;  %v427_v47 = vmul.f32 %v1411_v9, %v388_v36  ;;  %v510_v48 = vmax.f32 %v478_v34, 0.0 }
  0x21   : > { %v465_v49 = vadd.f32 %v1430_v13, %v426_v35  ;;  %v443_v50 = vmul.f32 %v1411_v9, %v404_v41  ;;  %v428_v51 = vmul.f32 %v1411_v9, %v389_v42  ;;  %v495_v53 = vmax.f32 %v463_v38, 0.0 }
  0x22   : > { %1270 = vmatpush3.bf16.msra.mxu0 %v1267_v33  ;;  %1289 = vmatpush3.bf16.msra.mxu1 %v1267_v33  ;;  %v493_v33 = vmax.f32 %v461_v17, 0.0  ;;  %v511_v54 = vmax.f32 %v479_v39, 0.0  ;;  %v481_v55 = vadd.f32 %v1430_v13, %v442_v40  ;;  %v496_v60 = vmax.f32 %v464_v45, 0.0 }
  0x23   : > { %1272 = vmatprep.subr.bf16.mxu0 %v1271_v43  ;;  %1282 = vmatprep.subr.bf16.mxu1 %v1271_v43  ;;  %v512_v61 = vmax.f32 %v480_v46, 0.0  ;;  %v429_v63 = vmul.f32 %v1411_v9, %v390_v52  ;;  %v497_v0 = vmax.f32 %v465_v49, 0.0  ;;  %v482_v1 = vadd.f32 %v1430_v13, %v443_v50 }
  0x24   : > { %v467_v2 = vadd.f32 %v1430_v13, %v428_v51  ;;  %v446_v7 = vmul.f32 %v1411_v9, %v407_v59  ;;  %v447_v17 = vmul.f32 %v1411_v9, %v408_v10 }
  0x25   : > { %v468_v12 = vadd.f32 %v1430_v13, %v429_v63  ;;  %v514_v14 = vmax.f32 %v482_v1, 0.0 }
  0x26   : > { %1274 = vmatpush3.bf16.msra.mxu0 %v1271_v43  ;;  %1290 = vmatpush3.bf16.msra.mxu1 %v1271_v43  ;;  %v405_v43 = vld [vmem:[%s1424_s22 + $0xe0] sm:$0xff]  ;;  %v499_v18 = vmax.f32 %v467_v2, 0.0  ;;  %v485_v21 = vadd.f32 %v1430_v13, %v446_v7  ;;  %v486_v25 = vadd.f32 %v1430_v13, %v447_v17 }
  0x27   : > { %v444_v56 = vmul.f32 %v1411_v9, %v405_v43 }
  0x28   : > { %v517_v26 = vmax.f32 %v485_v21, 0.0 }
  0x29   : > { %1196 = vmatmul.mubr.f32.vlgmr.msra.gmra.mrb[0].mxu0 %v488_v58  ;;  %1220 = vmatmul.mubr.f32.vlgmr.msra.gmra.mrb[0].mxu1 %v504_v62  ;;  %v391_v58 = vld [vmem:[%s1424_s22 + $0x70] sm:$0xff]  ;;  %v466_v62 = vadd.f32 %v1430_v13, %v427_v47  ;;  %v483_v5 = vadd.f32 %v1430_v13, %v444_v56 }
  0x2a   : > { %1198 = vmatprep.mubr.f32.mxu0 %v489_v3  ;;  %1222 = vmatprep.mubr.f32.mxu1 %v505_v4  ;;  %v445_v3 = vmul.f32 %v1411_v9, %v406_v57  ;;  %v513_v4 = vmax.f32 %v481_v55, 0.0  ;;  %v430_v6 = vmul.f32 %v1411_v9, %v391_v58 }
  0x2b   : > { %v515_v19 = vmax.f32 %v483_v5, 0.0 }
  0x2c   : > { %v484_v15 = vadd.f32 %v1430_v13, %v445_v3  ;;  %v469_v20 = vadd.f32 %v1430_v13, %v430_v6 }
  0x2d   : > { %1199 = vmatmul.mubr.f32.gmra.mrb[2].mxu0 %v490_v11  ;;  %1223 = vmatmul.mubr.f32.gmra.mrb[2].mxu1 %v506_v16  ;;  %v498_v11 = vmax.f32 %v466_v62, 0.0  ;;  %v431_v16 = vmul.f32 %v1411_v9, %v392_v8 }
  0x2e   : > { %1201 = vmatprep.mubr.f32.mxu0 %v491_v22  ;;  %1225 = vmatprep.mubr.f32.mxu1 %v507_v23  ;;  %v500_v22 = vmax.f32 %v468_v12, 0.0  ;;  %v516_v23 = vmax.f32 %v484_v15, 0.0  ;;  %v501_v9 = vmax.f32 %v469_v20, 0.0 }
  0x2f   : > { %v470_v24 = vadd.f32 %v1430_v13, %v431_v16 }
  0x31   : > { %1202 = vmatmul.mubr.f32.gmra.mrb[4].mxu0 %v492_v28  ;;  %1226 = vmatmul.mubr.f32.gmra.mrb[4].mxu1 %v508_v32  ;;  %v502_v27 = vmax.f32 %v470_v24, 0.0  ;;  %v518_v28 = vmax.f32 %v486_v25, 0.0 }
  0x32   : > { %1204 = vmatprep.mubr.f32.mxu0 %v493_v33  ;;  %1228 = vmatprep.mubr.f32.mxu1 %v509_v37 }
  0x35   : > { %1205 = vmatmul.mubr.f32.gmra.mrb[6].mxu0 %v494_v44  ;;  %1229 = vmatmul.mubr.f32.gmra.mrb[6].mxu1 %v510_v48 }
  0x36   : > { %1207 = vmatprep.mubr.f32.mxu0 %v495_v53  ;;  %1231 = vmatprep.mubr.f32.mxu1 %v511_v54 }
  0x39   : > { %1208 = vmatmul.mubr.f32.gmra.mrb[8].mxu0 %v496_v60  ;;  %1232 = vmatmul.mubr.f32.gmra.mrb[8].mxu1 %v512_v61 }
  0x3a   : > { %1210 = vmatprep.mubr.f32.mxu0 %v497_v0  ;;  %1234 = vmatprep.mubr.f32.mxu1 %v513_v4 }
  0x3d   : > { %1211 = vmatmul.mubr.f32.gmra.mrb[10].mxu0 %v498_v11  ;;  %1235 = vmatmul.mubr.f32.gmra.mrb[10].mxu1 %v514_v14 }
  0x3e   : > { %1213 = vmatprep.mubr.f32.mxu0 %v499_v18  ;;  %1237 = vmatprep.mubr.f32.mxu1 %v515_v19 }
  0x41   : > { %1214 = vmatmul.mubr.f32.gmra.mrb[12].mxu0 %v500_v22  ;;  %1238 = vmatmul.mubr.f32.gmra.mrb[12].mxu1 %v516_v23 }
  0x42   : > { %1216 = vmatprep.mubr.f32.mxu0 %v501_v9  ;;  %1240 = vmatprep.mubr.f32.mxu1 %v517_v26 }
  0x45   : > { %1217 = vmatmul.mubr.f32.gmra.mrb[14].mxu0 %v502_v27  ;;  %1241 = vmatmul.mubr.f32.gmra.mrb[14].mxu1 %v518_v28 }
  0xfc   : > { %v1197_v13 = vpop.f32.mrb[0].mxu0  ;;  %v1221_v30 = vpop.f32.mrb[0].mxu1 }
  0xfd   : > { %v899_v31 = vadd.f32 %v1197_v13, %v1554_v29  ;;  %v915_v32 = vadd.f32 %v1221_v30, %v1554_v29  ;;  %v633_v33 = vpop.f32.mrb[1].mxu0  ;;  %v713_v34 = vpop.f32.mrb[1].mxu1 }
  0xfe   : > { %v898_v35 = vadd.f32 %v1554_v29, %v633_v33  ;;  %v914_v36 = vadd.f32 %v1554_v29, %v713_v34 }
  0xff   : > { %931 = vst [vmem:[%s1561_s25 + $0x8] sm:$0xff] %v899_v31  ;;  %947 = vst [vmem:[%s1561_s25 + $0x88] sm:$0xff] %v915_v32 }
 0x100   : > { %930 = vst [vmem:[%s1561_s25] sm:$0xff] %v898_v35  ;;  %946 = vst [vmem:[%s1561_s25 + $0x80] sm:$0xff] %v914_v36  ;;  %v1200_v37 = vpop.f32.mrb[2].mxu0  ;;  %v1224_v38 = vpop.f32.mrb[2].mxu1 }
 0x101   : > { %v901_v39 = vadd.f32 %v1200_v37, %v1554_v29  ;;  %v917_v40 = vadd.f32 %v1224_v38, %v1554_v29  ;;  %v643_v41 = vpop.f32.mrb[3].mxu0  ;;  %v723_v42 = vpop.f32.mrb[3].mxu1 }
 0x102   : > { %v900_v43 = vadd.f32 %v1554_v29, %v643_v41  ;;  %v916_v44 = vadd.f32 %v1554_v29, %v723_v42 }
 0x103   : > { %933 = vst [vmem:[%s1561_s25 + $0x18] sm:$0xff] %v901_v39  ;;  %949 = vst [vmem:[%s1561_s25 + $0x98] sm:$0xff] %v917_v40 }
 0x104   : > { %932 = vst [vmem:[%s1561_s25 + $0x10] sm:$0xff] %v900_v43  ;;  %948 = vst [vmem:[%s1561_s25 + $0x90] sm:$0xff] %v916_v44  ;;  %v1203_v45 = vpop.f32.mrb[4].mxu0  ;;  %v1227_v46 = vpop.f32.mrb[4].mxu1 }
 0x105   : > { %v903_v47 = vadd.f32 %v1203_v45, %v1554_v29  ;;  %v919_v48 = vadd.f32 %v1227_v46, %v1554_v29  ;;  %v653_v49 = vpop.f32.mrb[5].mxu0  ;;  %v733_v50 = vpop.f32.mrb[5].mxu1 }
 0x106   : > { %v902_v51 = vadd.f32 %v1554_v29, %v653_v49  ;;  %v918_v52 = vadd.f32 %v1554_v29, %v733_v50 }
 0x107   : > { %935 = vst [vmem:[%s1561_s25 + $0x28] sm:$0xff] %v903_v47  ;;  %951 = vst [vmem:[%s1561_s25 + $0xa8] sm:$0xff] %v919_v48 }
 0x108   : > { %934 = vst [vmem:[%s1561_s25 + $0x20] sm:$0xff] %v902_v51  ;;  %950 = vst [vmem:[%s1561_s25 + $0xa0] sm:$0xff] %v918_v52  ;;  %v1206_v53 = vpop.f32.mrb[6].mxu0  ;;  %v1230_v54 = vpop.f32.mrb[6].mxu1 }
 0x109   : > { %v905_v55 = vadd.f32 %v1206_v53, %v1554_v29  ;;  %v921_v56 = vadd.f32 %v1230_v54, %v1554_v29  ;;  %v663_v57 = vpop.f32.mrb[7].mxu0  ;;  %v743_v58 = vpop.f32.mrb[7].mxu1 }
 0x10a   : > { %v904_v59 = vadd.f32 %v1554_v29, %v663_v57  ;;  %v920_v60 = vadd.f32 %v1554_v29, %v743_v58 }
 0x10b   : > { %937 = vst [vmem:[%s1561_s25 + $0x38] sm:$0xff] %v905_v55  ;;  %953 = vst [vmem:[%s1561_s25 + $0xb8] sm:$0xff] %v921_v56 }
 0x10c   : > { %936 = vst [vmem:[%s1561_s25 + $0x30] sm:$0xff] %v904_v59  ;;  %952 = vst [vmem:[%s1561_s25 + $0xb0] sm:$0xff] %v920_v60  ;;  %v1209_v61 = vpop.f32.mrb[8].mxu0  ;;  %v1233_v62 = vpop.f32.mrb[8].mxu1 }
 0x10d   : > { %v907_v63 = vadd.f32 %v1209_v61, %v1554_v29  ;;  %v923_v0 = vadd.f32 %v1233_v62, %v1554_v29  ;;  %v673_v1 = vpop.f32.mrb[9].mxu0  ;;  %v753_v2 = vpop.f32.mrb[9].mxu1 }
 0x10e   : > { %v906_v3 = vadd.f32 %v1554_v29, %v673_v1  ;;  %v922_v4 = vadd.f32 %v1554_v29, %v753_v2 }
 0x10f   : > { %939 = vst [vmem:[%s1561_s25 + $0x48] sm:$0xff] %v907_v63  ;;  %955 = vst [vmem:[%s1561_s25 + $0xc8] sm:$0xff] %v923_v0 }
 0x110   : > { %938 = vst [vmem:[%s1561_s25 + $0x40] sm:$0xff] %v906_v3  ;;  %954 = vst [vmem:[%s1561_s25 + $0xc0] sm:$0xff] %v922_v4  ;;  %v1212_v5 = vpop.f32.mrb[10].mxu0  ;;  %v1236_v6 = vpop.f32.mrb[10].mxu1 }
 0x111   : > { %v909_v7 = vadd.f32 %v1212_v5, %v1554_v29  ;;  %v925_v8 = vadd.f32 %v1236_v6, %v1554_v29  ;;  %v683_v10 = vpop.f32.mrb[11].mxu0  ;;  %v763_v11 = vpop.f32.mrb[11].mxu1 }
 0x112   : > { %v908_v12 = vadd.f32 %v1554_v29, %v683_v10  ;;  %v924_v14 = vadd.f32 %v1554_v29, %v763_v11 }
 0x113   : > { %941 = vst [vmem:[%s1561_s25 + $0x58] sm:$0xff] %v909_v7  ;;  %957 = vst [vmem:[%s1561_s25 + $0xd8] sm:$0xff] %v925_v8 }
 0x114   : > { %940 = vst [vmem:[%s1561_s25 + $0x50] sm:$0xff] %v908_v12  ;;  %956 = vst [vmem:[%s1561_s25 + $0xd0] sm:$0xff] %v924_v14  ;;  %v1215_v15 = vpop.f32.mrb[12].mxu0  ;;  %v1239_v16 = vpop.f32.mrb[12].mxu1 }
 0x115   : > { %v911_v17 = vadd.f32 %v1215_v15, %v1554_v29  ;;  %v927_v18 = vadd.f32 %v1239_v16, %v1554_v29  ;;  %v693_v19 = vpop.f32.mrb[13].mxu0  ;;  %v773_v20 = vpop.f32.mrb[13].mxu1 }
 0x116   : > { %v910_v21 = vadd.f32 %v1554_v29, %v693_v19  ;;  %v926_v22 = vadd.f32 %v1554_v29, %v773_v20 }
 0x117   : > { %943 = vst [vmem:[%s1561_s25 + $0x68] sm:$0xff] %v911_v17  ;;  %959 = vst [vmem:[%s1561_s25 + $0xe8] sm:$0xff] %v927_v18 }
 0x118   : > { %942 = vst [vmem:[%s1561_s25 + $0x60] sm:$0xff] %v910_v21  ;;  %958 = vst [vmem:[%s1561_s25 + $0xe0] sm:$0xff] %v926_v22  ;;  %v1218_v23 = vpop.f32.mrb[14].mxu0  ;;  %v1242_v24 = vpop.f32.mrb[14].mxu1 }
 0x119   : > { %v913_v25 = vadd.f32 %v1218_v23, %v1554_v29  ;;  %v929_v9 = vadd.f32 %v1242_v24, %v1554_v29  ;;  %v703_v26 = vpop.f32.mrb[15].mxu0  ;;  %v783_v27 = vpop.f32.mrb[15].mxu1 }
 0x11a   : > { %v912_v28 = vadd.f32 %v1554_v29, %v703_v26  ;;  %v928_v13 = vadd.f32 %v1554_v29, %v783_v27 }
 0x11b   : > { %945 = vst [vmem:[%s1561_s25 + $0x78] sm:$0xff] %v913_v25  ;;  %961 = vst [vmem:[%s1561_s25 + $0xf8] sm:$0xff] %v929_v9 }
 0x11c   : > { %944 = vst [vmem:[%s1561_s25 + $0x70] sm:$0xff] %v912_v28  ;;  %960 = vst [vmem:[%s1561_s25 + $0xf0] sm:$0xff] %v928_v13 }
 0x11d PF: > { %s15_s20 = sadd.s32 1, %s1337_s20   ;;  %s1642_s18 = smov %s1333_s19 }
 0x11e   : > { %p12_p5 = scmp.ge.s32.totalorder %s15_s20, 4   ;;  %s1643_s19 = smov %s1645_s21 }
 0x120   :  { %14 = sbr.rel (!%p12_p5) target bundleno = 2 (0x2), region = 90 }

// kernel: densenet_forward.18
= control target key start
LH: loop header
LB: loop body
LE: loop exit
PB: predicated region body
PF: predicated region fallthrough
CT: control target
= control target key end

     0   :  { %s1331_s12 = smov 0   ;;  %s1333_s13 = smov 0   ;;  %s1737_s0 = inlined_call_operand.vmem [shape: f32[512,128], index: 0, kind: input, shape index: {}, may-alias: {0,1}]   ;;  %s1738_s1 = inlined_call_operand.vmem [shape: f32[512,128], index: 1, kind: input, shape index: {}, may-alias: {0,1}]   ;;  %s1739_s2 = inlined_call_operand.vmem [shape: f32[1152,128], index: 2, kind: input, shape index: {}]   ;;  %s1740_s3 = inlined_call_operand.vmem [shape: f32[256,128], index: 3, kind: output, shape index: {}]  }
   0x1   :  { %s1335_s14 = smov 0   ;;  %s1337_s15 = smov 0  }
   0x2   :  { %s1339_s16 = smov 0  }
   0x3 LB: > { %s28_s17 = sadd.s32 1, %s1300_s14  ;;  %s31_s18 = sadd.s32 1, %s1304_s15  ;;  %s1308_s16 = sphi %s1339_s16, %s13_s16   ;;  %s1304_s15 = sphi %s1337_s15, %s1745_s15   ;;  %s1300_s14 = sphi %s1335_s14, %s1744_s14   ;;  %s1296_s13 = sphi %s1333_s13, %s1743_s13   ;;  %s1292_s12 = sphi %s1331_s12, %s1742_s12  }
   0x4   : > { %p29_p0 = scmp.ge.s32.totalorder %s28_s17, 3  ;;  %p1014_p1 = scmp.ge.s32.totalorder %s1308_s16, 1 }
   0x5   : > { %p205_p2 = scmp.lt.s32.totalorder %s1308_s16, 10 }
   0x6   : > { %s1747_s17 = smov (%p29_p0, %s28_s17), 0  ;;  %s1749_s18 = smov (!%p29_p0, %s31_s18), %s1304_s15 }
   0x7   : > { %p206_p3 = pnand %p1014_p1, %p205_p2  ;;  %p33_p4 = scmp.ge.s32.totalorder %s1749_s18, 3 }
   0x8   : > { %s262_s19 = smul.u32 (!%p206_p3), 3, %s1296_s13  ;;  %p284_p5 = scmp.eq.s32.totalorder (!%p206_p3), %s1296_s13, 0 }
   0x9   : > { %s1751_s18 = smov (%p33_p4, %s1749_s18), 0  ;;  %209 = sbr.rel (%p206_p3) target bundleno = 354 (0x162), region = 32 }
   0xa   : > { %p285_p6 = scmp.eq.s32.totalorder (!%p206_p3), %s1292_s12, 0  ;;  %s263_s20 = sadd.s32 (!%p206_p3), %s1292_s12, %s262_s19 }
   0xb   : > { %s1015_s21 = sshll.u32 (!%p206_p3), %s263_s20, 4 }
   0xc   : > { %p286_p7 = pnand (!%p206_p3), %p285_p6, %p284_p5  ;;  %p265_p8 = scmp.lt.s32.totalorder (!%p206_p3), %s1015_s21, 143 }
  0x10   : > { %s1753_s21 = smov (!%p265_p8, %s1015_s21), 143  ;;  %289 = sbr.rel (%p286_p7) target bundleno = 66 (0x42), region = 36 }
  0x11   : > { %s1016_s22 = sshll.u32 %s1753_s21, 3  ;;  %v322_v0 = vld [vmem:[%s1737_s0] sm:$0xff] (!%p286_p7)  ;;  %v323_v1 = vld [vmem:[%s1737_s0 + $0x8] sm:$0xff] (!%p286_p7)  ;;  %v324_v2 = vld [vmem:[%s1737_s0 + $0x10] sm:$0xff] (!%p286_p7)  ;;  %v1310_v3 = vmov (!%p286_p7), 0.0  }
  0x12   : > { %s1372_s25 = scalar_lea.vmem %s1739_s2, %s1016_s22  ;;  %290 = vst [vmem:[#allocation3] sm:$0xff] (!%p286_p7), %v1310_v3  ;;  %291 = vst [vmem:[#allocation3 + $0x8] sm:$0xff] (!%p286_p7), %v1310_v3  ;;  %v325_v4 = vld [vmem:[%s1737_s0 + $0x18] sm:$0xff] (!%p286_p7)  ;;  %v326_v5 = vld [vmem:[%s1737_s0 + $0x20] sm:$0xff] (!%p286_p7) }
  0x13   : > { %292 = vst [vmem:[#allocation3 + $0x10] sm:$0xff] (!%p286_p7), %v1310_v3  ;;  %293 = vst [vmem:[#allocation3 + $0x18] sm:$0xff] (!%p286_p7), %v1310_v3  ;;  %v327_v6 = vld [vmem:[%s1737_s0 + $0x28] sm:$0xff] (!%p286_p7)  ;;  %v328_v7 = vld [vmem:[%s1737_s0 + $0x30] sm:$0xff] (!%p286_p7) }
  0x14   : > { %294 = vst [vmem:[#allocation3 + $0x20] sm:$0xff] (!%p286_p7), %v1310_v3  ;;  %295 = vst [vmem:[#allocation3 + $0x28] sm:$0xff] (!%p286_p7), %v1310_v3  ;;  %v329_v8 = vld [vmem:[%s1737_s0 + $0x38] sm:$0xff] (!%p286_p7)  ;;  %v330_v9 = vld [vmem:[%s1737_s0 + $0x40] sm:$0xff] (!%p286_p7) }
  0x15   : > { %296 = vst [vmem:[#allocation3 + $0x30] sm:$0xff] (!%p286_p7), %v1310_v3  ;;  %297 = vst [vmem:[#allocation3 + $0x38] sm:$0xff] (!%p286_p7), %v1310_v3  ;;  %v331_v10 = vld [vmem:[%s1737_s0 + $0x48] sm:$0xff] (!%p286_p7)  ;;  %v332_v11 = vld [vmem:[%s1737_s0 + $0x50] sm:$0xff] (!%p286_p7) }
  0x16   : > { %298 = vst [vmem:[#allocation3 + $0x40] sm:$0xff] (!%p286_p7), %v1310_v3  ;;  %299 = vst [vmem:[#allocation3 + $0x48] sm:$0xff] (!%p286_p7), %v1310_v3  ;;  %v333_v12 = vld [vmem:[%s1737_s0 + $0x58] sm:$0xff] (!%p286_p7)  ;;  %v334_v13 = vld [vmem:[%s1737_s0 + $0x60] sm:$0xff] (!%p286_p7) }
  0x17   : > { %300 = vst [vmem:[#allocation3 + $0x50] sm:$0xff] %v1310_v3  ;;  %301 = vst [vmem:[#allocation3 + $0x58] sm:$0xff] %v1310_v3  ;;  %v335_v14 = vld [vmem:[%s1737_s0 + $0x68] sm:$0xff]  ;;  %v336_v15 = vld [vmem:[%s1737_s0 + $0x70] sm:$0xff] }
  0x18   : > { %302 = vst [vmem:[#allocation3 + $0x60] sm:$0xff] %v1310_v3  ;;  %303 = vst [vmem:[#allocation3 + $0x68] sm:$0xff] %v1310_v3  ;;  %v337_v16 = vld [vmem:[%s1737_s0 + $0x78] sm:$0xff]  ;;  %v338_v17 = vld [vmem:[%s1737_s0 + $0x80] sm:$0xff] }
  0x19   : > { %304 = vst [vmem:[#allocation3 + $0x70] sm:$0xff] %v1310_v3  ;;  %305 = vst [vmem:[#allocation3 + $0x78] sm:$0xff] %v1310_v3  ;;  %v339_v18 = vld [vmem:[%s1737_s0 + $0x88] sm:$0xff]  ;;  %v340_v19 = vld [vmem:[%s1737_s0 + $0x90] sm:$0xff] }
  0x1a   : > { %306 = vst [vmem:[#allocation3 + $0x80] sm:$0xff] %v1310_v3  ;;  %307 = vst [vmem:[#allocation3 + $0x88] sm:$0xff] %v1310_v3  ;;  %v341_v20 = vld [vmem:[%s1737_s0 + $0x98] sm:$0xff]  ;;  %v342_v21 = vld [vmem:[%s1737_s0 + $0xa0] sm:$0xff] }
  0x1b   : > { %308 = vst [vmem:[#allocation3 + $0x90] sm:$0xff] %v1310_v3  ;;  %309 = vst [vmem:[#allocation3 + $0x98] sm:$0xff] %v1310_v3  ;;  %v343_v22 = vld [vmem:[%s1737_s0 + $0xa8] sm:$0xff]  ;;  %v344_v23 = vld [vmem:[%s1737_s0 + $0xb0] sm:$0xff] }
  0x1c   : > { %310 = vst [vmem:[#allocation3 + $0xa0] sm:$0xff] %v1310_v3  ;;  %311 = vst [vmem:[#allocation3 + $0xa8] sm:$0xff] %v1310_v3  ;;  %v345_v24 = vld [vmem:[%s1737_s0 + $0xb8] sm:$0xff]  ;;  %v346_v25 = vld [vmem:[%s1737_s0 + $0xc0] sm:$0xff] }
  0x1d   : > { %312 = vst [vmem:[#allocation3 + $0xb0] sm:$0xff] %v1310_v3  ;;  %313 = vst [vmem:[#allocation3 + $0xb8] sm:$0xff] %v1310_v3  ;;  %v347_v26 = vld [vmem:[%s1737_s0 + $0xc8] sm:$0xff]  ;;  %v348_v27 = vld [vmem:[%s1737_s0 + $0xd0] sm:$0xff] }
  0x1e   : > { %314 = vst [vmem:[#allocation3 + $0xc0] sm:$0xff] %v1310_v3  ;;  %315 = vst [vmem:[#allocation3 + $0xc8] sm:$0xff] %v1310_v3  ;;  %v349_v28 = vld [vmem:[%s1737_s0 + $0xd8] sm:$0xff]  ;;  %v350_v29 = vld [vmem:[%s1737_s0 + $0xe0] sm:$0xff] }
  0x1f   : > { %316 = vst [vmem:[#allocation3 + $0xd0] sm:$0xff] %v1310_v3  ;;  %317 = vst [vmem:[#allocation3 + $0xd8] sm:$0xff] %v1310_v3  ;;  %v351_v30 = vld [vmem:[%s1737_s0 + $0xe8] sm:$0xff]  ;;  %v352_v31 = vld [vmem:[%s1737_s0 + $0xf0] sm:$0xff] }
  0x20   : > { %318 = vst [vmem:[#allocation3 + $0xe0] sm:$0xff] %v1310_v3  ;;  %319 = vst [vmem:[#allocation3 + $0xe8] sm:$0xff] %v1310_v3  ;;  %v353_v32 = vld [vmem:[%s1737_s0 + $0xf8] sm:$0xff]  ;;  %v1017_v33 = vld [vmem:[%s1738_s1 + $0x100] sm:$0xff] }
  0x21   : > { %320 = vst [vmem:[#allocation3 + $0xf0] sm:$0xff] %v1310_v3  ;;  %321 = vst [vmem:[#allocation3 + $0xf8] sm:$0xff] %v1310_v3  ;;  %v1018_v34 = vld [vmem:[%s1738_s1 + $0x108] sm:$0xff]  ;;  %v1019_v35 = vld [vmem:[%s1738_s1 + $0x110] sm:$0xff] }
  0x22   : > { %354 = vst [vmem:[#allocation2] sm:$0xff] %v322_v0  ;;  %355 = vst [vmem:[#allocation2 + $0x8] sm:$0xff] %v323_v1  ;;  %v1020_v36 = vld [vmem:[%s1738_s1 + $0x118] sm:$0xff]  ;;  %v1021_v37 = vld [vmem:[%s1738_s1 + $0x120] sm:$0xff] }
  0x23   : > { %356 = vst [vmem:[#allocation2 + $0x10] sm:$0xff] %v324_v2  ;;  %357 = vst [vmem:[#allocation2 + $0x18] sm:$0xff] %v325_v4  ;;  %v1022_v38 = vld [vmem:[%s1738_s1 + $0x128] sm:$0xff]  ;;  %v1023_v39 = vld [vmem:[%s1738_s1 + $0x130] sm:$0xff] }
  0x24   : > { %358 = vst [vmem:[#allocation2 + $0x20] sm:$0xff] %v326_v5  ;;  %359 = vst [vmem:[#allocation2 + $0x28] sm:$0xff] %v327_v6  ;;  %v1024_v40 = vld [vmem:[%s1738_s1 + $0x138] sm:$0xff]  ;;  %v1025_v41 = vld [vmem:[%s1738_s1 + $0x140] sm:$0xff] }
  0x25   : > { %360 = vst [vmem:[#allocation2 + $0x30] sm:$0xff] %v328_v7  ;;  %361 = vst [vmem:[#allocation2 + $0x38] sm:$0xff] %v329_v8  ;;  %v1026_v42 = vld [vmem:[%s1738_s1 + $0x148] sm:$0xff]  ;;  %v1027_v43 = vld [vmem:[%s1738_s1 + $0x150] sm:$0xff] }
  0x26   : > { %362 = vst [vmem:[#allocation2 + $0x40] sm:$0xff] %v330_v9  ;;  %363 = vst [vmem:[#allocation2 + $0x48] sm:$0xff] %v331_v10  ;;  %v1028_v44 = vld [vmem:[%s1738_s1 + $0x158] sm:$0xff]  ;;  %v1029_v45 = vld [vmem:[%s1738_s1 + $0x160] sm:$0xff] }
  0x27   : > { %364 = vst [vmem:[#allocation2 + $0x50] sm:$0xff] %v332_v11  ;;  %365 = vst [vmem:[#allocation2 + $0x58] sm:$0xff] %v333_v12  ;;  %v1030_v46 = vld [vmem:[%s1738_s1 + $0x168] sm:$0xff]  ;;  %v1031_v47 = vld [vmem:[%s1738_s1 + $0x170] sm:$0xff] }
  0x28   : > { %366 = vst [vmem:[#allocation2 + $0x60] sm:$0xff] %v334_v13  ;;  %367 = vst [vmem:[#allocation2 + $0x68] sm:$0xff] %v335_v14  ;;  %v1032_v48 = vld [vmem:[%s1738_s1 + $0x178] sm:$0xff]  ;;  %v1033_v49 = vld [vmem:[%s1738_s1 + $0x180] sm:$0xff] }
  0x29   : > { %368 = vst [vmem:[#allocation2 + $0x70] sm:$0xff] %v336_v15  ;;  %369 = vst [vmem:[#allocation2 + $0x78] sm:$0xff] %v337_v16  ;;  %v1034_v50 = vld [vmem:[%s1738_s1 + $0x188] sm:$0xff]  ;;  %v1035_v51 = vld [vmem:[%s1738_s1 + $0x190] sm:$0xff] }
  0x2a   : > { %370 = vst [vmem:[#allocation2 + $0x80] sm:$0xff] %v338_v17  ;;  %371 = vst [vmem:[#allocation2 + $0x88] sm:$0xff] %v339_v18  ;;  %v1036_v52 = vld [vmem:[%s1738_s1 + $0x198] sm:$0xff]  ;;  %v1037_v53 = vld [vmem:[%s1738_s1 + $0x1a0] sm:$0xff] }
  0x2b   : > { %372 = vst [vmem:[#allocation2 + $0x90] sm:$0xff] %v340_v19  ;;  %373 = vst [vmem:[#allocation2 + $0x98] sm:$0xff] %v341_v20  ;;  %v1038_v54 = vld [vmem:[%s1738_s1 + $0x1a8] sm:$0xff]  ;;  %v1039_v55 = vld [vmem:[%s1738_s1 + $0x1b0] sm:$0xff] }
  0x2c   : > { %374 = vst [vmem:[#allocation2 + $0xa0] sm:$0xff] %v342_v21  ;;  %375 = vst [vmem:[#allocation2 + $0xa8] sm:$0xff] %v343_v22  ;;  %v1040_v56 = vld [vmem:[%s1738_s1 + $0x1b8] sm:$0xff]  ;;  %v1041_v57 = vld [vmem:[%s1738_s1 + $0x1c0] sm:$0xff] }
  0x2d   : > { %376 = vst [vmem:[#allocation2 + $0xb0] sm:$0xff] %v344_v23  ;;  %377 = vst [vmem:[#allocation2 + $0xb8] sm:$0xff] %v345_v24  ;;  %v1042_v58 = vld [vmem:[%s1738_s1 + $0x1c8] sm:$0xff]  ;;  %v1043_v59 = vld [vmem:[%s1738_s1 + $0x1d0] sm:$0xff] }
  0x2e   : > { %378 = vst [vmem:[#allocation2 + $0xc0] sm:$0xff] %v346_v25  ;;  %379 = vst [vmem:[#allocation2 + $0xc8] sm:$0xff] %v347_v26  ;;  %v1044_v60 = vld [vmem:[%s1738_s1 + $0x1d8] sm:$0xff]  ;;  %v1045_v61 = vld [vmem:[%s1738_s1 + $0x1e0] sm:$0xff] }
  0x2f   : > { %380 = vst [vmem:[#allocation2 + $0xd0] sm:$0xff] %v348_v27  ;;  %381 = vst [vmem:[#allocation2 + $0xd8] sm:$0xff] %v349_v28  ;;  %v1046_v62 = vld [vmem:[%s1738_s1 + $0x1e8] sm:$0xff]  ;;  %v1047_v63 = vld [vmem:[%s1738_s1 + $0x1f0] sm:$0xff] }
  0x30   : > { %382 = vst [vmem:[#allocation2 + $0xe0] sm:$0xff] %v350_v29  ;;  %383 = vst [vmem:[#allocation2 + $0xe8] sm:$0xff] %v351_v30  ;;  %v1048_v0 = vld [vmem:[%s1738_s1 + $0x1f8] sm:$0xff] }
  0x31   : > { %384 = vst [vmem:[#allocation2 + $0xf0] sm:$0xff] %v352_v31  ;;  %385 = vst [vmem:[#allocation2 + $0xf8] sm:$0xff] %v353_v32 }
  0x32   : > { %418 = vst [vmem:[#allocation2 + $0x100] sm:$0xff] %v1017_v33  ;;  %419 = vst [vmem:[#allocation2 + $0x108] sm:$0xff] %v1018_v34 }
  0x33   : > { %420 = vst [vmem:[#allocation2 + $0x110] sm:$0xff] %v1019_v35  ;;  %421 = vst [vmem:[#allocation2 + $0x118] sm:$0xff] %v1020_v36 }
  0x34   : > { %422 = vst [vmem:[#allocation2 + $0x120] sm:$0xff] %v1021_v37  ;;  %423 = vst [vmem:[#allocation2 + $0x128] sm:$0xff] %v1022_v38 }
  0x35   : > { %424 = vst [vmem:[#allocation2 + $0x130] sm:$0xff] %v1023_v39  ;;  %425 = vst [vmem:[#allocation2 + $0x138] sm:$0xff] %v1024_v40 }
  0x36   : > { %426 = vst [vmem:[#allocation2 + $0x140] sm:$0xff] %v1025_v41  ;;  %427 = vst [vmem:[#allocation2 + $0x148] sm:$0xff] %v1026_v42 }
  0x37   : > { %428 = vst [vmem:[#allocation2 + $0x150] sm:$0xff] %v1027_v43  ;;  %429 = vst [vmem:[#allocation2 + $0x158] sm:$0xff] %v1028_v44 }
  0x38   : > { %430 = vst [vmem:[#allocation2 + $0x160] sm:$0xff] %v1029_v45  ;;  %431 = vst [vmem:[#allocation2 + $0x168] sm:$0xff] %v1030_v46 }
  0x39   : > { %432 = vst [vmem:[#allocation2 + $0x170] sm:$0xff] %v1031_v47  ;;  %433 = vst [vmem:[#allocation2 + $0x178] sm:$0xff] %v1032_v48 }
  0x3a   : > { %434 = vst [vmem:[#allocation2 + $0x180] sm:$0xff] %v1033_v49  ;;  %435 = vst [vmem:[#allocation2 + $0x188] sm:$0xff] %v1034_v50 }
  0x3b   : > { %436 = vst [vmem:[#allocation2 + $0x190] sm:$0xff] %v1035_v51  ;;  %437 = vst [vmem:[#allocation2 + $0x198] sm:$0xff] %v1036_v52 }
  0x3c   : > { %438 = vst [vmem:[#allocation2 + $0x1a0] sm:$0xff] %v1037_v53  ;;  %439 = vst [vmem:[#allocation2 + $0x1a8] sm:$0xff] %v1038_v54 }
  0x3d   : > { %440 = vst [vmem:[#allocation2 + $0x1b0] sm:$0xff] %v1039_v55  ;;  %441 = vst [vmem:[#allocation2 + $0x1b8] sm:$0xff] %v1040_v56 }
  0x3e   : > { %442 = vst [vmem:[#allocation2 + $0x1c0] sm:$0xff] %v1041_v57  ;;  %443 = vst [vmem:[#allocation2 + $0x1c8] sm:$0xff] %v1042_v58 }
  0x3f   : > { %444 = vst [vmem:[#allocation2 + $0x1d0] sm:$0xff] %v1043_v59  ;;  %445 = vst [vmem:[#allocation2 + $0x1d8] sm:$0xff] %v1044_v60 }
  0x40   : > { %446 = vst [vmem:[#allocation2 + $0x1e0] sm:$0xff] %v1045_v61  ;;  %447 = vst [vmem:[#allocation2 + $0x1e8] sm:$0xff] %v1046_v62 }
  0x41   : > { %448 = vst [vmem:[#allocation2 + $0x1f0] sm:$0xff] %v1047_v63  ;;  %449 = vst [vmem:[#allocation2 + $0x1f8] sm:$0xff] %v1048_v0 }
  0x42 PF: > { %v517_v1 = vld [vmem:[%s1372_s25] sm:$0xff]  ;;  %v518_v2 = vld [vmem:[%s1372_s25 + $0x8] sm:$0xff]  ;;  %v519_v3 = vld [vmem:[%s1372_s25 + $0x10] sm:$0xff]  ;;  %s450_s20 = smul.u32 5, %s1296_s13  ;;  %p822_p9 = scmp.eq.s32.totalorder %s1296_s13, 2 }
  0x43   : > { %v1181_v4 = vpack.c.bf16 %v518_v2, %v517_v1  ;;  %v520_v5 = vld [vmem:[%s1372_s25 + $0x18] sm:$0xff]  ;;  %v521_v7 = vld [vmem:[%s1372_s25 + $0x20] sm:$0xff]  ;;  %v522_v8 = vld [vmem:[%s1372_s25 + $0x28] sm:$0xff]  ;;  %p823_p10 = scmp.eq.s32.totalorder %s1292_s12, 2 }
  0x44   : > { %v1185_v6 = vpack.c.bf16 %v520_v5, %v519_v3  ;;  %s451_s21 = sadd.s32 %s1292_s12, %s450_s20  ;;  %v1189_v9 = vpack.c.bf16 %v522_v8, %v521_v7  ;;  %v523_v12 = vld [vmem:[%s1372_s25 + $0x30] sm:$0xff]  ;;  %v524_v13 = vld [vmem:[%s1372_s25 + $0x38] sm:$0xff]  ;;  %v525_v15 = vld [vmem:[%s1372_s25 + $0x40] sm:$0xff] }
  0x45   : > { %1182 = vmatprep.subr.bf16.mxu0 %v1181_v4  ;;  %1213 = vmatprep.subr.bf16.mxu1 %v1181_v4  ;;  %s1574_s22 = scalar_lea.vmem [#allocation2], %s451_s21  ;;  %v1193_v14 = vpack.c.bf16 %v524_v13, %v523_v12  ;;  %v526_v16 = vld [vmem:[%s1372_s25 + $0x48] sm:$0xff]  ;;  %v527_v18 = vld [vmem:[%s1372_s25 + $0x50] sm:$0xff]  ;;  %v528_v19 = vld [vmem:[%s1372_s25 + $0x58] sm:$0xff]  ;;  %p1620_p11 = pnand %p823_p10, %p822_p9 }
  0x46   : > { %1184 = vmatpush3.bf16.msra.mxu0 %v1181_v4  ;;  %1221 = vmatpush3.bf16.msra.mxu1 %v1181_v4  ;;  %v1197_v17 = vpack.c.bf16 %v526_v16, %v525_v15  ;;  %v1201_v20 = vpack.c.bf16 %v528_v19, %v527_v18  ;;  %v529_v21 = vld [vmem:[%s1372_s25 + $0x60] sm:$0xff]  ;;  %v530_v22 = vld [vmem:[%s1372_s25 + $0x68] sm:$0xff]  ;;  %v531_v24 = vld [vmem:[%s1372_s25 + $0x70] sm:$0xff] }
  0x47   : > { %1186 = vmatprep.subr.bf16.mxu0 %v1185_v6  ;;  %1214 = vmatprep.subr.bf16.mxu1 %v1185_v6  ;;  %v1205_v23 = vpack.c.bf16 %v530_v22, %v529_v21  ;;  %v532_v25 = vld [vmem:[%s1372_s25 + $0x78] sm:$0xff]  ;;  %v486_v57 = vld [vmem:[#allocation3 + $0x8] sm:$0xff]  ;;  %v485_v59 = vld [vmem:[#allocation3] sm:$0xff] }
  0x48   : > { %v453_v10 = vld [vmem:[%s1574_s22] sm:$0xff]  ;;  %v1209_v26 = vpack.c.bf16 %v532_v25, %v531_v24  ;;  %v454_v27 = vld [vmem:[%s1574_s22 + $0x8] sm:$0xff]  ;;  %v455_v29 = vld [vmem:[%s1574_s22 + $0x10] sm:$0xff] }
  0x49   : > { %v469_v11 = vld [vmem:[%s1574_s22 + $0x80] sm:$0xff]  ;;  %1133 = vmatprep.mubr.f32.mxu0 %v453_v10  ;;  %v470_v28 = vld [vmem:[%s1574_s22 + $0x88] sm:$0xff]  ;;  %v471_v30 = vld [vmem:[%s1574_s22 + $0x90] sm:$0xff] }
  0x4a   : > { %1157 = vmatprep.mubr.f32.mxu1 %v469_v11  ;;  %1188 = vmatpush3.bf16.msra.mxu0 %v1185_v6  ;;  %v456_v31 = vld [vmem:[%s1574_s22 + $0x18] sm:$0xff]  ;;  %v457_v33 = vld [vmem:[%s1574_s22 + $0x20] sm:$0xff]  ;;  %v458_v35 = vld [vmem:[%s1574_s22 + $0x28] sm:$0xff] }
  0x4b   : > { %1222 = vmatpush3.bf16.msra.mxu1 %v1185_v6  ;;  %1190 = vmatprep.subr.bf16.mxu0 %v1189_v9  ;;  %v472_v32 = vld [vmem:[%s1574_s22 + $0x98] sm:$0xff]  ;;  %v473_v34 = vld [vmem:[%s1574_s22 + $0xa0] sm:$0xff]  ;;  %v474_v36 = vld [vmem:[%s1574_s22 + $0xa8] sm:$0xff] }
  0x4c   : > { %1215 = vmatprep.subr.bf16.mxu1 %v1189_v9  ;;  %v459_v37 = vld [vmem:[%s1574_s22 + $0x30] sm:$0xff]  ;;  %v460_v39 = vld [vmem:[%s1574_s22 + $0x38] sm:$0xff]  ;;  %v461_v41 = vld [vmem:[%s1574_s22 + $0x40] sm:$0xff] }
  0x4d   : > { %v475_v38 = vld [vmem:[%s1574_s22 + $0xb0] sm:$0xff]  ;;  %v476_v40 = vld [vmem:[%s1574_s22 + $0xb8] sm:$0xff]  ;;  %v477_v42 = vld [vmem:[%s1574_s22 + $0xc0] sm:$0xff] }
  0x4e   : > { %1192 = vmatpush3.bf16.msra.mxu0 %v1189_v9  ;;  %v462_v43 = vld [vmem:[%s1574_s22 + $0x48] sm:$0xff]  ;;  %v463_v45 = vld [vmem:[%s1574_s22 + $0x50] sm:$0xff]  ;;  %v464_v47 = vld [vmem:[%s1574_s22 + $0x58] sm:$0xff] }
  0x4f   : > { %1223 = vmatpush3.bf16.msra.mxu1 %v1189_v9  ;;  %1194 = vmatprep.subr.bf16.mxu0 %v1193_v14  ;;  %v478_v44 = vld [vmem:[%s1574_s22 + $0xc8] sm:$0xff]  ;;  %v479_v46 = vld [vmem:[%s1574_s22 + $0xd0] sm:$0xff]  ;;  %v480_v48 = vld [vmem:[%s1574_s22 + $0xd8] sm:$0xff] }
  0x50   : > { %1216 = vmatprep.subr.bf16.mxu1 %v1193_v14  ;;  %v465_v49 = vld [vmem:[%s1574_s22 + $0x60] sm:$0xff]  ;;  %v466_v51 = vld [vmem:[%s1574_s22 + $0x68] sm:$0xff]  ;;  %v467_v53 = vld [vmem:[%s1574_s22 + $0x70] sm:$0xff] }
  0x51   : > { %v481_v50 = vld [vmem:[%s1574_s22 + $0xe0] sm:$0xff]  ;;  %v482_v52 = vld [vmem:[%s1574_s22 + $0xe8] sm:$0xff]  ;;  %v483_v54 = vld [vmem:[%s1574_s22 + $0xf0] sm:$0xff] }
  0x52   : > { %1196 = vmatpush3.bf16.msra.mxu0 %v1193_v14  ;;  %v468_v55 = vld [vmem:[%s1574_s22 + $0x78] sm:$0xff]  ;;  %v502_v58 = vld [vmem:[#allocation3 + $0x88] sm:$0xff]  ;;  %v501_v60 = vld [vmem:[#allocation3 + $0x80] sm:$0xff] }
  0x53   : > { %1224 = vmatpush3.bf16.msra.mxu1 %v1193_v14  ;;  %1198 = vmatprep.subr.bf16.mxu0 %v1197_v17  ;;  %v484_v56 = vld [vmem:[%s1574_s22 + $0xf8] sm:$0xff]  ;;  %v487_v7 = vld [vmem:[#allocation3 + $0x10] sm:$0xff]  ;;  %v506_v18 = vld [vmem:[#allocation3 + $0xa8] sm:$0xff] }
  0x54   : > { %1217 = vmatprep.subr.bf16.mxu1 %v1197_v17  ;;  %v488_v5 = vld [vmem:[#allocation3 + $0x18] sm:$0xff]  ;;  %v503_v8 = vld [vmem:[#allocation3 + $0x90] sm:$0xff]  ;;  %v489_v19 = vld [vmem:[#allocation3 + $0x20] sm:$0xff] }
  0x55   : > { %v504_v6 = vld [vmem:[#allocation3 + $0x98] sm:$0xff] }
  0x56   : > { %1200 = vmatpush3.bf16.msra.mxu0 %v1197_v17 }
  0x57   : > { %1225 = vmatpush3.bf16.msra.mxu1 %v1197_v17  ;;  %1202 = vmatprep.subr.bf16.mxu0 %v1201_v20  ;;  %v490_v17 = vld [vmem:[#allocation3 + $0x28] sm:$0xff] }
  0x58   : > { %1218 = vmatprep.subr.bf16.mxu1 %v1201_v20 }
  0x5a   : > { %1204 = vmatpush3.bf16.msra.mxu0 %v1201_v20 }
  0x5b   : > { %1226 = vmatpush3.bf16.msra.mxu1 %v1201_v20  ;;  %1206 = vmatprep.subr.bf16.mxu0 %v1205_v23  ;;  %v505_v20 = vld [vmem:[#allocation3 + $0xa0] sm:$0xff] }
  0x5c   : > { %1219 = vmatprep.subr.bf16.mxu1 %v1205_v23 }
  0x5e   : > { %1208 = vmatpush3.bf16.msra.mxu0 %v1205_v23 }
  0x5f   : > { %1227 = vmatpush3.bf16.msra.mxu1 %v1205_v23  ;;  %1210 = vmatprep.subr.bf16.mxu0 %v1209_v26 }
  0x60   : > { %1220 = vmatprep.subr.bf16.mxu1 %v1209_v26 }
  0x62   : > { %1212 = vmatpush3.bf16.msra.mxu0 %v1209_v26 }
  0x63   : > { %1228 = vmatpush3.bf16.msra.mxu1 %v1209_v26 }
  0x65   : > { %1134 = vmatmul.mubr.f32.vlgmr.msra.gmra.mrb[0].mxu0 %v454_v27 }
  0x66   : > { %1158 = vmatmul.mubr.f32.vlgmr.msra.gmra.mrb[0].mxu1 %v470_v28  ;;  %1136 = vmatprep.mubr.f32.mxu0 %v455_v29  ;;  %v492_v29 = vld [vmem:[#allocation3 + $0x38] sm:$0xff] }
  0x67   : > { %1160 = vmatprep.mubr.f32.mxu1 %v471_v30  ;;  %v508_v30 = vld [vmem:[#allocation3 + $0xb8] sm:$0xff] }
  0x69   : > { %1137 = vmatmul.mubr.f32.gmra.mrb[2].mxu0 %v456_v31  ;;  %v491_v31 = vld [vmem:[#allocation3 + $0x30] sm:$0xff] }
  0x6a   : > { %1161 = vmatmul.mubr.f32.gmra.mrb[2].mxu1 %v472_v32  ;;  %1139 = vmatprep.mubr.f32.mxu0 %v457_v33  ;;  %v507_v32 = vld [vmem:[#allocation3 + $0xb0] sm:$0xff] }
  0x6b   : > { %1163 = vmatprep.mubr.f32.mxu1 %v473_v34 }
  0x6d   : > { %1140 = vmatmul.mubr.f32.gmra.mrb[4].mxu0 %v458_v35 }
  0x6e   : > { %1164 = vmatmul.mubr.f32.gmra.mrb[4].mxu1 %v474_v36  ;;  %1142 = vmatprep.mubr.f32.mxu0 %v459_v37 }
  0x6f   : > { %1166 = vmatprep.mubr.f32.mxu1 %v475_v38 }
  0x71   : > { %1143 = vmatmul.mubr.f32.gmra.mrb[6].mxu0 %v460_v39 }
  0x72   : > { %1167 = vmatmul.mubr.f32.gmra.mrb[6].mxu1 %v476_v40  ;;  %1145 = vmatprep.mubr.f32.mxu0 %v461_v41  ;;  %v494_v41 = vld [vmem:[#allocation3 + $0x48] sm:$0xff] }
  0x73   : > { %1169 = vmatprep.mubr.f32.mxu1 %v477_v42  ;;  %v510_v42 = vld [vmem:[#allocation3 + $0xc8] sm:$0xff] }
  0x75   : > { %1146 = vmatmul.mubr.f32.gmra.mrb[8].mxu0 %v462_v43  ;;  %v493_v43 = vld [vmem:[#allocation3 + $0x40] sm:$0xff] }
  0x76   : > { %1170 = vmatmul.mubr.f32.gmra.mrb[8].mxu1 %v478_v44  ;;  %1148 = vmatprep.mubr.f32.mxu0 %v463_v45  ;;  %v509_v44 = vld [vmem:[#allocation3 + $0xc0] sm:$0xff] }
  0x77   : > { %1172 = vmatprep.mubr.f32.mxu1 %v479_v46 }
  0x79   : > { %1149 = vmatmul.mubr.f32.gmra.mrb[10].mxu0 %v464_v47 }
  0x7a   : > { %1173 = vmatmul.mubr.f32.gmra.mrb[10].mxu1 %v480_v48  ;;  %1151 = vmatprep.mubr.f32.mxu0 %v465_v49 }
  0x7b   : > { %1175 = vmatprep.mubr.f32.mxu1 %v481_v50 }
  0x7d   : > { %1152 = vmatmul.mubr.f32.gmra.mrb[12].mxu0 %v466_v51 }
  0x7e   : > { %1176 = vmatmul.mubr.f32.gmra.mrb[12].mxu1 %v482_v52  ;;  %1154 = vmatprep.mubr.f32.mxu0 %v467_v53  ;;  %v496_v53 = vld [vmem:[#allocation3 + $0x58] sm:$0xff] }
  0x7f   : > { %1178 = vmatprep.mubr.f32.mxu1 %v483_v54  ;;  %v512_v54 = vld [vmem:[#allocation3 + $0xd8] sm:$0xff] }
  0x81   : > { %1155 = vmatmul.mubr.f32.gmra.mrb[14].mxu0 %v468_v55  ;;  %v495_v55 = vld [vmem:[#allocation3 + $0x50] sm:$0xff] }
  0x82   : > { %1179 = vmatmul.mubr.f32.gmra.mrb[14].mxu1 %v484_v56  ;;  %v511_v56 = vld [vmem:[#allocation3 + $0xd0] sm:$0xff] }
 0x138   : > { %v1135_v61 = vpop.f32.mrb[0].mxu0 }
 0x139   : > { %v1159_v62 = vpop.f32.mrb[0].mxu1  ;;  %v759_v63 = vadd.f32 %v1135_v61, %v486_v57  ;;  %v599_v1 = vpop.f32.mrb[1].mxu0 }
 0x13a   : > { %v775_v0 = vadd.f32 %v1159_v62, %v502_v58  ;;  %v679_v2 = vpop.f32.mrb[1].mxu1  ;;  %v758_v3 = vadd.f32 %v599_v1, %v485_v59  ;;  %v498_v1 = vld [vmem:[#allocation3 + $0x68] sm:$0xff] }
 0x13b   : > { %v774_v4 = vadd.f32 %v679_v2, %v501_v60  ;;  %791 = vst [vmem:[#allocation3 + $0x8] sm:$0xff] %v759_v63  ;;  %v514_v2 = vld [vmem:[#allocation3 + $0xe8] sm:$0xff] }
 0x13c   : > { %807 = vst [vmem:[#allocation3 + $0x88] sm:$0xff] %v775_v0  ;;  %790 = vst [vmem:[#allocation3] sm:$0xff] %v758_v3  ;;  %v1138_v9 = vpop.f32.mrb[2].mxu0  ;;  %v497_v3 = vld [vmem:[#allocation3 + $0x60] sm:$0xff] }
 0x13d   : > { %806 = vst [vmem:[#allocation3 + $0x80] sm:$0xff] %v774_v4  ;;  %v1162_v10 = vpop.f32.mrb[2].mxu1  ;;  %v761_v11 = vadd.f32 %v1138_v9, %v488_v5  ;;  %v609_v13 = vpop.f32.mrb[3].mxu0  ;;  %v513_v4 = vld [vmem:[#allocation3 + $0xe0] sm:$0xff] }
 0x13e   : > { %v777_v12 = vadd.f32 %v1162_v10, %v504_v6  ;;  %v689_v14 = vpop.f32.mrb[3].mxu1  ;;  %v760_v15 = vadd.f32 %v609_v13, %v487_v7  ;;  %v500_v13 = vld [vmem:[#allocation3 + $0x78] sm:$0xff] }
 0x13f   : > { %v776_v16 = vadd.f32 %v689_v14, %v503_v8  ;;  %793 = vst [vmem:[#allocation3 + $0x18] sm:$0xff] %v761_v11  ;;  %v516_v14 = vld [vmem:[#allocation3 + $0xf8] sm:$0xff] }
 0x140   : > { %809 = vst [vmem:[#allocation3 + $0x98] sm:$0xff] %v777_v12  ;;  %792 = vst [vmem:[#allocation3 + $0x10] sm:$0xff] %v760_v15  ;;  %v1141_v21 = vpop.f32.mrb[4].mxu0  ;;  %v499_v15 = vld [vmem:[#allocation3 + $0x70] sm:$0xff] }
 0x141   : > { %808 = vst [vmem:[#allocation3 + $0x90] sm:$0xff] %v776_v16  ;;  %v1165_v22 = vpop.f32.mrb[4].mxu1  ;;  %v763_v23 = vadd.f32 %v1141_v21, %v490_v17  ;;  %v619_v25 = vpop.f32.mrb[5].mxu0  ;;  %v515_v16 = vld [vmem:[#allocation3 + $0xf0] sm:$0xff] }
 0x142   : > { %v779_v24 = vadd.f32 %v1165_v22, %v506_v18  ;;  %v699_v26 = vpop.f32.mrb[5].mxu1  ;;  %v762_v27 = vadd.f32 %v619_v25, %v489_v19 }
 0x143   : > { %v778_v28 = vadd.f32 %v699_v26, %v505_v20  ;;  %795 = vst [vmem:[#allocation3 + $0x28] sm:$0xff] %v763_v23  ;;  %v828_v25 = vld [vmem:[#allocation3] sm:$0xff] (!%p1620_p11)  ;;  %v829_v26 = vld [vmem:[#allocation3 + $0x8] sm:$0xff] (!%p1620_p11) }
 0x144   : > { %811 = vst [vmem:[#allocation3 + $0xa8] sm:$0xff] %v779_v24  ;;  %794 = vst [vmem:[#allocation3 + $0x20] sm:$0xff] %v762_v27  ;;  %v1144_v33 = vpop.f32.mrb[6].mxu0 }
 0x145   : > { %810 = vst [vmem:[#allocation3 + $0xa0] sm:$0xff] %v778_v28  ;;  %v1168_v34 = vpop.f32.mrb[6].mxu1  ;;  %v765_v35 = vadd.f32 %v1144_v33, %v492_v29  ;;  %v629_v37 = vpop.f32.mrb[7].mxu0  ;;  %860 = vst [vmem:[%s1740_s3] sm:$0xff] (!%p1620_p11), %v828_v25 }
 0x146   : > { %v781_v36 = vadd.f32 %v1168_v34, %v508_v30  ;;  %v709_v38 = vpop.f32.mrb[7].mxu1  ;;  %v764_v39 = vadd.f32 %v629_v37, %v491_v31  ;;  %861 = vst [vmem:[%s1740_s3 + $0x8] sm:$0xff] (!%p1620_p11), %v829_v26  ;;  %v831_v28 = vld [vmem:[#allocation3 + $0x18] sm:$0xff] (!%p1620_p11) }
 0x147   : > { %v780_v40 = vadd.f32 %v709_v38, %v507_v32  ;;  %797 = vst [vmem:[#allocation3 + $0x38] sm:$0xff] %v765_v35  ;;  %v830_v27 = vld [vmem:[#allocation3 + $0x10] sm:$0xff] (!%p1620_p11)  ;;  %863 = vst [vmem:[%s1740_s3 + $0x18] sm:$0xff] (!%p1620_p11), %v831_v28 }
 0x148   : > { %813 = vst [vmem:[#allocation3 + $0xb8] sm:$0xff] %v781_v36  ;;  %796 = vst [vmem:[#allocation3 + $0x30] sm:$0xff] %v764_v39  ;;  %v1147_v45 = vpop.f32.mrb[8].mxu0 }
 0x149   : > { %812 = vst [vmem:[#allocation3 + $0xb0] sm:$0xff] %v780_v40  ;;  %v1171_v46 = vpop.f32.mrb[8].mxu1  ;;  %v767_v47 = vadd.f32 %v1147_v45, %v494_v41  ;;  %v639_v49 = vpop.f32.mrb[9].mxu0  ;;  %862 = vst [vmem:[%s1740_s3 + $0x10] sm:$0xff] (!%p1620_p11), %v830_v27  ;;  %v844_v41 = vld [vmem:[#allocation3 + $0x80] sm:$0xff] (!%p1620_p11) }
 0x14a   : > { %v783_v48 = vadd.f32 %v1171_v46, %v510_v42  ;;  %v719_v50 = vpop.f32.mrb[9].mxu1  ;;  %v766_v51 = vadd.f32 %v639_v49, %v493_v43  ;;  %v833_v30 = vld [vmem:[#allocation3 + $0x28] sm:$0xff] (!%p1620_p11)  ;;  %876 = vst [vmem:[%s1740_s3 + $0x80] sm:$0xff] (!%p1620_p11), %v844_v41  ;;  %v846_v43 = vld [vmem:[#allocation3 + $0x90] sm:$0xff] (!%p1620_p11) }
 0x14b   : > { %v782_v52 = vadd.f32 %v719_v50, %v509_v44  ;;  %799 = vst [vmem:[#allocation3 + $0x48] sm:$0xff] %v767_v47  ;;  %v832_v29 = vld [vmem:[#allocation3 + $0x20] sm:$0xff] (!%p1620_p11)  ;;  %865 = vst [vmem:[%s1740_s3 + $0x28] sm:$0xff] (!%p1620_p11), %v833_v30  ;;  %v845_v42 = vld [vmem:[#allocation3 + $0x88] sm:$0xff] (!%p1620_p11) }
 0x14c   : > { %815 = vst [vmem:[#allocation3 + $0xc8] sm:$0xff] %v783_v48  ;;  %798 = vst [vmem:[#allocation3 + $0x40] sm:$0xff] %v766_v51  ;;  %v1150_v57 = vpop.f32.mrb[10].mxu0  ;;  %v847_v44 = vld [vmem:[#allocation3 + $0x98] sm:$0xff] (!%p1620_p11)  ;;  %v848_v45 = vld [vmem:[#allocation3 + $0xa0] sm:$0xff] (!%p1620_p11) }
 0x14d   : > { %814 = vst [vmem:[#allocation3 + $0xc0] sm:$0xff] %v782_v52  ;;  %v1174_v58 = vpop.f32.mrb[10].mxu1  ;;  %v769_v59 = vadd.f32 %v1150_v57, %v496_v53  ;;  %v649_v61 = vpop.f32.mrb[11].mxu0  ;;  %864 = vst [vmem:[%s1740_s3 + $0x20] sm:$0xff] (!%p1620_p11), %v832_v29  ;;  %v849_v46 = vld [vmem:[#allocation3 + $0xa8] sm:$0xff] (!%p1620_p11) }
 0x14e   : > { %v785_v60 = vadd.f32 %v1174_v58, %v512_v54  ;;  %v729_v62 = vpop.f32.mrb[11].mxu1  ;;  %v768_v63 = vadd.f32 %v649_v61, %v495_v55  ;;  %v835_v32 = vld [vmem:[#allocation3 + $0x38] sm:$0xff] (!%p1620_p11)  ;;  %877 = vst [vmem:[%s1740_s3 + $0x88] sm:$0xff] (!%p1620_p11), %v845_v42  ;;  %878 = vst [vmem:[%s1740_s3 + $0x90] sm:$0xff] (!%p1620_p11), %v846_v43 }
 0x14f   : > { %v784_v0 = vadd.f32 %v729_v62, %v511_v56  ;;  %801 = vst [vmem:[#allocation3 + $0x58] sm:$0xff] %v769_v59  ;;  %v834_v31 = vld [vmem:[#allocation3 + $0x30] sm:$0xff] (!%p1620_p11)  ;;  %867 = vst [vmem:[%s1740_s3 + $0x38] sm:$0xff] (!%p1620_p11), %v835_v32  ;;  %v851_v48 = vld [vmem:[#allocation3 + $0xb8] sm:$0xff] (!%p1620_p11) }
 0x150   : > { %817 = vst [vmem:[#allocation3 + $0xd8] sm:$0xff] %v785_v60  ;;  %800 = vst [vmem:[#allocation3 + $0x50] sm:$0xff] %v768_v63  ;;  %v1153_v5 = vpop.f32.mrb[12].mxu0  ;;  %v850_v47 = vld [vmem:[#allocation3 + $0xb0] sm:$0xff] (!%p1620_p11) }
 0x151   : > { %816 = vst [vmem:[#allocation3 + $0xd0] sm:$0xff] %v784_v0  ;;  %v1177_v6 = vpop.f32.mrb[12].mxu1  ;;  %v771_v7 = vadd.f32 %v1153_v5, %v498_v1  ;;  %v659_v9 = vpop.f32.mrb[13].mxu0  ;;  %866 = vst [vmem:[%s1740_s3 + $0x30] sm:$0xff] (!%p1620_p11), %v834_v31 }
 0x152   : > { %v787_v8 = vadd.f32 %v1177_v6, %v514_v2  ;;  %v739_v10 = vpop.f32.mrb[13].mxu1  ;;  %v770_v11 = vadd.f32 %v659_v9, %v497_v3  ;;  %v837_v34 = vld [vmem:[#allocation3 + $0x48] sm:$0xff] (!%p1620_p11)  ;;  %879 = vst [vmem:[%s1740_s3 + $0x98] sm:$0xff] (!%p1620_p11), %v847_v44  ;;  %880 = vst [vmem:[%s1740_s3 + $0xa0] sm:$0xff] (!%p1620_p11), %v848_v45 }
 0x153   : > { %v786_v12 = vadd.f32 %v739_v10, %v513_v4  ;;  %803 = vst [vmem:[#allocation3 + $0x68] sm:$0xff] %v771_v7  ;;  %827 = sbr.rel (%p1620_p11) target bundleno = 354 (0x162), region = 40  ;;  %v836_v33 = vld [vmem:[#allocation3 + $0x40] sm:$0xff] (!%p1620_p11)  ;;  %869 = vst [vmem:[%s1740_s3 + $0x48] sm:$0xff] (!%p1620_p11), %v837_v34  ;;  %v853_v50 = vld [vmem:[#allocation3 + $0xc8] sm:$0xff] (!%p1620_p11) }
 0x154   : > { %819 = vst [vmem:[#allocation3 + $0xe8] sm:$0xff] %v787_v8  ;;  %802 = vst [vmem:[#allocation3 + $0x60] sm:$0xff] %v770_v11  ;;  %v1156_v17 = vpop.f32.mrb[14].mxu0  ;;  %v852_v49 = vld [vmem:[#allocation3 + $0xc0] sm:$0xff] (!%p1620_p11) }
 0x155   : > { %818 = vst [vmem:[#allocation3 + $0xe0] sm:$0xff] %v786_v12  ;;  %v1180_v18 = vpop.f32.mrb[14].mxu1  ;;  %v773_v19 = vadd.f32 %v1156_v17, %v500_v13  ;;  %v669_v21 = vpop.f32.mrb[15].mxu0  ;;  %868 = vst [vmem:[%s1740_s3 + $0x40] sm:$0xff] (!%p1620_p11), %v836_v33 }
 0x156   : > { %v789_v20 = vadd.f32 %v1180_v18, %v516_v14  ;;  %v749_v22 = vpop.f32.mrb[15].mxu1  ;;  %v772_v23 = vadd.f32 %v669_v21, %v499_v15  ;;  %v839_v36 = vld [vmem:[#allocation3 + $0x58] sm:$0xff] (!%p1620_p11)  ;;  %881 = vst [vmem:[%s1740_s3 + $0xa8] sm:$0xff] (!%p1620_p11), %v849_v46  ;;  %882 = vst [vmem:[%s1740_s3 + $0xb0] sm:$0xff] (!%p1620_p11), %v850_v47 }
 0x157   : > { %v788_v24 = vadd.f32 %v749_v22, %v515_v16  ;;  %805 = vst [vmem:[#allocation3 + $0x78] sm:$0xff] %v773_v19  ;;  %v838_v35 = vld [vmem:[#allocation3 + $0x50] sm:$0xff] (!%p1620_p11)  ;;  %871 = vst [vmem:[%s1740_s3 + $0x58] sm:$0xff] (!%p1620_p11), %v839_v36  ;;  %v855_v52 = vld [vmem:[#allocation3 + $0xd8] sm:$0xff] (!%p1620_p11) }
 0x158   : > { %821 = vst [vmem:[#allocation3 + $0xf8] sm:$0xff] %v789_v20  ;;  %804 = vst [vmem:[#allocation3 + $0x70] sm:$0xff] %v772_v23  ;;  %v854_v51 = vld [vmem:[#allocation3 + $0xd0] sm:$0xff] (!%p1620_p11) }
 0x159   : > { %820 = vst [vmem:[#allocation3 + $0xf0] sm:$0xff] %v788_v24  ;;  %870 = vst [vmem:[%s1740_s3 + $0x50] sm:$0xff] (!%p1620_p11), %v838_v35 }
 0x15a   : > { %v841_v38 = vld [vmem:[#allocation3 + $0x68] sm:$0xff]  ;;  %883 = vst [vmem:[%s1740_s3 + $0xb8] sm:$0xff] %v851_v48  ;;  %884 = vst [vmem:[%s1740_s3 + $0xc0] sm:$0xff] %v852_v49 }
 0x15b   : > { %v840_v37 = vld [vmem:[#allocation3 + $0x60] sm:$0xff]  ;;  %873 = vst [vmem:[%s1740_s3 + $0x68] sm:$0xff] %v841_v38  ;;  %885 = vst [vmem:[%s1740_s3 + $0xc8] sm:$0xff] %v853_v50  ;;  %v857_v54 = vld [vmem:[#allocation3 + $0xe8] sm:$0xff] }
 0x15c   : > { %872 = vst [vmem:[%s1740_s3 + $0x60] sm:$0xff] %v840_v37  ;;  %886 = vst [vmem:[%s1740_s3 + $0xd0] sm:$0xff] %v854_v51  ;;  %v856_v53 = vld [vmem:[#allocation3 + $0xe0] sm:$0xff] }
 0x15d   : > { %887 = vst [vmem:[%s1740_s3 + $0xd8] sm:$0xff] %v855_v52  ;;  %888 = vst [vmem:[%s1740_s3 + $0xe0] sm:$0xff] %v856_v53 }
 0x15e   : > { %v843_v40 = vld [vmem:[#allocation3 + $0x78] sm:$0xff]  ;;  %889 = vst [vmem:[%s1740_s3 + $0xe8] sm:$0xff] %v857_v54 }
 0x15f   : > { %v842_v39 = vld [vmem:[#allocation3 + $0x70] sm:$0xff]  ;;  %875 = vst [vmem:[%s1740_s3 + $0x78] sm:$0xff] %v843_v40  ;;  %v859_v56 = vld [vmem:[#allocation3 + $0xf8] sm:$0xff] }
 0x160   : > { %874 = vst [vmem:[%s1740_s3 + $0x70] sm:$0xff] %v842_v39  ;;  %v858_v55 = vld [vmem:[#allocation3 + $0xf0] sm:$0xff]  ;;  %891 = vst [vmem:[%s1740_s3 + $0xf8] sm:$0xff] %v859_v56 }
 0x161   : > { %890 = vst [vmem:[%s1740_s3 + $0xf0] sm:$0xff] %v858_v55 }
 0x162 PF: > { %s13_s16 = sadd.s32 1, %s1308_s16   ;;  %s1742_s12 = smov %s1300_s14 }
 0x163   : > { %p10_p12 = scmp.ge.s32.totalorder %s13_s16, 11   ;;  %s1743_s13 = smov %s1304_s15 }
 0x164   : > { %s1744_s14 = smov %s1747_s17  ;;  %s1745_s15 = smov %s1751_s18 }
 0x165   :  { %12 = sbr.rel (!%p10_p12) target bundleno = 3 (0x3), region = 77 }

</bundles_post_ra>
